<compile_context>
chip_gen: v6e
topology: v6e:2x2x1
jax: 0.10.0
libtpu: 0.0.40
codegen_flags: <defaults>
</compile_context>

<pallas_src>
import jax
import jax.numpy as jnp
from jax.experimental import pallas as pl
from jax.experimental.pallas import tpu as pltpu


# ----------------------------------------------------------------------------
# Stage 1: hoisted input projection  (T*B, D) @ (D, 8H) + bias  -> (T*B, 8H)
# ----------------------------------------------------------------------------
def proj_kernel(x_ref, w_ref, b_ref, o_ref, acc_ref):
    k = pl.program_id(1)

    @pl.when(k == 0)
    def _():
        acc_ref[...] = jnp.zeros_like(acc_ref)

    acc_ref[...] += jnp.dot(x_ref[...], w_ref[...],
                            preferred_element_type=jnp.float32)

    @pl.when(k == pl.num_programs(1) - 1)
    def _():
        o_ref[...] = acc_ref[...] + b_ref[...]


def run_proj(x_flat, w, b, *, tm=128, tk=128):
    """x_flat: (M, K) bf16, w: (K, N) bf16, b: (1, N) f32 -> (M, N) f32."""
    M, K = x_flat.shape
    N = w.shape[1]
    tm = min(tm, M)
    tk = min(tk, K)
    assert M % tm == 0 and K % tk == 0
    return pl.pallas_call(
        proj_kernel,
        out_shape=jax.ShapeDtypeStruct((M, N), jnp.float32),
        grid_spec=pltpu.PrefetchScalarGridSpec(
            num_scalar_prefetch=0,
            grid=(M // tm, K // tk),
            in_specs=[
                pl.BlockSpec((tm, tk), lambda i, k: (i, k)),
                pl.BlockSpec((tk, N), lambda i, k: (k, 0)),
                pl.BlockSpec((1, N), lambda i, k: (0, 0)),
            ],
            out_specs=pl.BlockSpec((tm, N), lambda i, k: (i, 0)),
            scratch_shapes=[pltpu.VMEM((tm, N), jnp.float32)],
        ),
        compiler_params=pltpu.CompilerParams(
            dimension_semantics=("parallel", "arbitrary"),
            vmem_limit_bytes=64 * 1024 * 1024),
    )(x_flat, w, b)


# ----------------------------------------------------------------------------
# Stage 2: fused bidirectional LSTM recurrence (input projection already done)
# ----------------------------------------------------------------------------
def bilstm_kernel(gx_ref, whh_ref, out_ref, h_scr, c_scr):
    """
    gx_ref  : (Tc, B, 4H) f32   precomputed x@W_ih + b for this direction/time block
    whh_ref : (1, H, 4H)  bf16  recurrent weights for this direction
    out_ref : (Tc, B, H)  f32   hidden states (half of x_states' last dim)
    h_scr/c_scr : (B, H)  f32   persistent state across time blocks
    Grid = (direction, time_block); backward direction gets time-reversed blocks
    via the index_map, and walks timesteps in reverse inside the block.
    """
    d = pl.program_id(0)          # 0 = forward, 1 = backward
    tb = pl.program_id(1)
    t_chunk = gx_ref.shape[0]
    H = h_scr.shape[-1]

    @pl.when(tb == 0)
    def _():
        h_scr[...] = jnp.zeros_like(h_scr)
        c_scr[...] = jnp.zeros_like(c_scr)

    whh = whh_ref[0]              # (H, 4H) bf16, stays resident across the loop

    def step(i, carry):
        # within-block timestep: forward walks 0..Tc-1, backward walks Tc-1..0
        tt = (1 - d) * i + d * (t_chunk - 1 - i)
        gates = gx_ref[tt] + jnp.dot(h_scr[...].astype(jnp.bfloat16), whh,
                                     preferred_element_type=jnp.float32)
        # PyTorch gate order: i, f, g, o
        i_g = jax.nn.sigmoid(gates[:, 0:H])
        f_g = jax.nn.sigmoid(gates[:, H:2 * H])
        g_g = jnp.tanh(gates[:, 2 * H:3 * H])
        o_g = jax.nn.sigmoid(gates[:, 3 * H:4 * H])
        c = f_g * c_scr[...] + i_g * g_g
        h = o_g * jnp.tanh(c)
        c_scr[...] = c
        h_scr[...] = h
        out_ref[tt] = h
        return carry

    jax.lax.fori_loop(0, t_chunk, step, 0, unroll=True)


def run_bilstm(gates_x, whh_stack, *, t_chunk):
    """gates_x: (T, B, 8H) f32 ([:, :, :4H]=fwd, [:, :, 4H:]=bwd),
       whh_stack: (2, H, 4H) bf16 -> x_states (T, B, 2H) f32."""
    T, B, G = gates_x.shape
    H = whh_stack.shape[1]
    assert G == 8 * H and T % t_chunk == 0
    nT = T // t_chunk

    def blk(d, t):
        # forward: t; backward: nT-1-t (time reversal is pure DMA addressing)
        return (1 - d) * t + d * (nT - 1 - t)

    return pl.pallas_call(
        bilstm_kernel,
        out_shape=jax.ShapeDtypeStruct((T, B, 2 * H), jnp.float32),
        grid_spec=pltpu.PrefetchScalarGridSpec(
            num_scalar_prefetch=0,
            grid=(2, nT),
            in_specs=[
                pl.BlockSpec((t_chunk, B, 4 * H),
                             lambda d, t: (blk(d, t), 0, d)),
                pl.BlockSpec((1, H, 4 * H), lambda d, t: (d, 0, 0)),
            ],
            out_specs=pl.BlockSpec((t_chunk, B, H),
                                   lambda d, t: (blk(d, t), 0, d)),
            scratch_shapes=[
                pltpu.VMEM((B, H), jnp.float32),
                pltpu.VMEM((B, H), jnp.float32),
            ],
        ),
        compiler_params=pltpu.CompilerParams(
            # directions independent (2 TCs on v7x); time axis is a recurrence
            dimension_semantics=("parallel", "arbitrary"),
            vmem_limit_bytes=64 * 1024 * 1024),
    )(gates_x, whh_stack)


# ----------------------------------------------------------------------------
# Stage 3: fused MLP, tiled over rows, lane-dense (128-padded) output
# ----------------------------------------------------------------------------
def mlp_kernel(x_ref, w1_ref, b1_ref, w2_ref, b2_ref, o_ref):
    x = x_ref[...].astype(jnp.bfloat16)
    h = jnp.dot(x, w1_ref[...], preferred_element_type=jnp.float32) + b1_ref[...]
    o_ref[...] = (jnp.dot(h.astype(jnp.bfloat16), w2_ref[...],
                          preferred_element_type=jnp.float32) + b2_ref[...])


def run_mlp(x_flat, w1t, b1, w2p, b2p, *, tile_rows=64):
    """x_flat: (N, 2H) f32; w1t: (2H, L1) bf16; w2p: (L1, 128) bf16 (zero-padded)."""
    N, F = x_flat.shape
    L1 = w1t.shape[1]
    OUTP = w2p.shape[1]
    tile_rows = tile_rows if N % tile_rows == 0 else N
    return pl.pallas_call(
        mlp_kernel,
        out_shape=jax.ShapeDtypeStruct((N, OUTP), jnp.float32),
        grid_spec=pltpu.PrefetchScalarGridSpec(
            num_scalar_prefetch=0,
            grid=(N // tile_rows,),
            in_specs=[
                pl.BlockSpec((tile_rows, F), lambda i: (i, 0)),
                pl.BlockSpec((F, L1), lambda i: (0, 0)),
                pl.BlockSpec((1, L1), lambda i: (0, 0)),
                pl.BlockSpec((L1, OUTP), lambda i: (0, 0)),
                pl.BlockSpec((1, OUTP), lambda i: (0, 0)),
            ],
            out_specs=pl.BlockSpec((tile_rows, OUTP), lambda i: (i, 0)),
        ),
        compiler_params=pltpu.CompilerParams(
            dimension_semantics=("parallel",),
            vmem_limit_bytes=64 * 1024 * 1024),
    )(x_flat, w1t, b1, w2p, b2p)


# ----------------------------------------------------------------------------
# Full forward
# ----------------------------------------------------------------------------
@jax.jit
def lstm_extractor_w2v(x, params):
    """x: (B, T, D) batch_first f32. Returns (logits (B,T,7), x_states (B,T,2H))."""
    B, T, D = x.shape
    H = params["w_hh_f"].shape[1]
    L1 = params["w1"].shape[0]
    OUT = params["w2"].shape[0]
    OUT_PAD = 128
    t_chunk = 8 if T % 8 == 0 else (4 if T % 4 == 0 else 1)

    # stage 1: hoisted input projection for both directions in one GEMM
    x_tbd = jnp.transpose(x, (1, 0, 2))                             # (T, B, D)
    x_flat = x_tbd.reshape(T * B, D).astype(jnp.bfloat16)
    wih = jnp.concatenate([params["w_ih_f"].T, params["w_ih_b"].T],
                          axis=1).astype(jnp.bfloat16)              # (D, 8H)
    bias = jnp.concatenate([params["b_ih_f"] + params["b_hh_f"],
                            params["b_ih_b"] + params["b_hh_b"]])[None, :]
    gates_x = run_proj(x_flat, wih, bias).reshape(T, B, 8 * H)      # f32

    # stage 2: bidirectional recurrence (writes (T, B, 2H) directly, no concat)
    whh = jnp.stack([params["w_hh_f"].T,
                     params["w_hh_b"].T]).astype(jnp.bfloat16)      # (2, H, 4H)
    x_states_tb = run_bilstm(gates_x, whh, t_chunk=t_chunk)         # (T, B, 2H)

    # Dropout(p=0.3): identity at inference (nn.Dropout in eval mode).

    # stage 3: MLP with 128-padded output lanes
    w1t = params["w1"].T.astype(jnp.bfloat16)                       # (2H, L1)
    b1 = params["b1"][None, :]
    w2p = jnp.zeros((L1, OUT_PAD), jnp.float32).at[:, :OUT].set(
        params["w2"].T).astype(jnp.bfloat16)
    b2p = jnp.zeros((1, OUT_PAD), jnp.float32).at[:, :OUT].set(params["b2"])

    flat = x_states_tb.reshape(T * B, 2 * H)
    out_pad = run_mlp(flat, w1t, b1, w2p, b2p)                      # (T*B, 128)
    out = out_pad[:, :OUT].reshape(T, B, OUT)

    return jnp.transpose(out, (1, 0, 2)), jnp.transpose(x_states_tb, (1, 0, 2))


# ----------------------------------------------------------------------------
# Pure-JAX f32 reference (for correctness check)
# ----------------------------------------------------------------------------
def _ref_lstm_dir(x_btd, w_ih, w_hh, b_ih, b_hh):
    B, T, D = x_btd.shape
    H = w_hh.shape[1]

    def step(carry, x_t):
        h, c = carry
        gates = x_t @ w_ih.T + b_ih + h @ w_hh.T + b_hh
        i = jax.nn.sigmoid(gates[:, 0:H])
        f = jax.nn.sigmoid(gates[:, H:2 * H])
        g = jnp.tanh(gates[:, 2 * H:3 * H])
        o = jax.nn.sigmoid(gates[:, 3 * H:4 * H])
        c = f * c + i * g
        h = o * jnp.tanh(c)
        return (h, c), h

    init = (jnp.zeros((B, H), jnp.float32), jnp.zeros((B, H), jnp.float32))
    _, hs = jax.lax.scan(step, init, jnp.transpose(x_btd, (1, 0, 2)))
    return jnp.transpose(hs, (1, 0, 2))


def _ref_forward(x, p):
    h_f = _ref_lstm_dir(x, p["w_ih_f"], p["w_hh_f"], p["b_ih_f"], p["b_hh_f"])
    h_b = _ref_lstm_dir(x[:, ::-1], p["w_ih_b"], p["w_hh_b"],
                        p["b_ih_b"], p["b_hh_b"])[:, ::-1]
    x_states = jnp.concatenate([h_f, h_b], axis=-1)
    y = x_states @ p["w1"].T + p["b1"]
    y = y @ p["w2"].T + p["b2"]
    return y, x_states


# ----------------------------------------------------------------------------
# Parameter init + driver
# ----------------------------------------------------------------------------
def init_params(key, D, H, L1, OUT):
    bound = 1.0 / jnp.sqrt(H)

    def u(k, shape):
        return jax.random.uniform(k, shape, jnp.float32, -bound, bound)

    keys = jax.random.split(key, 12)
    return {
        "w_ih_f": u(keys[0], (4 * H, D)), "w_hh_f": u(keys[1], (4 * H, H)),
        "b_ih_f": u(keys[2], (4 * H,)),   "b_hh_f": u(keys[3], (4 * H,)),
        "w_ih_b": u(keys[4], (4 * H, D)), "w_hh_b": u(keys[5], (4 * H, H)),
        "b_ih_b": u(keys[6], (4 * H,)),   "b_hh_b": u(keys[7], (4 * H,)),
        "w1": u(keys[8], (L1, 2 * H)),    "b1": u(keys[9], (L1,)),
        "w2": u(keys[10], (OUT, L1)),     "b2": u(keys[11], (OUT,)),
    }


if __name__ == "__main__":
    # Small stand-in dims (real module: D=50000, H=1024, L1=512, OUT=7).
    B, T, D, H, L1, OUT = 8, 16, 256, 128, 128, 7

    key = jax.random.PRNGKey(0)
    k_x, k_p = jax.random.split(key)
    x = jax.random.normal(k_x, (B, T, D), jnp.float32)
    params = init_params(k_p, D, H, L1, OUT)

    logits, x_states = lstm_extractor_w2v(x, params)
    logits, x_states = jax.block_until_ready((logits, x_states))

    ref_logits, ref_states = _ref_forward(x, params)
    assert logits.shape == (B, T, OUT)
    assert x_states.shape == (B, T, 2 * H)
    # bf16 weights on the MXU path -> slightly looser tolerance than pure f32
    assert jnp.allclose(x_states, ref_states, rtol=3e-2, atol=3e-2)
    assert jnp.allclose(logits, ref_logits, rtol=3e-2, atol=3e-2)

    print("KERNEL_OK")
</pallas_src>

<mosaic_0001>
module attributes {stable_mosaic.version = 11 : i64} {
  func.func @proj_kernel(%arg0: i32, %arg1: i32, %arg2: memref<128x128xbf16, #tpu.memory_space<vmem>>, %arg3: memref<128x1024xbf16, #tpu.memory_space<vmem>>, %arg4: memref<1x1024xf32, #tpu.memory_space<vmem>>, %arg5: memref<128x1024xf32, #tpu.memory_space<vmem>>, %arg6: memref<128x1024xf32, #tpu.memory_space<vmem>>) attributes {dimension_semantics = [#tpu.dimension_semantics<parallel>, #tpu.dimension_semantics<arbitrary>], iteration_bounds = array<i64: 1, 2>, scalar_prefetch = 0 : i64, scratch_operands = 1 : i64, tpu.core_type = #tpu.core_type<tc>, window_params = [{transform_indices = @transform_0, window_bounds = array<i64: 128, 128>}, {transform_indices = @transform_1, window_bounds = array<i64: 128, 1024>}, {pipeline_mode = #tpu.pipeline_mode<synchronous>, transform_indices = @transform_2, window_bounds = array<i64: 1, 1024>}, {transform_indices = @transform_3, window_bounds = array<i64: 128, 1024>}]} {
    %c0_i32 = arith.constant 0 : i32
    %0 = arith.cmpi eq, %arg1, %c0_i32 : i32
    %1 = arith.extui %0 : i1 to i32
    %c0_i32_0 = arith.constant 0 : i32
    %2 = arith.cmpi ne, %1, %c0_i32_0 : i32
    scf.if %2 {
      %cst_9 = arith.constant 0.000000e+00 : f32
      %12 = vector.broadcast %cst_9 : f32 to vector<128x1024xf32>
      %c0_10 = arith.constant 0 : index
      %c0_11 = arith.constant 0 : index
      %13 = vector.load %arg6[%c0_10, %c0_11] : memref<128x1024xf32, #tpu.memory_space<vmem>>, vector<128x1024xf32>
      tpu.vector_store %arg6[%c0_10, %c0_11], %12 {strides = array<i32>} : memref<128x1024xf32, #tpu.memory_space<vmem>>, vector<128x1024xf32>,
    } else {
    }
    %c0 = arith.constant 0 : index
    %c0_1 = arith.constant 0 : index
    %3 = vector.load %arg6[%c0, %c0_1] : memref<128x1024xf32, #tpu.memory_space<vmem>>, vector<128x1024xf32>
    %c0_2 = arith.constant 0 : index
    %c0_3 = arith.constant 0 : index
    %4 = vector.load %arg2[%c0_2, %c0_3] : memref<128x128xbf16, #tpu.memory_space<vmem>>, vector<128x128xbf16>
    %c0_4 = arith.constant 0 : index
    %c0_5 = arith.constant 0 : index
    %5 = vector.load %arg3[%c0_4, %c0_5] : memref<128x1024xbf16, #tpu.memory_space<vmem>>, vector<128x1024xbf16>
    %cst = arith.constant dense<0.000000e+00> : vector<128x1024xf32>
    %6 = tpu.matmul %4, %5, %cst {dimension_numbers = #tpu.dot_dimension_numbers<[1], [0], [0], [1], [0, 0, 1, 1], [], []>} : vector<128x128xbf16>, vector<128x1024xbf16>, vector<128x1024xf32> -> vector<128x1024xf32>
    %7 = arith.addf %3, %6 : vector<128x1024xf32>
    %c0_6 = arith.constant 0 : index
    %c0_7 = arith.constant 0 : index
    %8 = vector.load %arg6[%c0_6, %c0_7] : memref<128x1024xf32, #tpu.memory_space<vmem>>, vector<128x1024xf32>
    tpu.vector_store %arg6[%c0_6, %c0_7], %7 {strides = array<i32>} : memref<128x1024xf32, #tpu.memory_space<vmem>>, vector<128x1024xf32>,
    %c1_i32 = arith.constant 1 : i32
    %9 = arith.cmpi eq, %arg1, %c1_i32 : i32
    %10 = arith.extui %9 : i1 to i32
    %c0_i32_8 = arith.constant 0 : i32
    %11 = arith.cmpi ne, %10, %c0_i32_8 : i32
    scf.if %11 {
      %c0_9 = arith.constant 0 : index
      %c0_10 = arith.constant 0 : index
      %12 = vector.load %arg6[%c0_9, %c0_10] : memref<128x1024xf32, #tpu.memory_space<vmem>>, vector<128x1024xf32>
      %c0_11 = arith.constant 0 : index
      %c0_12 = arith.constant 0 : index
      %13 = vector.load %arg4[%c0_11, %c0_12] : memref<1x1024xf32, #tpu.memory_space<vmem>>, vector<1x1024xf32>
      %14 = vector.broadcast %13 : vector<1x1024xf32> to vector<128x1024xf32>
      %15 = arith.addf %12, %14 : vector<128x1024xf32>
      %c0_13 = arith.constant 0 : index
      %c0_14 = arith.constant 0 : index
      %16 = vector.load %arg5[%c0_13, %c0_14] : memref<128x1024xf32, #tpu.memory_space<vmem>>, vector<128x1024xf32>
      tpu.vector_store %arg5[%c0_13, %c0_14], %15 {strides = array<i32>} : memref<128x1024xf32, #tpu.memory_space<vmem>>, vector<128x1024xf32>,
    } else {
    }
    return
  }
  func.func @transform_0(%arg0: i32, %arg1: i32) -> (i32, i32) {
    %c0_i32 = arith.constant 0 : i32
    return %arg0, %arg1 : i32, i32
  }
  func.func @transform_1(%arg0: i32, %arg1: i32) -> (i32, i32) {
    %c0_i32 = arith.constant 0 : i32
    %c0_i32_0 = arith.constant 0 : i32
    return %arg1, %c0_i32 : i32, i32
  }
  func.func @transform_2(%arg0: i32, %arg1: i32) -> (i32, i32) {
    %c0_i32 = arith.constant 0 : i32
    %c0_i32_0 = arith.constant 0 : i32
    %c0_i32_1 = arith.constant 0 : i32
    return %c0_i32, %c0_i32_0 : i32, i32
  }
  func.func @transform_3(%arg0: i32, %arg1: i32) -> (i32, i32) {
    %c0_i32 = arith.constant 0 : i32
    %c0_i32_0 = arith.constant 0 : i32
    return %arg0, %c0_i32 : i32, i32
  }
}

module attributes {stable_mosaic.version = 11 : i64} {
  func.func @bilstm_kernel(%arg0: i32, %arg1: i32, %arg2: memref<8x8x512xf32, #tpu.memory_space<vmem>>, %arg3: memref<1x128x512xbf16, #tpu.memory_space<vmem>>, %arg4: memref<8x8x128xf32, #tpu.memory_space<vmem>>, %arg5: memref<8x128xf32, #tpu.memory_space<vmem>>, %arg6: memref<8x128xf32, #tpu.memory_space<vmem>>) attributes {dimension_semantics = [#tpu.dimension_semantics<parallel>, #tpu.dimension_semantics<arbitrary>], iteration_bounds = array<i64: 2, 2>, scalar_prefetch = 0 : i64, scratch_operands = 2 : i64, tpu.core_type = #tpu.core_type<tc>, window_params = [{transform_indices = @transform_0, window_bounds = array<i64: 8, 8, 512>}, {transform_indices = @transform_1, window_bounds = array<i64: 1, 128, 512>}, {transform_indices = @transform_2, window_bounds = array<i64: 8, 8, 128>}]} {
    %c0_i32 = arith.constant 0 : i32
    %0 = arith.cmpi eq, %arg1, %c0_i32 : i32
    %1 = arith.extui %0 : i1 to i32
    %c0_i32_0 = arith.constant 0 : i32
    %2 = arith.cmpi ne, %1, %c0_i32_0 : i32
    scf.if %2 {
      %cst_147 = arith.constant 0.000000e+00 : f32
      %357 = vector.broadcast %cst_147 : f32 to vector<8x128xf32>
      %c0_148 = arith.constant 0 : index
      %c0_149 = arith.constant 0 : index
      %358 = vector.load %arg5[%c0_148, %c0_149] : memref<8x128xf32, #tpu.memory_space<vmem>>, vector<8x128xf32>
      tpu.vector_store %arg5[%c0_148, %c0_149], %357 {strides = array<i32>} : memref<8x128xf32, #tpu.memory_space<vmem>>, vector<8x128xf32>,
      %cst_150 = arith.constant 0.000000e+00 : f32
      %359 = vector.broadcast %cst_150 : f32 to vector<8x128xf32>
      %c0_151 = arith.constant 0 : index
      %c0_152 = arith.constant 0 : index
      %360 = vector.load %arg6[%c0_151, %c0_152] : memref<8x128xf32, #tpu.memory_space<vmem>>, vector<8x128xf32>
      tpu.vector_store %arg6[%c0_151, %c0_152], %359 {strides = array<i32>} : memref<8x128xf32, #tpu.memory_space<vmem>>, vector<8x128xf32>,
    } else {
    }
    %c0 = arith.constant 0 : index
    %c0_1 = arith.constant 0 : index
    %c0_2 = arith.constant 0 : index
    %3 = vector.load %arg3[%c0, %c0_1, %c0_2] : memref<1x128x512xbf16, #tpu.memory_space<vmem>>, vector<1x128x512xbf16>
    %4 = vector.shape_cast %3 : vector<1x128x512xbf16> to vector<128x512xbf16>
    %c0_i32_3 = arith.constant 0 : i32
    %c1_i32 = arith.constant 1 : i32
    %5 = arith.subi %c1_i32, %arg0 : i32
    %6 = arith.muli %5, %c0_i32_3 : i32
    %c7_i32 = arith.constant 7 : i32
    %7 = arith.subi %c7_i32, %c0_i32_3 : i32
    %8 = arith.muli %arg0, %7 : i32
    %9 = arith.addi %6, %8 : i32
    %10 = arith.index_cast %9 : i32 to index
    %c0_4 = arith.constant 0 : index
    %c0_5 = arith.constant 0 : index
    %11 = vector.load %arg2[%10, %c0_4, %c0_5] : memref<8x8x512xf32, #tpu.memory_space<vmem>>, vector<1x8x512xf32>
    %12 = vector.shape_cast %11 : vector<1x8x512xf32> to vector<8x512xf32>
    %c0_6 = arith.constant 0 : index
    %c0_7 = arith.constant 0 : index
    %13 = vector.load %arg5[%c0_6, %c0_7] : memref<8x128xf32, #tpu.memory_space<vmem>>, vector<8x128xf32>
    %14 = arith.truncf %13 : vector<8x128xf32> to vector<8x128xbf16>
    %cst = arith.constant dense<0.000000e+00> : vector<8x512xf32>
    %15 = tpu.matmul %14, %4, %cst {dimension_numbers = #tpu.dot_dimension_numbers<[1], [0], [0], [1], [0, 0, 1, 1], [], []>} : vector<8x128xbf16>, vector<128x512xbf16>, vector<8x512xf32> -> vector<8x512xf32>
    %16 = arith.addf %12, %15 : vector<8x512xf32>
    %17 = vector.extract_strided_slice %16 {offsets = [0, 0], sizes = [8, 128], strides = [1, 1]} : vector<8x512xf32> to vector<8x128xf32>
    %18 = arith.negf %17 : vector<8x128xf32>
    %19 = math.exp %18 : vector<8x128xf32>
    %cst_8 = arith.constant 1.000000e+00 : f32
    %20 = vector.broadcast %cst_8 : f32 to vector<8x128xf32>
    %21 = arith.addf %20, %19 : vector<8x128xf32>
    %22 = arith.divf %20, %21 : vector<8x128xf32>
    %23 = vector.extract_strided_slice %16 {offsets = [0, 128], sizes = [8, 128], strides = [1, 1]} : vector<8x512xf32> to vector<8x128xf32>
    %24 = arith.negf %23 : vector<8x128xf32>
    %25 = math.exp %24 : vector<8x128xf32>
    %cst_9 = arith.constant 1.000000e+00 : f32
    %26 = vector.broadcast %cst_9 : f32 to vector<8x128xf32>
    %27 = arith.addf %26, %25 : vector<8x128xf32>
    %28 = arith.divf %26, %27 : vector<8x128xf32>
    %29 = vector.extract_strided_slice %16 {offsets = [0, 256], sizes = [8, 128], strides = [1, 1]} : vector<8x512xf32> to vector<8x128xf32>
    %30 = math.tanh %29 : vector<8x128xf32>
    %31 = vector.extract_strided_slice %16 {offsets = [0, 384], sizes = [8, 128], strides = [1, 1]} : vector<8x512xf32> to vector<8x128xf32>
    %32 = arith.negf %31 : vector<8x128xf32>
    %33 = math.exp %32 : vector<8x128xf32>
    %cst_10 = arith.constant 1.000000e+00 : f32
    %34 = vector.broadcast %cst_10 : f32 to vector<8x128xf32>
    %35 = arith.addf %34, %33 : vector<8x128xf32>
    %36 = arith.divf %34, %35 : vector<8x128xf32>
    %c0_11 = arith.constant 0 : index
    %c0_12 = arith.constant 0 : index
    %37 = vector.load %arg6[%c0_11, %c0_12] : memref<8x128xf32, #tpu.memory_space<vmem>>, vector<8x128xf32>
    %38 = arith.mulf %28, %37 : vector<8x128xf32>
    %39 = arith.mulf %22, %30 : vector<8x128xf32>
    %40 = arith.addf %38, %39 : vector<8x128xf32>
    %41 = math.tanh %40 : vector<8x128xf32>
    %42 = arith.mulf %36, %41 : vector<8x128xf32>
    %c0_13 = arith.constant 0 : index
    %c0_14 = arith.constant 0 : index
    %43 = vector.load %arg6[%c0_13, %c0_14] : memref<8x128xf32, #tpu.memory_space<vmem>>, vector<8x128xf32>
    tpu.vector_store %arg6[%c0_13, %c0_14], %40 {strides = array<i32>} : memref<8x128xf32, #tpu.memory_space<vmem>>, vector<8x128xf32>,
    %c0_15 = arith.constant 0 : index
    %c0_16 = arith.constant 0 : index
    %44 = vector.load %arg5[%c0_15, %c0_16] : memref<8x128xf32, #tpu.memory_space<vmem>>, vector<8x128xf32>
    tpu.vector_store %arg5[%c0_15, %c0_16], %42 {strides = array<i32>} : memref<8x128xf32, #tpu.memory_space<vmem>>, vector<8x128xf32>,
    %45 = arith.index_cast %9 : i32 to index
    %c0_17 = arith.constant 0 : index
    %c0_18 = arith.constant 0 : index
    %46 = vector.load %arg4[%45, %c0_17, %c0_18] : memref<8x8x128xf32, #tpu.memory_space<vmem>>, vector<1x8x128xf32>
    %47 = vector.shape_cast %46 : vector<1x8x128xf32> to vector<8x128xf32>
    %48 = vector.shape_cast %42 : vector<8x128xf32> to vector<1x8x128xf32>
    tpu.vector_store %arg4[%45, %c0_17, %c0_18], %48 {strides = array<i32>} : memref<8x8x128xf32, #tpu.memory_space<vmem>>, vector<1x8x128xf32>,
    %c1_i32_19 = arith.constant 1 : i32
    %c1_i32_20 = arith.constant 1 : i32
    %49 = arith.subi %c1_i32_20, %arg0 : i32
    %50 = arith.muli %49, %c1_i32_19 : i32
    %c7_i32_21 = arith.constant 7 : i32
    %51 = arith.subi %c7_i32_21, %c1_i32_19 : i32
    %52 = arith.muli %arg0, %51 : i32
    %53 = arith.addi %50, %52 : i32
    %54 = arith.index_cast %53 : i32 to index
    %c0_22 = arith.constant 0 : index
    %c0_23 = arith.constant 0 : index
    %55 = vector.load %arg2[%54, %c0_22, %c0_23] : memref<8x8x512xf32, #tpu.memory_space<vmem>>, vector<1x8x512xf32>
    %56 = vector.shape_cast %55 : vector<1x8x512xf32> to vector<8x512xf32>
    %c0_24 = arith.constant 0 : index
    %c0_25 = arith.constant 0 : index
    %57 = vector.load %arg5[%c0_24, %c0_25] : memref<8x128xf32, #tpu.memory_space<vmem>>, vector<8x128xf32>
    %58 = arith.truncf %57 : vector<8x128xf32> to vector<8x128xbf16>
    %cst_26 = arith.constant dense<0.000000e+00> : vector<8x512xf32>
    %59 = tpu.matmul %58, %4, %cst_26 {dimension_numbers = #tpu.dot_dimension_numbers<[1], [0], [0], [1], [0, 0, 1, 1], [], []>} : vector<8x128xbf16>, vector<128x512xbf16>, vector<8x512xf32> -> vector<8x512xf32>
    %60 = arith.addf %56, %59 : vector<8x512xf32>
    %61 = vector.extract_strided_slice %60 {offsets = [0, 0], sizes = [8, 128], strides = [1, 1]} : vector<8x512xf32> to vector<8x128xf32>
    %62 = arith.negf %61 : vector<8x128xf32>
    %63 = math.exp %62 : vector<8x128xf32>
    %cst_27 = arith.constant 1.000000e+00 : f32
    %64 = vector.broadcast %cst_27 : f32 to vector<8x128xf32>
    %65 = arith.addf %64, %63 : vector<8x128xf32>
    %66 = arith.divf %64, %65 : vector<8x128xf32>
    %67 = vector.extract_strided_slice %60 {offsets = [0, 128], sizes = [8, 128], strides = [1, 1]} : vector<8x512xf32> to vector<8x128xf32>
    %68 = arith.negf %67 : vector<8x128xf32>
    %69 = math.exp %68 : vector<8x128xf32>
    %cst_28 = arith.constant 1.000000e+00 : f32
    %70 = vector.broadcast %cst_28 : f32 to vector<8x128xf32>
    %71 = arith.addf %70, %69 : vector<8x128xf32>
    %72 = arith.divf %70, %71 : vector<8x128xf32>
    %73 = vector.extract_strided_slice %60 {offsets = [0, 256], sizes = [8, 128], strides = [1, 1]} : vector<8x512xf32> to vector<8x128xf32>
    %74 = math.tanh %73 : vector<8x128xf32>
    %75 = vector.extract_strided_slice %60 {offsets = [0, 384], sizes = [8, 128], strides = [1, 1]} : vector<8x512xf32> to vector<8x128xf32>
    %76 = arith.negf %75 : vector<8x128xf32>
    %77 = math.exp %76 : vector<8x128xf32>
    %cst_29 = arith.constant 1.000000e+00 : f32
    %78 = vector.broadcast %cst_29 : f32 to vector<8x128xf32>
    %79 = arith.addf %78, %77 : vector<8x128xf32>
    %80 = arith.divf %78, %79 : vector<8x128xf32>
    %c0_30 = arith.constant 0 : index
    %c0_31 = arith.constant 0 : index
    %81 = vector.load %arg6[%c0_30, %c0_31] : memref<8x128xf32, #tpu.memory_space<vmem>>, vector<8x128xf32>
    %82 = arith.mulf %72, %81 : vector<8x128xf32>
    %83 = arith.mulf %66, %74 : vector<8x128xf32>
    %84 = arith.addf %82, %83 : vector<8x128xf32>
    %85 = math.tanh %84 : vector<8x128xf32>
    %86 = arith.mulf %80, %85 : vector<8x128xf32>
    %c0_32 = arith.constant 0 : index
    %c0_33 = arith.constant 0 : index
    %87 = vector.load %arg6[%c0_32, %c0_33] : memref<8x128xf32, #tpu.memory_space<vmem>>, vector<8x128xf32>
    tpu.vector_store %arg6[%c0_32, %c0_33], %84 {strides = array<i32>} : memref<8x128xf32, #tpu.memory_space<vmem>>, vector<8x128xf32>,
    %c0_34 = arith.constant 0 : index
    %c0_35 = arith.constant 0 : index
    %88 = vector.load %arg5[%c0_34, %c0_35] : memref<8x128xf32, #tpu.memory_space<vmem>>, vector<8x128xf32>
    tpu.vector_store %arg5[%c0_34, %c0_35], %86 {strides = array<i32>} : memref<8x128xf32, #tpu.memory_space<vmem>>, vector<8x128xf32>,
    %89 = arith.index_cast %53 : i32 to index
    %c0_36 = arith.constant 0 : index
    %c0_37 = arith.constant 0 : index
    %90 = vector.load %arg4[%89, %c0_36, %c0_37] : memref<8x8x128xf32, #tpu.memory_space<vmem>>, vector<1x8x128xf32>
    %91 = vector.shape_cast %90 : vector<1x8x128xf32> to vector<8x128xf32>
    %92 = vector.shape_cast %86 : vector<8x128xf32> to vector<1x8x128xf32>
    tpu.vector_store %arg4[%89, %c0_36, %c0_37], %92 {strides = array<i32>} : memref<8x8x128xf32, #tpu.memory_space<vmem>>, vector<1x8x128xf32>,
    %c2_i32 = arith.constant 2 : i32
    %c1_i32_38 = arith.constant 1 : i32
    %93 = arith.subi %c1_i32_38, %arg0 : i32
    %94 = arith.muli %93, %c2_i32 : i32
    %c7_i32_39 = arith.constant 7 : i32
    %95 = arith.subi %c7_i32_39, %c2_i32 : i32
    %96 = arith.muli %arg0, %95 : i32
    %97 = arith.addi %94, %96 : i32
    %98 = arith.index_cast %97 : i32 to index
    %c0_40 = arith.constant 0 : index
    %c0_41 = arith.constant 0 : index
    %99 = vector.load %arg2[%98, %c0_40, %c0_41] : memref<8x8x512xf32, #tpu.memory_space<vmem>>, vector<1x8x512xf32>
    %100 = vector.shape_cast %99 : vector<1x8x512xf32> to vector<8x512xf32>
    %c0_42 = arith.constant 0 : index
    %c0_43 = arith.constant 0 : index
    %101 = vector.load %arg5[%c0_42, %c0_43] : memref<8x128xf32, #tpu.memory_space<vmem>>, vector<8x128xf32>
    %102 = arith.truncf %101 : vector<8x128xf32> to vector<8x128xbf16>
    %cst_44 = arith.constant dense<0.000000e+00> : vector<8x512xf32>
    %103 = tpu.matmul %102, %4, %cst_44 {dimension_numbers = #tpu.dot_dimension_numbers<[1], [0], [0], [1], [0, 0, 1, 1], [], []>} : vector<8x128xbf16>, vector<128x512xbf16>, vector<8x512xf32> -> vector<8x512xf32>
    %104 = arith.addf %100, %103 : vector<8x512xf32>
    %105 = vector.extract_strided_slice %104 {offsets = [0, 0], sizes = [8, 128], strides = [1, 1]} : vector<8x512xf32> to vector<8x128xf32>
    %106 = arith.negf %105 : vector<8x128xf32>
    %107 = math.exp %106 : vector<8x128xf32>
    %cst_45 = arith.constant 1.000000e+00 : f32
    %108 = vector.broadcast %cst_45 : f32 to vector<8x128xf32>
    %109 = arith.addf %108, %107 : vector<8x128xf32>
    %110 = arith.divf %108, %109 : vector<8x128xf32>
    %111 = vector.extract_strided_slice %104 {offsets = [0, 128], sizes = [8, 128], strides = [1, 1]} : vector<8x512xf32> to vector<8x128xf32>
    %112 = arith.negf %111 : vector<8x128xf32>
    %113 = math.exp %112 : vector<8x128xf32>
    %cst_46 = arith.constant 1.000000e+00 : f32
    %114 = vector.broadcast %cst_46 : f32 to vector<8x128xf32>
    %115 = arith.addf %114, %113 : vector<8x128xf32>
    %116 = arith.divf %114, %115 : vector<8x128xf32>
    %117 = vector.extract_strided_slice %104 {offsets = [0, 256], sizes = [8, 128], strides = [1, 1]} : vector<8x512xf32> to vector<8x128xf32>
    %118 = math.tanh %117 : vector<8x128xf32>
    %119 = vector.extract_strided_slice %104 {offsets = [0, 384], sizes = [8, 128], strides = [1, 1]} : vector<8x512xf32> to vector<8x128xf32>
    %120 = arith.negf %119 : vector<8x128xf32>
    %121 = math.exp %120 : vector<8x128xf32>
    %cst_47 = arith.constant 1.000000e+00 : f32
    %122 = vector.broadcast %cst_47 : f32 to vector<8x128xf32>
    %123 = arith.addf %122, %121 : vector<8x128xf32>
    %124 = arith.divf %122, %123 : vector<8x128xf32>
    %c0_48 = arith.constant 0 : index
    %c0_49 = arith.constant 0 : index
    %125 = vector.load %arg6[%c0_48, %c0_49] : memref<8x128xf32, #tpu.memory_space<vmem>>, vector<8x128xf32>
    %126 = arith.mulf %116, %125 : vector<8x128xf32>
    %127 = arith.mulf %110, %118 : vector<8x128xf32>
    %128 = arith.addf %126, %127 : vector<8x128xf32>
    %129 = math.tanh %128 : vector<8x128xf32>
    %130 = arith.mulf %124, %129 : vector<8x128xf32>
    %c0_50 = arith.constant 0 : index
    %c0_51 = arith.constant 0 : index
    %131 = vector.load %arg6[%c0_50, %c0_51] : memref<8x128xf32, #tpu.memory_space<vmem>>, vector<8x128xf32>
    tpu.vector_store %arg6[%c0_50, %c0_51], %128 {strides = array<i32>} : memref<8x128xf32, #tpu.memory_space<vmem>>, vector<8x128xf32>,
    %c0_52 = arith.constant 0 : index
    %c0_53 = arith.constant 0 : index
    %132 = vector.load %arg5[%c0_52, %c0_53] : memref<8x128xf32, #tpu.memory_space<vmem>>, vector<8x128xf32>
    tpu.vector_store %arg5[%c0_52, %c0_53], %130 {strides = array<i32>} : memref<8x128xf32, #tpu.memory_space<vmem>>, vector<8x128xf32>,
    %133 = arith.index_cast %97 : i32 to index
    %c0_54 = arith.constant 0 : index
    %c0_55 = arith.constant 0 : index
    %134 = vector.load %arg4[%133, %c0_54, %c0_55] : memref<8x8x128xf32, #tpu.memory_space<vmem>>, vector<1x8x128xf32>
    %135 = vector.shape_cast %134 : vector<1x8x128xf32> to vector<8x128xf32>
    %136 = vector.shape_cast %130 : vector<8x128xf32> to vector<1x8x128xf32>
    tpu.vector_store %arg4[%133, %c0_54, %c0_55], %136 {strides = array<i32>} : memref<8x8x128xf32, #tpu.memory_space<vmem>>, vector<1x8x128xf32>,
    %c3_i32 = arith.constant 3 : i32
    %c1_i32_56 = arith.constant 1 : i32
    %137 = arith.subi %c1_i32_56, %arg0 : i32
    %138 = arith.muli %137, %c3_i32 : i32
    %c7_i32_57 = arith.constant 7 : i32
    %139 = arith.subi %c7_i32_57, %c3_i32 : i32
    %140 = arith.muli %arg0, %139 : i32
    %141 = arith.addi %138, %140 : i32
    %142 = arith.index_cast %141 : i32 to index
    %c0_58 = arith.constant 0 : index
    %c0_59 = arith.constant 0 : index
    %143 = vector.load %arg2[%142, %c0_58, %c0_59] : memref<8x8x512xf32, #tpu.memory_space<vmem>>, vector<1x8x512xf32>
    %144 = vector.shape_cast %143 : vector<1x8x512xf32> to vector<8x512xf32>
    %c0_60 = arith.constant 0 : index
    %c0_61 = arith.constant 0 : index
    %145 = vector.load %arg5[%c0_60, %c0_61] : memref<8x128xf32, #tpu.memory_space<vmem>>, vector<8x128xf32>
    %146 = arith.truncf %145 : vector<8x128xf32> to vector<8x128xbf16>
    %cst_62 = arith.constant dense<0.000000e+00> : vector<8x512xf32>
    %147 = tpu.matmul %146, %4, %cst_62 {dimension_numbers = #tpu.dot_dimension_numbers<[1], [0], [0], [1], [0, 0, 1, 1], [], []>} : vector<8x128xbf16>, vector<128x512xbf16>, vector<8x512xf32> -> vector<8x512xf32>
    %148 = arith.addf %144, %147 : vector<8x512xf32>
    %149 = vector.extract_strided_slice %148 {offsets = [0, 0], sizes = [8, 128], strides = [1, 1]} : vector<8x512xf32> to vector<8x128xf32>
    %150 = arith.negf %149 : vector<8x128xf32>
    %151 = math.exp %150 : vector<8x128xf32>
    %cst_63 = arith.constant 1.000000e+00 : f32
    %152 = vector.broadcast %cst_63 : f32 to vector<8x128xf32>
    %153 = arith.addf %152, %151 : vector<8x128xf32>
    %154 = arith.divf %152, %153 : vector<8x128xf32>
    %155 = vector.extract_strided_slice %148 {offsets = [0, 128], sizes = [8, 128], strides = [1, 1]} : vector<8x512xf32> to vector<8x128xf32>
    %156 = arith.negf %155 : vector<8x128xf32>
    %157 = math.exp %156 : vector<8x128xf32>
    %cst_64 = arith.constant 1.000000e+00 : f32
    %158 = vector.broadcast %cst_64 : f32 to vector<8x128xf32>
    %159 = arith.addf %158, %157 : vector<8x128xf32>
    %160 = arith.divf %158, %159 : vector<8x128xf32>
    %161 = vector.extract_strided_slice %148 {offsets = [0, 256], sizes = [8, 128], strides = [1, 1]} : vector<8x512xf32> to vector<8x128xf32>
    %162 = math.tanh %161 : vector<8x128xf32>
    %163 = vector.extract_strided_slice %148 {offsets = [0, 384], sizes = [8, 128], strides = [1, 1]} : vector<8x512xf32> to vector<8x128xf32>
    %164 = arith.negf %163 : vector<8x128xf32>
    %165 = math.exp %164 : vector<8x128xf32>
    %cst_65 = arith.constant 1.000000e+00 : f32
    %166 = vector.broadcast %cst_65 : f32 to vector<8x128xf32>
    %167 = arith.addf %166, %165 : vector<8x128xf32>
    %168 = arith.divf %166, %167 : vector<8x128xf32>
    %c0_66 = arith.constant 0 : index
    %c0_67 = arith.constant 0 : index
    %169 = vector.load %arg6[%c0_66, %c0_67] : memref<8x128xf32, #tpu.memory_space<vmem>>, vector<8x128xf32>
    %170 = arith.mulf %160, %169 : vector<8x128xf32>
    %171 = arith.mulf %154, %162 : vector<8x128xf32>
    %172 = arith.addf %170, %171 : vector<8x128xf32>
    %173 = math.tanh %172 : vector<8x128xf32>
    %174 = arith.mulf %168, %173 : vector<8x128xf32>
    %c0_68 = arith.constant 0 : index
    %c0_69 = arith.constant 0 : index
    %175 = vector.load %arg6[%c0_68, %c0_69] : memref<8x128xf32, #tpu.memory_space<vmem>>, vector<8x128xf32>
    tpu.vector_store %arg6[%c0_68, %c0_69], %172 {strides = array<i32>} : memref<8x128xf32, #tpu.memory_space<vmem>>, vector<8x128xf32>,
    %c0_70 = arith.constant 0 : index
    %c0_71 = arith.constant 0 : index
    %176 = vector.load %arg5[%c0_70, %c0_71] : memref<8x128xf32, #tpu.memory_space<vmem>>, vector<8x128xf32>
    tpu.vector_store %arg5[%c0_70, %c0_71], %174 {strides = array<i32>} : memref<8x128xf32, #tpu.memory_space<vmem>>, vector<8x128xf32>,
    %177 = arith.index_cast %141 : i32 to index
    %c0_72 = arith.constant 0 : index
    %c0_73 = arith.constant 0 : index
    %178 = vector.load %arg4[%177, %c0_72, %c0_73] : memref<8x8x128xf32, #tpu.memory_space<vmem>>, vector<1x8x128xf32>
    %179 = vector.shape_cast %178 : vector<1x8x128xf32> to vector<8x128xf32>
    %180 = vector.shape_cast %174 : vector<8x128xf32> to vector<1x8x128xf32>
    tpu.vector_store %arg4[%177, %c0_72, %c0_73], %180 {strides = array<i32>} : memref<8x8x128xf32, #tpu.memory_space<vmem>>, vector<1x8x128xf32>,
    %c4_i32 = arith.constant 4 : i32
    %c1_i32_74 = arith.constant 1 : i32
    %181 = arith.subi %c1_i32_74, %arg0 : i32
    %182 = arith.muli %181, %c4_i32 : i32
    %c7_i32_75 = arith.constant 7 : i32
    %183 = arith.subi %c7_i32_75, %c4_i32 : i32
    %184 = arith.muli %arg0, %183 : i32
    %185 = arith.addi %182, %184 : i32
    %186 = arith.index_cast %185 : i32 to index
    %c0_76 = arith.constant 0 : index
    %c0_77 = arith.constant 0 : index
    %187 = vector.load %arg2[%186, %c0_76, %c0_77] : memref<8x8x512xf32, #tpu.memory_space<vmem>>, vector<1x8x512xf32>
    %188 = vector.shape_cast %187 : vector<1x8x512xf32> to vector<8x512xf32>
    %c0_78 = arith.constant 0 : index
    %c0_79 = arith.constant 0 : index
    %189 = vector.load %arg5[%c0_78, %c0_79] : memref<8x128xf32, #tpu.memory_space<vmem>>, vector<8x128xf32>
    %190 = arith.truncf %189 : vector<8x128xf32> to vector<8x128xbf16>
    %cst_80 = arith.constant dense<0.000000e+00> : vector<8x512xf32>
    %191 = tpu.matmul %190, %4, %cst_80 {dimension_numbers = #tpu.dot_dimension_numbers<[1], [0], [0], [1], [0, 0, 1, 1], [], []>} : vector<8x128xbf16>, vector<128x512xbf16>, vector<8x512xf32> -> vector<8x512xf32>
    %192 = arith.addf %188, %191 : vector<8x512xf32>
    %193 = vector.extract_strided_slice %192 {offsets = [0, 0], sizes = [8, 128], strides = [1, 1]} : vector<8x512xf32> to vector<8x128xf32>
    %194 = arith.negf %193 : vector<8x128xf32>
    %195 = math.exp %194 : vector<8x128xf32>
    %cst_81 = arith.constant 1.000000e+00 : f32
    %196 = vector.broadcast %cst_81 : f32 to vector<8x128xf32>
    %197 = arith.addf %196, %195 : vector<8x128xf32>
    %198 = arith.divf %196, %197 : vector<8x128xf32>
    %199 = vector.extract_strided_slice %192 {offsets = [0, 128], sizes = [8, 128], strides = [1, 1]} : vector<8x512xf32> to vector<8x128xf32>
    %200 = arith.negf %199 : vector<8x128xf32>
    %201 = math.exp %200 : vector<8x128xf32>
    %cst_82 = arith.constant 1.000000e+00 : f32
    %202 = vector.broadcast %cst_82 : f32 to vector<8x128xf32>
    %203 = arith.addf %202, %201 : vector<8x128xf32>
    %204 = arith.divf %202, %203 : vector<8x128xf32>
    %205 = vector.extract_strided_slice %192 {offsets = [0, 256], sizes = [8, 128], strides = [1, 1]} : vector<8x512xf32> to vector<8x128xf32>
    %206 = math.tanh %205 : vector<8x128xf32>
    %207 = vector.extract_strided_slice %192 {offsets = [0, 384], sizes = [8, 128], strides = [1, 1]} : vector<8x512xf32> to vector<8x128xf32>
    %208 = arith.negf %207 : vector<8x128xf32>
    %209 = math.exp %208 : vector<8x128xf32>
    %cst_83 = arith.constant 1.000000e+00 : f32
    %210 = vector.broadcast %cst_83 : f32 to vector<8x128xf32>
    %211 = arith.addf %210, %209 : vector<8x128xf32>
    %212 = arith.divf %210, %211 : vector<8x128xf32>
    %c0_84 = arith.constant 0 : index
    %c0_85 = arith.constant 0 : index
    %213 = vector.load %arg6[%c0_84, %c0_85] : memref<8x128xf32, #tpu.memory_space<vmem>>, vector<8x128xf32>
    %214 = arith.mulf %204, %213 : vector<8x128xf32>
    %215 = arith.mulf %198, %206 : vector<8x128xf32>
    %216 = arith.addf %214, %215 : vector<8x128xf32>
    %217 = math.tanh %216 : vector<8x128xf32>
    %218 = arith.mulf %212, %217 : vector<8x128xf32>
    %c0_86 = arith.constant 0 : index
    %c0_87 = arith.constant 0 : index
    %219 = vector.load %arg6[%c0_86, %c0_87] : memref<8x128xf32, #tpu.memory_space<vmem>>, vector<8x128xf32>
    tpu.vector_store %arg6[%c0_86, %c0_87], %216 {strides = array<i32>} : memref<8x128xf32, #tpu.memory_space<vmem>>, vector<8x128xf32>,
    %c0_88 = arith.constant 0 : index
    %c0_89 = arith.constant 0 : index
    %220 = vector.load %arg5[%c0_88, %c0_89] : memref<8x128xf32, #tpu.memory_space<vmem>>, vector<8x128xf32>
    tpu.vector_store %arg5[%c0_88, %c0_89], %218 {strides = array<i32>} : memref<8x128xf32, #tpu.memory_space<vmem>>, vector<8x128xf32>,
    %221 = arith.index_cast %185 : i32 to index
    %c0_90 = arith.constant 0 : index
    %c0_91 = arith.constant 0 : index
    %222 = vector.load %arg4[%221, %c0_90, %c0_91] : memref<8x8x128xf32, #tpu.memory_space<vmem>>, vector<1x8x128xf32>
    %223 = vector.shape_cast %222 : vector<1x8x128xf32> to vector<8x128xf32>
    %224 = vector.shape_cast %218 : vector<8x128xf32> to vector<1x8x128xf32>
    tpu.vector_store %arg4[%221, %c0_90, %c0_91], %224 {strides = array<i32>} : memref<8x8x128xf32, #tpu.memory_space<vmem>>, vector<1x8x128xf32>,
    %c5_i32 = arith.constant 5 : i32
    %c1_i32_92 = arith.constant 1 : i32
    %225 = arith.subi %c1_i32_92, %arg0 : i32
    %226 = arith.muli %225, %c5_i32 : i32
    %c7_i32_93 = arith.constant 7 : i32
    %227 = arith.subi %c7_i32_93, %c5_i32 : i32
    %228 = arith.muli %arg0, %227 : i32
    %229 = arith.addi %226, %228 : i32
    %230 = arith.index_cast %229 : i32 to index
    %c0_94 = arith.constant 0 : index
    %c0_95 = arith.constant 0 : index
    %231 = vector.load %arg2[%230, %c0_94, %c0_95] : memref<8x8x512xf32, #tpu.memory_space<vmem>>, vector<1x8x512xf32>
    %232 = vector.shape_cast %231 : vector<1x8x512xf32> to vector<8x512xf32>
    %c0_96 = arith.constant 0 : index
    %c0_97 = arith.constant 0 : index
    %233 = vector.load %arg5[%c0_96, %c0_97] : memref<8x128xf32, #tpu.memory_space<vmem>>, vector<8x128xf32>
    %234 = arith.truncf %233 : vector<8x128xf32> to vector<8x128xbf16>
    %cst_98 = arith.constant dense<0.000000e+00> : vector<8x512xf32>
    %235 = tpu.matmul %234, %4, %cst_98 {dimension_numbers = #tpu.dot_dimension_numbers<[1], [0], [0], [1], [0, 0, 1, 1], [], []>} : vector<8x128xbf16>, vector<128x512xbf16>, vector<8x512xf32> -> vector<8x512xf32>
    %236 = arith.addf %232, %235 : vector<8x512xf32>
    %237 = vector.extract_strided_slice %236 {offsets = [0, 0], sizes = [8, 128], strides = [1, 1]} : vector<8x512xf32> to vector<8x128xf32>
    %238 = arith.negf %237 : vector<8x128xf32>
    %239 = math.exp %238 : vector<8x128xf32>
    %cst_99 = arith.constant 1.000000e+00 : f32
    %240 = vector.broadcast %cst_99 : f32 to vector<8x128xf32>
    %241 = arith.addf %240, %239 : vector<8x128xf32>
    %242 = arith.divf %240, %241 : vector<8x128xf32>
    %243 = vector.extract_strided_slice %236 {offsets = [0, 128], sizes = [8, 128], strides = [1, 1]} : vector<8x512xf32> to vector<8x128xf32>
    %244 = arith.negf %243 : vector<8x128xf32>
    %245 = math.exp %244 : vector<8x128xf32>
    %cst_100 = arith.constant 1.000000e+00 : f32
    %246 = vector.broadcast %cst_100 : f32 to vector<8x128xf32>
    %247 = arith.addf %246, %245 : vector<8x128xf32>
    %248 = arith.divf %246, %247 : vector<8x128xf32>
    %249 = vector.extract_strided_slice %236 {offsets = [0, 256], sizes = [8, 128], strides = [1, 1]} : vector<8x512xf32> to vector<8x128xf32>
    %250 = math.tanh %249 : vector<8x128xf32>
    %251 = vector.extract_strided_slice %236 {offsets = [0, 384], sizes = [8, 128], strides = [1, 1]} : vector<8x512xf32> to vector<8x128xf32>
    %252 = arith.negf %251 : vector<8x128xf32>
    %253 = math.exp %252 : vector<8x128xf32>
    %cst_101 = arith.constant 1.000000e+00 : f32
    %254 = vector.broadcast %cst_101 : f32 to vector<8x128xf32>
    %255 = arith.addf %254, %253 : vector<8x128xf32>
    %256 = arith.divf %254, %255 : vector<8x128xf32>
    %c0_102 = arith.constant 0 : index
    %c0_103 = arith.constant 0 : index
    %257 = vector.load %arg6[%c0_102, %c0_103] : memref<8x128xf32, #tpu.memory_space<vmem>>, vector<8x128xf32>
    %258 = arith.mulf %248, %257 : vector<8x128xf32>
    %259 = arith.mulf %242, %250 : vector<8x128xf32>
    %260 = arith.addf %258, %259 : vector<8x128xf32>
    %261 = math.tanh %260 : vector<8x128xf32>
    %262 = arith.mulf %256, %261 : vector<8x128xf32>
    %c0_104 = arith.constant 0 : index
    %c0_105 = arith.constant 0 : index
    %263 = vector.load %arg6[%c0_104, %c0_105] : memref<8x128xf32, #tpu.memory_space<vmem>>, vector<8x128xf32>
    tpu.vector_store %arg6[%c0_104, %c0_105], %260 {strides = array<i32>} : memref<8x128xf32, #tpu.memory_space<vmem>>, vector<8x128xf32>,
    %c0_106 = arith.constant 0 : index
    %c0_107 = arith.constant 0 : index
    %264 = vector.load %arg5[%c0_106, %c0_107] : memref<8x128xf32, #tpu.memory_space<vmem>>, vector<8x128xf32>
    tpu.vector_store %arg5[%c0_106, %c0_107], %262 {strides = array<i32>} : memref<8x128xf32, #tpu.memory_space<vmem>>, vector<8x128xf32>,
    %265 = arith.index_cast %229 : i32 to index
    %c0_108 = arith.constant 0 : index
    %c0_109 = arith.constant 0 : index
    %266 = vector.load %arg4[%265, %c0_108, %c0_109] : memref<8x8x128xf32, #tpu.memory_space<vmem>>, vector<1x8x128xf32>
    %267 = vector.shape_cast %266 : vector<1x8x128xf32> to vector<8x128xf32>
    %268 = vector.shape_cast %262 : vector<8x128xf32> to vector<1x8x128xf32>
    tpu.vector_store %arg4[%265, %c0_108, %c0_109], %268 {strides = array<i32>} : memref<8x8x128xf32, #tpu.memory_space<vmem>>, vector<1x8x128xf32>,
    %c6_i32 = arith.constant 6 : i32
    %c1_i32_110 = arith.constant 1 : i32
    %269 = arith.subi %c1_i32_110, %arg0 : i32
    %270 = arith.muli %269, %c6_i32 : i32
    %c7_i32_111 = arith.constant 7 : i32
    %271 = arith.subi %c7_i32_111, %c6_i32 : i32
    %272 = arith.muli %arg0, %271 : i32
    %273 = arith.addi %270, %272 : i32
    %274 = arith.index_cast %273 : i32 to index
    %c0_112 = arith.constant 0 : index
    %c0_113 = arith.constant 0 : index
    %275 = vector.load %arg2[%274, %c0_112, %c0_113] : memref<8x8x512xf32, #tpu.memory_space<vmem>>, vector<1x8x512xf32>
    %276 = vector.shape_cast %275 : vector<1x8x512xf32> to vector<8x512xf32>
    %c0_114 = arith.constant 0 : index
    %c0_115 = arith.constant 0 : index
    %277 = vector.load %arg5[%c0_114, %c0_115] : memref<8x128xf32, #tpu.memory_space<vmem>>, vector<8x128xf32>
    %278 = arith.truncf %277 : vector<8x128xf32> to vector<8x128xbf16>
    %cst_116 = arith.constant dense<0.000000e+00> : vector<8x512xf32>
    %279 = tpu.matmul %278, %4, %cst_116 {dimension_numbers = #tpu.dot_dimension_numbers<[1], [0], [0], [1], [0, 0, 1, 1], [], []>} : vector<8x128xbf16>, vector<128x512xbf16>, vector<8x512xf32> -> vector<8x512xf32>
    %280 = arith.addf %276, %279 : vector<8x512xf32>
    %281 = vector.extract_strided_slice %280 {offsets = [0, 0], sizes = [8, 128], strides = [1, 1]} : vector<8x512xf32> to vector<8x128xf32>
    %282 = arith.negf %281 : vector<8x128xf32>
    %283 = math.exp %282 : vector<8x128xf32>
    %cst_117 = arith.constant 1.000000e+00 : f32
    %284 = vector.broadcast %cst_117 : f32 to vector<8x128xf32>
    %285 = arith.addf %284, %283 : vector<8x128xf32>
    %286 = arith.divf %284, %285 : vector<8x128xf32>
    %287 = vector.extract_strided_slice %280 {offsets = [0, 128], sizes = [8, 128], strides = [1, 1]} : vector<8x512xf32> to vector<8x128xf32>
    %288 = arith.negf %287 : vector<8x128xf32>
    %289 = math.exp %288 : vector<8x128xf32>
    %cst_118 = arith.constant 1.000000e+00 : f32
    %290 = vector.broadcast %cst_118 : f32 to vector<8x128xf32>
    %291 = arith.addf %290, %289 : vector<8x128xf32>
    %292 = arith.divf %290, %291 : vector<8x128xf32>
    %293 = vector.extract_strided_slice %280 {offsets = [0, 256], sizes = [8, 128], strides = [1, 1]} : vector<8x512xf32> to vector<8x128xf32>
    %294 = math.tanh %293 : vector<8x128xf32>
    %295 = vector.extract_strided_slice %280 {offsets = [0, 384], sizes = [8, 128], strides = [1, 1]} : vector<8x512xf32> to vector<8x128xf32>
    %296 = arith.negf %295 : vector<8x128xf32>
    %297 = math.exp %296 : vector<8x128xf32>
    %cst_119 = arith.constant 1.000000e+00 : f32
    %298 = vector.broadcast %cst_119 : f32 to vector<8x128xf32>
    %299 = arith.addf %298, %297 : vector<8x128xf32>
    %300 = arith.divf %298, %299 : vector<8x128xf32>
    %c0_120 = arith.constant 0 : index
    %c0_121 = arith.constant 0 : index
    %301 = vector.load %arg6[%c0_120, %c0_121] : memref<8x128xf32, #tpu.memory_space<vmem>>, vector<8x128xf32>
    %302 = arith.mulf %292, %301 : vector<8x128xf32>
    %303 = arith.mulf %286, %294 : vector<8x128xf32>
    %304 = arith.addf %302, %303 : vector<8x128xf32>
    %305 = math.tanh %304 : vector<8x128xf32>
    %306 = arith.mulf %300, %305 : vector<8x128xf32>
    %c0_122 = arith.constant 0 : index
    %c0_123 = arith.constant 0 : index
    %307 = vector.load %arg6[%c0_122, %c0_123] : memref<8x128xf32, #tpu.memory_space<vmem>>, vector<8x128xf32>
    tpu.vector_store %arg6[%c0_122, %c0_123], %304 {strides = array<i32>} : memref<8x128xf32, #tpu.memory_space<vmem>>, vector<8x128xf32>,
    %c0_124 = arith.constant 0 : index
    %c0_125 = arith.constant 0 : index
    %308 = vector.load %arg5[%c0_124, %c0_125] : memref<8x128xf32, #tpu.memory_space<vmem>>, vector<8x128xf32>
    tpu.vector_store %arg5[%c0_124, %c0_125], %306 {strides = array<i32>} : memref<8x128xf32, #tpu.memory_space<vmem>>, vector<8x128xf32>,
    %309 = arith.index_cast %273 : i32 to index
    %c0_126 = arith.constant 0 : index
    %c0_127 = arith.constant 0 : index
    %310 = vector.load %arg4[%309, %c0_126, %c0_127] : memref<8x8x128xf32, #tpu.memory_space<vmem>>, vector<1x8x128xf32>
    %311 = vector.shape_cast %310 : vector<1x8x128xf32> to vector<8x128xf32>
    %312 = vector.shape_cast %306 : vector<8x128xf32> to vector<1x8x128xf32>
    tpu.vector_store %arg4[%309, %c0_126, %c0_127], %312 {strides = array<i32>} : memref<8x8x128xf32, #tpu.memory_space<vmem>>, vector<1x8x128xf32>,
    %c7_i32_128 = arith.constant 7 : i32
    %c1_i32_129 = arith.constant 1 : i32
    %313 = arith.subi %c1_i32_129, %arg0 : i32
    %314 = arith.muli %313, %c7_i32_128 : i32
    %c7_i32_130 = arith.constant 7 : i32
    %315 = arith.subi %c7_i32_130, %c7_i32_128 : i32
    %316 = arith.muli %arg0, %315 : i32
    %317 = arith.addi %314, %316 : i32
    %318 = arith.index_cast %317 : i32 to index
    %c0_131 = arith.constant 0 : index
    %c0_132 = arith.constant 0 : index
    %319 = vector.load %arg2[%318, %c0_131, %c0_132] : memref<8x8x512xf32, #tpu.memory_space<vmem>>, vector<1x8x512xf32>
    %320 = vector.shape_cast %319 : vector<1x8x512xf32> to vector<8x512xf32>
    %c0_133 = arith.constant 0 : index
    %c0_134 = arith.constant 0 : index
    %321 = vector.load %arg5[%c0_133, %c0_134] : memref<8x128xf32, #tpu.memory_space<vmem>>, vector<8x128xf32>
    %322 = arith.truncf %321 : vector<8x128xf32> to vector<8x128xbf16>
    %cst_135 = arith.constant dense<0.000000e+00> : vector<8x512xf32>
    %323 = tpu.matmul %322, %4, %cst_135 {dimension_numbers = #tpu.dot_dimension_numbers<[1], [0], [0], [1], [0, 0, 1, 1], [], []>} : vector<8x128xbf16>, vector<128x512xbf16>, vector<8x512xf32> -> vector<8x512xf32>
    %324 = arith.addf %320, %323 : vector<8x512xf32>
    %325 = vector.extract_strided_slice %324 {offsets = [0, 0], sizes = [8, 128], strides = [1, 1]} : vector<8x512xf32> to vector<8x128xf32>
    %326 = arith.negf %325 : vector<8x128xf32>
    %327 = math.exp %326 : vector<8x128xf32>
    %cst_136 = arith.constant 1.000000e+00 : f32
    %328 = vector.broadcast %cst_136 : f32 to vector<8x128xf32>
    %329 = arith.addf %328, %327 : vector<8x128xf32>
    %330 = arith.divf %328, %329 : vector<8x128xf32>
    %331 = vector.extract_strided_slice %324 {offsets = [0, 128], sizes = [8, 128], strides = [1, 1]} : vector<8x512xf32> to vector<8x128xf32>
    %332 = arith.negf %331 : vector<8x128xf32>
    %333 = math.exp %332 : vector<8x128xf32>
    %cst_137 = arith.constant 1.000000e+00 : f32
    %334 = vector.broadcast %cst_137 : f32 to vector<8x128xf32>
    %335 = arith.addf %334, %333 : vector<8x128xf32>
    %336 = arith.divf %334, %335 : vector<8x128xf32>
    %337 = vector.extract_strided_slice %324 {offsets = [0, 256], sizes = [8, 128], strides = [1, 1]} : vector<8x512xf32> to vector<8x128xf32>
    %338 = math.tanh %337 : vector<8x128xf32>
    %339 = vector.extract_strided_slice %324 {offsets = [0, 384], sizes = [8, 128], strides = [1, 1]} : vector<8x512xf32> to vector<8x128xf32>
    %340 = arith.negf %339 : vector<8x128xf32>
    %341 = math.exp %340 : vector<8x128xf32>
    %cst_138 = arith.constant 1.000000e+00 : f32
    %342 = vector.broadcast %cst_138 : f32 to vector<8x128xf32>
    %343 = arith.addf %342, %341 : vector<8x128xf32>
    %344 = arith.divf %342, %343 : vector<8x128xf32>
    %c0_139 = arith.constant 0 : index
    %c0_140 = arith.constant 0 : index
    %345 = vector.load %arg6[%c0_139, %c0_140] : memref<8x128xf32, #tpu.memory_space<vmem>>, vector<8x128xf32>
    %346 = arith.mulf %336, %345 : vector<8x128xf32>
    %347 = arith.mulf %330, %338 : vector<8x128xf32>
    %348 = arith.addf %346, %347 : vector<8x128xf32>
    %349 = math.tanh %348 : vector<8x128xf32>
    %350 = arith.mulf %344, %349 : vector<8x128xf32>
    %c0_141 = arith.constant 0 : index
    %c0_142 = arith.constant 0 : index
    %351 = vector.load %arg6[%c0_141, %c0_142] : memref<8x128xf32, #tpu.memory_space<vmem>>, vector<8x128xf32>
    tpu.vector_store %arg6[%c0_141, %c0_142], %348 {strides = array<i32>} : memref<8x128xf32, #tpu.memory_space<vmem>>, vector<8x128xf32>,
    %c0_143 = arith.constant 0 : index
    %c0_144 = arith.constant 0 : index
    %352 = vector.load %arg5[%c0_143, %c0_144] : memref<8x128xf32, #tpu.memory_space<vmem>>, vector<8x128xf32>
    tpu.vector_store %arg5[%c0_143, %c0_144], %350 {strides = array<i32>} : memref<8x128xf32, #tpu.memory_space<vmem>>, vector<8x128xf32>,
    %353 = arith.index_cast %317 : i32 to index
    %c0_145 = arith.constant 0 : index
    %c0_146 = arith.constant 0 : index
    %354 = vector.load %arg4[%353, %c0_145, %c0_146] : memref<8x8x128xf32, #tpu.memory_space<vmem>>, vector<1x8x128xf32>
    %355 = vector.shape_cast %354 : vector<1x8x128xf32> to vector<8x128xf32>
    %356 = vector.shape_cast %350 : vector<8x128xf32> to vector<1x8x128xf32>
    tpu.vector_store %arg4[%353, %c0_145, %c0_146], %356 {strides = array<i32>} : memref<8x8x128xf32, #tpu.memory_space<vmem>>, vector<1x8x128xf32>,
    %c8_i32 = arith.constant 8 : i32
    return
  }
  func.func @transform_0(%arg0: i32, %arg1: i32) -> (i32, i32, i32) {
    %c1_i32 = arith.constant 1 : i32
    %0 = arith.subi %c1_i32, %arg0 : i32
    %1 = arith.muli %0, %arg1 : i32
    %c1_i32_0 = arith.constant 1 : i32
    %2 = arith.subi %c1_i32_0, %arg1 : i32
    %3 = arith.muli %arg0, %2 : i32
    %4 = arith.addi %1, %3 : i32
    %c0_i32 = arith.constant 0 : i32
    %c0_i32_1 = arith.constant 0 : i32
    return %4, %c0_i32, %arg0 : i32, i32, i32
  }
  func.func @transform_1(%arg0: i32, %arg1: i32) -> (i32, i32, i32) {
    %c0_i32 = arith.constant 0 : i32
    %c0_i32_0 = arith.constant 0 : i32
    %c0_i32_1 = arith.constant 0 : i32
    return %arg0, %c0_i32, %c0_i32_0 : i32, i32, i32
  }
  func.func @transform_2(%arg0: i32, %arg1: i32) -> (i32, i32, i32) {
    %c1_i32 = arith.constant 1 : i32
    %0 = arith.subi %c1_i32, %arg0 : i32
    %1 = arith.muli %0, %arg1 : i32
    %c1_i32_0 = arith.constant 1 : i32
    %2 = arith.subi %c1_i32_0, %arg1 : i32
    %3 = arith.muli %arg0, %2 : i32
    %4 = arith.addi %1, %3 : i32
    %c0_i32 = arith.constant 0 : i32
    %c0_i32_1 = arith.constant 0 : i32
    return %4, %c0_i32, %arg0 : i32, i32, i32
  }
}

module attributes {stable_mosaic.version = 11 : i64} {
  func.func @mlp_kernel(%arg0: i32, %arg1: memref<64x256xf32, #tpu.memory_space<vmem>>, %arg2: memref<256x128xbf16, #tpu.memory_space<vmem>>, %arg3: memref<1x128xf32, #tpu.memory_space<vmem>>, %arg4: memref<128x128xbf16, #tpu.memory_space<vmem>>, %arg5: memref<1x128xf32, #tpu.memory_space<vmem>>, %arg6: memref<64x128xf32, #tpu.memory_space<vmem>>) attributes {dimension_semantics = [#tpu.dimension_semantics<parallel>], iteration_bounds = array<i64: 2>, scalar_prefetch = 0 : i64, scratch_operands = 0 : i64, tpu.core_type = #tpu.core_type<tc>, window_params = [{transform_indices = @transform_0, window_bounds = array<i64: 64, 256>}, {pipeline_mode = #tpu.pipeline_mode<synchronous>, transform_indices = @transform_1, window_bounds = array<i64: 256, 128>}, {pipeline_mode = #tpu.pipeline_mode<synchronous>, transform_indices = @transform_2, window_bounds = array<i64: 1, 128>}, {pipeline_mode = #tpu.pipeline_mode<synchronous>, transform_indices = @transform_3, window_bounds = array<i64: 128, 128>}, {pipeline_mode = #tpu.pipeline_mode<synchronous>, transform_indices = @transform_4, window_bounds = array<i64: 1, 128>}, {transform_indices = @transform_5, window_bounds = array<i64: 64, 128>}]} {
    %c0 = arith.constant 0 : index
    %c0_0 = arith.constant 0 : index
    %0 = vector.load %arg1[%c0, %c0_0] : memref<64x256xf32, #tpu.memory_space<vmem>>, vector<64x256xf32>
    %1 = arith.truncf %0 : vector<64x256xf32> to vector<64x256xbf16>
    %c0_1 = arith.constant 0 : index
    %c0_2 = arith.constant 0 : index
    %2 = vector.load %arg2[%c0_1, %c0_2] : memref<256x128xbf16, #tpu.memory_space<vmem>>, vector<256x128xbf16>
    %cst = arith.constant dense<0.000000e+00> : vector<64x128xf32>
    %3 = tpu.matmul %1, %2, %cst {dimension_numbers = #tpu.dot_dimension_numbers<[1], [0], [0], [1], [0, 0, 1, 1], [], []>} : vector<64x256xbf16>, vector<256x128xbf16>, vector<64x128xf32> -> vector<64x128xf32>
    %c0_3 = arith.constant 0 : index
    %c0_4 = arith.constant 0 : index
    %4 = vector.load %arg3[%c0_3, %c0_4] : memref<1x128xf32, #tpu.memory_space<vmem>>, vector<1x128xf32>
    %5 = vector.broadcast %4 : vector<1x128xf32> to vector<64x128xf32>
    %6 = arith.addf %3, %5 : vector<64x128xf32>
    %7 = arith.truncf %6 : vector<64x128xf32> to vector<64x128xbf16>
    %c0_5 = arith.constant 0 : index
    %c0_6 = arith.constant 0 : index
    %8 = vector.load %arg4[%c0_5, %c0_6] : memref<128x128xbf16, #tpu.memory_space<vmem>>, vector<128x128xbf16>
    %cst_7 = arith.constant dense<0.000000e+00> : vector<64x128xf32>
    %9 = tpu.matmul %7, %8, %cst_7 {dimension_numbers = #tpu.dot_dimension_numbers<[1], [0], [0], [1], [0, 0, 1, 1], [], []>} : vector<64x128xbf16>, vector<128x128xbf16>, vector<64x128xf32> -> vector<64x128xf32>
    %c0_8 = arith.constant 0 : index
    %c0_9 = arith.constant 0 : index
    %10 = vector.load %arg5[%c0_8, %c0_9] : memref<1x128xf32, #tpu.memory_space<vmem>>, vector<1x128xf32>
    %11 = vector.broadcast %10 : vector<1x128xf32> to vector<64x128xf32>
    %12 = arith.addf %9, %11 : vector<64x128xf32>
    %c0_10 = arith.constant 0 : index
    %c0_11 = arith.constant 0 : index
    %13 = vector.load %arg6[%c0_10, %c0_11] : memref<64x128xf32, #tpu.memory_space<vmem>>, vector<64x128xf32>
    tpu.vector_store %arg6[%c0_10, %c0_11], %12 {strides = array<i32>} : memref<64x128xf32, #tpu.memory_space<vmem>>, vector<64x128xf32>,
    return
  }
  func.func @transform_0(%arg0: i32) -> (i32, i32) {
    %c0_i32 = arith.constant 0 : i32
    %c0_i32_0 = arith.constant 0 : i32
    return %arg0, %c0_i32 : i32, i32
  }
  func.func @transform_1(%arg0: i32) -> (i32, i32) {
    %c0_i32 = arith.constant 0 : i32
    %c0_i32_0 = arith.constant 0 : i32
    %c0_i32_1 = arith.constant 0 : i32
    return %c0_i32, %c0_i32_0 : i32, i32
  }
  func.func @transform_2(%arg0: i32) -> (i32, i32) {
    %c0_i32 = arith.constant 0 : i32
    %c0_i32_0 = arith.constant 0 : i32
    %c0_i32_1 = arith.constant 0 : i32
    return %c0_i32, %c0_i32_0 : i32, i32
  }
  func.func @transform_3(%arg0: i32) -> (i32, i32) {
    %c0_i32 = arith.constant 0 : i32
    %c0_i32_0 = arith.constant 0 : i32
    %c0_i32_1 = arith.constant 0 : i32
    return %c0_i32, %c0_i32_0 : i32, i32
  }
  func.func @transform_4(%arg0: i32) -> (i32, i32) {
    %c0_i32 = arith.constant 0 : i32
    %c0_i32_0 = arith.constant 0 : i32
    %c0_i32_1 = arith.constant 0 : i32
    return %c0_i32, %c0_i32_0 : i32, i32
  }
  func.func @transform_5(%arg0: i32) -> (i32, i32) {
    %c0_i32 = arith.constant 0 : i32
    %c0_i32_0 = arith.constant 0 : i32
    return %arg0, %c0_i32 : i32, i32
  }
}

</mosaic_0001>

<bundles_post_ra>
// kernel: lstm_extractor_w2v.5
= control target key start
LH: loop header
LB: loop body
LE: loop exit
PB: predicated region body
PF: predicated region fallthrough
CT: control target
= control target key end

     0   :  { %s845_s18 = smov 0   ;;  %s962_s0 = inlined_call_operand.vmem [shape: f32[128,256], index: 0, kind: input, shape index: {}]   ;;  %s963_s1 = inlined_call_operand.vmem [shape: bf16[256,128], index: 1, kind: input, shape index: {}]   ;;  %s964_s2 = inlined_call_operand.vmem [shape: f32[1,128], index: 2, kind: input, shape index: {}]   ;;  %s965_s3 = inlined_call_operand.vmem [shape: bf16[128,128], index: 3, kind: input, shape index: {}]   ;;  %s966_s4 = inlined_call_operand.vmem [shape: f32[1,128], index: 4, kind: input, shape index: {}]   ;;  %s967_s5 = inlined_call_operand.vmem [shape: f32[128,128], index: 5, kind: output, shape index: {}]  }
   0x1 LB: > { %s660_s19 = sadd.s32 4294967295, %s813_s18   ;;  %p664_p0 = scmp.ge.s32.totalorder %s813_s18, 1  ;;  %s813_s18 = sphi %s845_s18, %s15_s18  }
   0x2   : > { %p189_p1 = scmp.lt.s32.totalorder %s813_s18, 3 }
   0x4   : > { %p190_p2 = pnand %p664_p0, %p189_p1 }
   0x5   : > { %s665_s22 = sshll.u32 (!%p190_p2), %s660_s19, 3 }
   0x6   : > { %193 = sbr.rel (%p190_p2) target bundleno = 475 (0x1db), region = 40  ;;  %p219_p3 = scmp.lt.s32.totalorder (!%p190_p2), %s665_s22, 15 }
   0xb   : > { %v783_v0 = vld [vmem:[%s963_s1 + $0x78] sm:$0xff]   ;;  %v785_v2 = vld [vmem:[%s963_s1 + $0x70] sm:$0xff]   ;;  %v787_v4 = vld [vmem:[%s963_s1 + $0x68] sm:$0xff]   ;;  %s969_s22 = smov (!%p219_p3, %s665_s22), 15 }
   0xc   : > { %v784_v1 = vld [vmem:[%s963_s1 + $0x38] sm:$0xff]   ;;  %699 = vmatprep.subr.bf16.mxu0 %v783_v0  ;;  %v786_v3 = vld [vmem:[%s963_s1 + $0x30] sm:$0xff]   ;;  %v788_v5 = vld [vmem:[%s963_s1 + $0x28] sm:$0xff]   ;;  %s698_s10 = sshll.u32 %s969_s22, 4  ;;  %s669_s29 = sshll.u32 %s969_s22, 3 }
   0xd   : > { %700 = vmatpush3.bf16.msra.mxu0 %v784_v1  ;;  %v789_v6 = vld [vmem:[%s963_s1 + $0x60] sm:$0xff]   ;;  %v791_v8 = vld [vmem:[%s963_s1 + $0x58] sm:$0xff]   ;;  %s886_s17 = scalar_lea.vmem %s962_s0, %s698_s10  ;;  %v793_v10 = vld [vmem:[%s963_s1 + $0x50] sm:$0xff]   ;;  %s229_s9 = scalar_lea.vmem %s967_s5, %s669_s29 }
   0xe   : > { %701 = vmatprep.subr.bf16.mxu0 %v785_v2  ;;  %v790_v7 = vld [vmem:[%s963_s1 + $0x20] sm:$0xff]   ;;  %v792_v9 = vld [vmem:[%s963_s1 + $0x18] sm:$0xff]   ;;  %v233_v11 = vld [vmem:[%s886_s17 + $0x8] sm:$0xff] }
   0xf   : > { %v235_v12 = vld [vmem:[%s886_s17 + $0x18] sm:$0xff]  ;;  %v794_v14 = vld [vmem:[%s963_s1 + $0x10] sm:$0xff]   ;;  %v795_v15 = vld [vmem:[%s963_s1 + $0x48] sm:$0xff]  }
  0x10   : > { %v249_v13 = vpack.c.bf16 %v235_v12, %v233_v11  ;;  %v796_v16 = vld [vmem:[%s963_s1 + $0x8] sm:$0xff]   ;;  %v797_v17 = vld [vmem:[%s963_s1 + $0x40] sm:$0xff]   ;;  %v799_v18 = vld [vmem:[%s965_s3 + $0x38] sm:$0xff]  }
  0x11   : > { %702 = vmatpush3.bf16.msra.mxu0 %v786_v3  ;;  %v800_v19 = vld [vmem:[%s965_s3 + $0x30] sm:$0xff]   ;;  %751 = vmatprep.subr.bf16.mxu1 %v799_v18  ;;  %v801_v20 = vld [vmem:[%s965_s3 + $0x28] sm:$0xff]   ;;  %v798_v21 = vld [vmem:[%s963_s1] sm:$0xff]  }
  0x12   : > { %703 = vmatprep.subr.bf16.mxu0 %v787_v4  ;;  %423 = vmatprep.mubr.bf16.mxu0 %v249_v13  ;;  %v232_v22 = vld [vmem:[%s886_s17] sm:$0xff]  ;;  %v234_v23 = vld [vmem:[%s886_s17 + $0x10] sm:$0xff]  ;;  %v237_v24 = vld [vmem:[%s886_s17 + $0x28] sm:$0xff] }
  0x13   : > { %752 = vmatpush3.bf16.msra.mxu1 %v799_v18  ;;  %v239_v25 = vld [vmem:[%s886_s17 + $0x38] sm:$0xff]  ;;  %v248_v26 = vpack.c.bf16 %v234_v23, %v232_v22  ;;  %v236_v28 = vld [vmem:[%s886_s17 + $0x20] sm:$0xff]  ;;  %v238_v29 = vld [vmem:[%s886_s17 + $0x30] sm:$0xff] }
  0x14   : > { %753 = vmatprep.subr.bf16.mxu1 %v800_v19  ;;  %v251_v27 = vpack.c.bf16 %v239_v25, %v237_v24  ;;  %v241_v30 = vld [vmem:[%s886_s17 + $0x48] sm:$0xff]  ;;  %v243_v31 = vld [vmem:[%s886_s17 + $0x58] sm:$0xff]  ;;  %v250_v32 = vpack.c.bf16 %v238_v29, %v236_v28  ;;  %v240_v34 = vld [vmem:[%s886_s17 + $0x40] sm:$0xff] }
  0x15   : > { %704 = vmatpush3.bf16.msra.mxu0 %v788_v5  ;;  %v253_v33 = vpack.c.bf16 %v243_v31, %v241_v30  ;;  %v242_v35 = vld [vmem:[%s886_s17 + $0x50] sm:$0xff]  ;;  %v245_v36 = vld [vmem:[%s886_s17 + $0x68] sm:$0xff]  ;;  %v247_v37 = vld [vmem:[%s886_s17 + $0x78] sm:$0xff] }
  0x16   : > { %705 = vmatprep.subr.bf16.mxu0 %v789_v6  ;;  %v252_v38 = vpack.c.bf16 %v242_v35, %v240_v34  ;;  %v255_v39 = vpack.c.bf16 %v247_v37, %v245_v36  ;;  %v244_v40 = vld [vmem:[%s886_s17 + $0x60] sm:$0xff]  ;;  %v246_v41 = vld [vmem:[%s886_s17 + $0x70] sm:$0xff]  ;;  %v803_v44 = vld [vmem:[%s965_s3 + $0x18] sm:$0xff]  }
  0x17   : > { %754 = vmatpush3.bf16.msra.mxu1 %v800_v19  ;;  %v254_v42 = vpack.c.bf16 %v246_v41, %v244_v40  ;;  %v802_v43 = vld [vmem:[%s965_s3 + $0x20] sm:$0xff]   ;;  %v804_v45 = vld [vmem:[%s965_s3 + $0x10] sm:$0xff]   ;;  %v805_v46 = vld [vmem:[%s965_s3 + $0x8] sm:$0xff]  }
  0x18   : > { %755 = vmatprep.subr.bf16.mxu1 %v801_v20  ;;  %v806_v47 = vld [vmem:[%s965_s3] sm:$0xff]  }
  0x19   : > { %706 = vmatpush3.bf16.msra.mxu0 %v790_v7  ;;  %v670_v53 = vld [vmem:[%s964_s2] ss:$0 sm:$0xff] }
  0x1a   : > { %707 = vmatprep.subr.bf16.mxu0 %v791_v8 }
  0x1b   : > { %756 = vmatpush3.bf16.msra.mxu1 %v801_v20 }
  0x1c   : > { %757 = vmatprep.subr.bf16.mxu1 %v802_v43 }
  0x1d   : > { %708 = vmatpush3.bf16.msra.mxu0 %v792_v9 }
  0x1e   : > { %709 = vmatprep.subr.bf16.mxu0 %v793_v10 }
  0x1f   : > { %758 = vmatpush3.bf16.msra.mxu1 %v802_v43 }
  0x20   : > { %759 = vmatprep.subr.bf16.mxu1 %v803_v44 }
  0x21   : > { %710 = vmatpush3.bf16.msra.mxu0 %v794_v14 }
  0x22   : > { %711 = vmatprep.subr.bf16.mxu0 %v795_v15 }
  0x23   : > { %760 = vmatpush3.bf16.msra.mxu1 %v803_v44 }
  0x24   : > { %761 = vmatprep.subr.bf16.mxu1 %v804_v45 }
  0x25   : > { %712 = vmatpush3.bf16.msra.mxu0 %v796_v16 }
  0x26   : > { %713 = vmatprep.subr.bf16.mxu0 %v797_v17 }
  0x27   : > { %762 = vmatpush3.bf16.msra.mxu1 %v804_v45 }
  0x28   : > { %763 = vmatprep.subr.bf16.mxu1 %v805_v46 }
  0x29   : > { %714 = vmatpush3.bf16.msra.mxu0 %v798_v21  ;;  %v687_v21 = vld [vmem:[%s966_s4] ss:$0 sm:$0xff] }
  0x2b   : > { %764 = vmatpush3.bf16.msra.mxu1 %v805_v46 }
  0x2c   : > { %424 = vmatmul.mubr.bf16.vlgmr.msra.gmra.mxu0 %v248_v26  ;;  %765 = vmatprep.subr.bf16.mxu1 %v806_v47 }
  0x2d   : > { %431 = vmatprep.mubr.bf16.mxu0 %v251_v27 }
  0x2f   : > { %766 = vmatpush3.bf16.msra.mxu1 %v806_v47 }
  0x34   : > { %432 = vmatmul.mubr.bf16.gmra.mxu0 %v250_v32 }
  0x35   : > { %439 = vmatprep.mubr.bf16.mxu0 %v253_v33 }
  0x3c   : > { %440 = vmatmul.mubr.bf16.gmra.mxu0 %v252_v38 }
  0x3d   : > { %447 = vmatprep.mubr.bf16.mxu0 %v255_v39 }
  0x44   : > { %448 = vmatmul.mubr.bf16.gmra.mxu0 %v254_v42 }
  0xec   : > { %v715_v48 = vpop.f32.mrf.mxu0 }
  0xee   : > { %v716_v49 = vpop.f32.mrf.mxu0 }
  0xef   : > { %v717_v51 = vadd.f32 %v716_v49, %v715_v48 }
  0xf0   : > { %v718_v50 = vpop.f32.mrf.mxu0 }
  0xf1   : > { %v426_v56 = vadd.f32 %v717_v51, %v670_v53 }
  0xf2   : > { %v719_v52 = vpop.f32.mrf.mxu0 }
  0xf3   : > { %v720_v54 = vadd.f32 %v719_v52, %v718_v50 }
  0xf4   : > { %v721_v55 = vpop.f32.mrf.mxu0 }
  0xf5   : > { %v429_v57 = vadd.f32 %v720_v54, %v670_v53 }
  0xf6   : > { %v722_v58 = vpop.f32.mrf.mxu0 }
  0xf7   : > { %v456_v59 = vpack.c.bf16 %v429_v57, %v426_v56  ;;  %v723_v61 = vadd.f32 %v722_v58, %v721_v55 }
  0xf8   : > { %v724_v60 = vpop.f32.mrf.mxu0 }
  0xf9   : > { %767 = vmatprep.mubr.bf16.mxu1 %v456_v59  ;;  %v434_v1 = vadd.f32 %v723_v61, %v670_v53 }
  0xfa   : > { %v725_v62 = vpop.f32.mrf.mxu0 }
  0xfb   : > { %v726_v63 = vadd.f32 %v725_v62, %v724_v60 }
  0xfc   : > { %v727_v0 = vpop.f32.mrf.mxu0 }
  0xfd   : > { %v437_v2 = vadd.f32 %v726_v63, %v670_v53 }
  0xfe   : > { %v728_v3 = vpop.f32.mrf.mxu0 }
  0xff   : > { %v457_v4 = vpack.c.bf16 %v437_v2, %v434_v1  ;;  %v729_v6 = vadd.f32 %v728_v3, %v727_v0 }
 0x100   : > { %v730_v5 = vpop.f32.mrf.mxu0 }
 0x101   : > { %768 = vmatmul.mubr.bf16.vlgmr.msra.gmra.mxu1 %v457_v4  ;;  %v442_v10 = vadd.f32 %v729_v6, %v670_v53 }
 0x102   : > { %v731_v7 = vpop.f32.mrf.mxu0 }
 0x103   : > { %v732_v8 = vadd.f32 %v731_v7, %v730_v5 }
 0x104   : > { %v733_v9 = vpop.f32.mrf.mxu0 }
 0x105   : > { %v445_v11 = vadd.f32 %v732_v8, %v670_v53 }
 0x106   : > { %v734_v12 = vpop.f32.mrf.mxu0 }
 0x107   : > { %v458_v13 = vpack.c.bf16 %v445_v11, %v442_v10  ;;  %v735_v15 = vadd.f32 %v734_v12, %v733_v9 }
 0x108   : > { %v736_v14 = vpop.f32.mrf.mxu0 }
 0x109   : > { %771 = vmatprep.mubr.bf16.mxu1 %v458_v13  ;;  %v450_v18 = vadd.f32 %v735_v15, %v670_v53 }
 0x10a   : > { %v737_v16 = vpop.f32.mrf.mxu0 }
 0x10b   : > { %v738_v17 = vadd.f32 %v737_v16, %v736_v14 }
 0x10d   : > { %v453_v19 = vadd.f32 %v738_v17, %v670_v53 }
 0x10f   : > { %v459_v20 = vpack.c.bf16 %v453_v19, %v450_v18 }
 0x111   : > { %772 = vmatmul.mubr.bf16.gmra.mxu1 %v459_v20 }
 0x1c1   : > { %v769_v22 = vpop.f32.mrf.mxu1 }
 0x1c2   : > { %v574_v23 = vadd.f32 %v769_v22, %v687_v21 }
 0x1c3   : > { %v565_v24 = vpop.f32.mrf.mxu1 }
 0x1c4   : > { %598 = vst [vmem:[%s229_s9 + $0x10] sm:$0xff] %v574_v23  ;;  %v566_v25 = vadd.f32 %v687_v21, %v565_v24 }
 0x1c5   : > { %v770_v26 = vpop.f32.mrf.mxu1 }
 0x1c6   : > { %596 = vst [vmem:[%s229_s9] sm:$0xff] %v566_v25  ;;  %v577_v27 = vadd.f32 %v770_v26, %v687_v21 }
 0x1c7   : > { %v568_v28 = vpop.f32.mrf.mxu1 }
 0x1c8   : > { %599 = vst [vmem:[%s229_s9 + $0x18] sm:$0xff] %v577_v27  ;;  %v569_v29 = vadd.f32 %v687_v21, %v568_v28 }
 0x1ca   : > { %597 = vst [vmem:[%s229_s9 + $0x8] sm:$0xff] %v569_v29 }
 0x1d1   : > { %v773_v30 = vpop.f32.mrf.mxu1 }
 0x1d2   : > { %v590_v31 = vadd.f32 %v773_v30, %v687_v21 }
 0x1d3   : > { %v581_v32 = vpop.f32.mrf.mxu1 }
 0x1d4   : > { %602 = vst [vmem:[%s229_s9 + $0x30] sm:$0xff] %v590_v31  ;;  %v582_v33 = vadd.f32 %v687_v21, %v581_v32 }
 0x1d5   : > { %v774_v34 = vpop.f32.mrf.mxu1 }
 0x1d6   : > { %600 = vst [vmem:[%s229_s9 + $0x20] sm:$0xff] %v582_v33  ;;  %v593_v35 = vadd.f32 %v774_v34, %v687_v21 }
 0x1d7   : > { %v584_v36 = vpop.f32.mrf.mxu1 }
 0x1d8   : > { %603 = vst [vmem:[%s229_s9 + $0x38] sm:$0xff] %v593_v35  ;;  %v585_v37 = vadd.f32 %v687_v21, %v584_v36 }
 0x1da   : > { %601 = vst [vmem:[%s229_s9 + $0x28] sm:$0xff] %v585_v37 }
 0x1db PF: > { %s15_s18 = sadd.s32 1, %s813_s18  }
 0x1dc   : > { %p12_p4 = scmp.ge.s32.totalorder %s15_s18, 4  }
 0x1de   :  { %14 = sbr.rel (!%p12_p4) target bundleno = 1 (0x1), region = 70 }

// kernel: lstm_extractor_w2v.4
= control target key start
LH: loop header
LB: loop body
LE: loop exit
PB: predicated region body
PF: predicated region fallthrough
CT: control target
= control target key end

     0   :  { %s2199_s9 = smov 0   ;;  %s2201_s10 = smov 0   ;;  %s2866_s0 = inlined_call_operand.vmem [shape: f32[16,8,1024], index: 0, kind: input, shape index: {}]   ;;  %s2867_s1 = inlined_call_operand.vmem [shape: bf16[2,128,512], index: 1, kind: input, shape index: {}]   ;;  %s2868_s2 = inlined_call_operand.vmem [shape: f32[16,8,256], index: 2, kind: output, shape index: {}]  }
   0x1   :  { %s2203_s11 = smov 0   ;;  %s2205_s12 = smov 0  }
   0x2   :  { %s2207_s13 = smov 0   ;;  %s2209_s14 = smov 0  }
   0x3   :  { %s2211_s15 = smov 0  }
   0x4 LB: > { %s21_s16 = sadd.s32 1, %s2172_s13  ;;  %s24_s17 = sadd.s32 1, %s2176_s14  ;;  %s2180_s15 = sphi %s2211_s15, %s12_s15   ;;  %s2176_s14 = sphi %s2209_s14, %s2875_s14   ;;  %s2172_s13 = sphi %s2207_s13, %s2874_s13   ;;  %s2168_s12 = sphi %s2205_s12, %s2873_s12   ;;  %s2164_s11 = sphi %s2203_s11, %s2872_s11   ;;  %s2160_s10 = sphi %s2201_s10, %s2871_s10   ;;  %s2156_s9 = sphi %s2199_s9, %s2870_s9  }
   0x5   : > { %p22_p0 = scmp.ge.s32.totalorder %s21_s16, 2  ;;  %s28_s18 = ssub.s32 1, %s2176_s14 }
   0x6   : > { %s30_s19 = ssub.s32 1, %s2172_s13  ;;  %s1744_s20 = sadd.s32 4294967295, %s2180_s15  }
   0x7   : > { %s2877_s16 = smov (%p22_p0, %s21_s16), 0  ;;  %s2879_s17 = smov (!%p22_p0, %s24_s17), %s2176_s14 }
   0x8   : > { %s29_s21 = smul.u32 %s2172_s13, %s28_s18  ;;  %p26_p1 = scmp.ge.s32.totalorder %s2879_s17, 2 }
   0x9   : > { %s31_s22 = smul.u32 %s2176_s14, %s30_s19  ;;  %s35_s23 = ssub.s32 1, %s2877_s16 }
   0xa   : > { %p50_p2 = scmp.ne.s32.totalorder %s2160_s10, %s2156_s9  ;;  %s2881_s17 = smov (%p26_p1, %s2879_s17), 0 }
   0xb   : > { %s32_s24 = sadd.s32 %s31_s22, %s29_s21  ;;  %p51_p3 = scmp.eq.s32.totalorder %s2180_s15, 0 }
   0xc   : > { %s33_s25 = ssub.s32 1, %s2881_s17  ;;  %s36_s26 = smul.u32 %s35_s23, %s2881_s17 }
   0xd   : > { %s34_s27 = smul.u32 %s33_s25, %s2877_s16  ;;  %s39_s28 = ssub.s32 %s2176_s14, %s2881_s17 }
   0xe   : > { %p52_p4 = por %p51_p3, %p50_p2  ;;  %p118_p5 = scmp.eq.s32.totalorder %s1744_s20, 3 }
   0xf   : > { %s37_s29 = sadd.s32 %s36_s26, %s34_s27  ;;  %s43_s5 = sadd.s32 1, %s2160_s10 }
  0x10   : > { %s38_s30 = ssub.s32 %s32_s24, %s37_s29  ;;  %p2255_p6 = por %p118_p5, %p50_p2 }
  0x11   : > { %s40_s4 = sor.u32 %s39_s28, %s38_s30  ;;  %p1747_p8 = scmp.ge.s32.totalorder %s2180_s15, 4 }
  0x12   : > { %p41_p7 = scmp.eq.s32.totalorder %s40_s4, 0 }
  0x13   : > { %140 = sbr.rel (%p1747_p8) target bundleno = 47 (0x2f), region = 16 }
  0x14   : > { %s2261_s6 = scalar_select %p41_p7, %s2160_s10, %s43_s5  }
  0x18   : > { %143 = sbr.rel (!%p52_p4) target bundleno = 47 (0x2f), region = 20  ;;  %s145_s7 = sand.u32 (%p52_p4), 1, %s2160_s10  }
  0x19   : > { %s1750_s8 = sshll.u32 (%p52_p4), %s2176_s14, 2  ;;  %s1748_s18 = sshll.u32 (%p52_p4), %s145_s7, 8 }
  0x1a   : > { %s1849_s19 = sshll.u32 (%p52_p4), %s32_s24, 6  ;;  %s2274_s24 = scalar_lea.vmem (%p52_p4), [#allocation4], %s1748_s18 }
  0x1b   : > { %s156_s20 = sadd.s32 (%p52_p4), %s1849_s19, %s1750_s8 }
  0x1c   : > { %s1752_s21 = sshll.u32 (%p52_p4), %s156_s20, 3 }
  0x1d   : > { %s2269_s25 = scalar_lea.vmem %s2866_s0, %s1752_s21 }
  0x1e   : > { %v171_v0 = vld [vmem:[%s2269_s25] sm:$0xff]  ;;  %v173_v1 = vld [vmem:[%s2269_s25 + $0x8] sm:$0xff]  ;;  %v175_v2 = vld [vmem:[%s2269_s25 + $0x10] sm:$0xff] }
  0x1f   : > { %172 = vst [vmem:[%s2274_s24] sm:$0xff] %v171_v0  ;;  %174 = vst [vmem:[%s2274_s24 + $0x8] sm:$0xff] %v173_v1  ;;  %v177_v3 = vld [vmem:[%s2269_s25 + $0x18] sm:$0xff]  ;;  %v179_v4 = vld [vmem:[%s2269_s25 + $0x40] sm:$0xff] }
  0x20   : > { %176 = vst [vmem:[%s2274_s24 + $0x10] sm:$0xff] %v175_v2  ;;  %v181_v5 = vld [vmem:[%s2269_s25 + $0x48] sm:$0xff]  ;;  %178 = vst [vmem:[%s2274_s24 + $0x18] sm:$0xff] %v177_v3  ;;  %v183_v6 = vld [vmem:[%s2269_s25 + $0x50] sm:$0xff] }
  0x21   : > { %180 = vst [vmem:[%s2274_s24 + $0x20] sm:$0xff] %v179_v4  ;;  %182 = vst [vmem:[%s2274_s24 + $0x28] sm:$0xff] %v181_v5  ;;  %v185_v7 = vld [vmem:[%s2269_s25 + $0x58] sm:$0xff]  ;;  %v187_v8 = vld [vmem:[%s2269_s25 + $0x80] sm:$0xff] }
  0x22   : > { %184 = vst [vmem:[%s2274_s24 + $0x30] sm:$0xff] %v183_v6  ;;  %186 = vst [vmem:[%s2274_s24 + $0x38] sm:$0xff] %v185_v7  ;;  %v189_v9 = vld [vmem:[%s2269_s25 + $0x88] sm:$0xff]  ;;  %v191_v10 = vld [vmem:[%s2269_s25 + $0x90] sm:$0xff] }
  0x23   : > { %188 = vst [vmem:[%s2274_s24 + $0x40] sm:$0xff] %v187_v8  ;;  %v193_v11 = vld [vmem:[%s2269_s25 + $0x98] sm:$0xff]  ;;  %190 = vst [vmem:[%s2274_s24 + $0x48] sm:$0xff] %v189_v9  ;;  %v195_v12 = vld [vmem:[%s2269_s25 + $0xc0] sm:$0xff] }
  0x24   : > { %192 = vst [vmem:[%s2274_s24 + $0x50] sm:$0xff] %v191_v10  ;;  %194 = vst [vmem:[%s2274_s24 + $0x58] sm:$0xff] %v193_v11  ;;  %v197_v13 = vld [vmem:[%s2269_s25 + $0xc8] sm:$0xff]  ;;  %v199_v14 = vld [vmem:[%s2269_s25 + $0xd0] sm:$0xff] }
  0x25   : > { %196 = vst [vmem:[%s2274_s24 + $0x60] sm:$0xff] %v195_v12  ;;  %198 = vst [vmem:[%s2274_s24 + $0x68] sm:$0xff] %v197_v13  ;;  %v201_v15 = vld [vmem:[%s2269_s25 + $0xd8] sm:$0xff]  ;;  %v203_v16 = vld [vmem:[%s2269_s25 + $0x100] sm:$0xff] }
  0x26   : > { %200 = vst [vmem:[%s2274_s24 + $0x70] sm:$0xff] %v199_v14  ;;  %v205_v17 = vld [vmem:[%s2269_s25 + $0x108] sm:$0xff]  ;;  %202 = vst [vmem:[%s2274_s24 + $0x78] sm:$0xff] %v201_v15  ;;  %v207_v18 = vld [vmem:[%s2269_s25 + $0x110] sm:$0xff] }
  0x27   : > { %204 = vst [vmem:[%s2274_s24 + $0x80] sm:$0xff] %v203_v16  ;;  %206 = vst [vmem:[%s2274_s24 + $0x88] sm:$0xff] %v205_v17  ;;  %v209_v19 = vld [vmem:[%s2269_s25 + $0x118] sm:$0xff]  ;;  %v211_v20 = vld [vmem:[%s2269_s25 + $0x140] sm:$0xff] }
  0x28   : > { %208 = vst [vmem:[%s2274_s24 + $0x90] sm:$0xff] %v207_v18  ;;  %210 = vst [vmem:[%s2274_s24 + $0x98] sm:$0xff] %v209_v19  ;;  %v213_v21 = vld [vmem:[%s2269_s25 + $0x148] sm:$0xff]  ;;  %v215_v22 = vld [vmem:[%s2269_s25 + $0x150] sm:$0xff] }
  0x29   : > { %212 = vst [vmem:[%s2274_s24 + $0xa0] sm:$0xff] %v211_v20  ;;  %v217_v23 = vld [vmem:[%s2269_s25 + $0x158] sm:$0xff]  ;;  %214 = vst [vmem:[%s2274_s24 + $0xa8] sm:$0xff] %v213_v21  ;;  %v219_v24 = vld [vmem:[%s2269_s25 + $0x180] sm:$0xff] }
  0x2a   : > { %216 = vst [vmem:[%s2274_s24 + $0xb0] sm:$0xff] %v215_v22  ;;  %218 = vst [vmem:[%s2274_s24 + $0xb8] sm:$0xff] %v217_v23  ;;  %v221_v25 = vld [vmem:[%s2269_s25 + $0x188] sm:$0xff]  ;;  %v223_v26 = vld [vmem:[%s2269_s25 + $0x190] sm:$0xff] }
  0x2b   : > { %220 = vst [vmem:[%s2274_s24 + $0xc0] sm:$0xff] %v219_v24  ;;  %222 = vst [vmem:[%s2274_s24 + $0xc8] sm:$0xff] %v221_v25  ;;  %v225_v27 = vld [vmem:[%s2269_s25 + $0x198] sm:$0xff]  ;;  %v227_v28 = vld [vmem:[%s2269_s25 + $0x1c0] sm:$0xff] }
  0x2c   : > { %224 = vst [vmem:[%s2274_s24 + $0xd0] sm:$0xff] %v223_v26  ;;  %v229_v29 = vld [vmem:[%s2269_s25 + $0x1c8] sm:$0xff]  ;;  %226 = vst [vmem:[%s2274_s24 + $0xd8] sm:$0xff] %v225_v27  ;;  %v231_v30 = vld [vmem:[%s2269_s25 + $0x1d0] sm:$0xff] }
  0x2d   : > { %228 = vst [vmem:[%s2274_s24 + $0xe0] sm:$0xff] %v227_v28  ;;  %230 = vst [vmem:[%s2274_s24 + $0xe8] sm:$0xff] %v229_v29  ;;  %v233_v31 = vld [vmem:[%s2269_s25 + $0x1d8] sm:$0xff] }
  0x2e   : > { %232 = vst [vmem:[%s2274_s24 + $0xf0] sm:$0xff] %v231_v30  ;;  %234 = vst [vmem:[%s2274_s24 + $0xf8] sm:$0xff] %v233_v31 }
  0x2f PF: > { %p1753_p9 = scmp.ge.s32.totalorder %s2180_s15, 1  ;;  %p247_p10 = scmp.lt.s32.totalorder %s2180_s15, 5 }
  0x31   : > { %p248_p11 = pnand %p1753_p9, %p247_p10 }
  0x32   : > { %s254_s26 = sand.u32 (!%p248_p11), 1, %s2156_s9   ;;  %p286_p12 = scmp.lt.s32.totalorder (!%p248_p11), %s2168_s12, 1 }
  0x33   : > { %251 = sbr.rel (%p248_p11) target bundleno = 2117 (0x845), region = 47  ;;  %s1754_s27 = sshll.u32 (!%p248_p11), %s254_s26, 8 }
  0x34   : > { %s1755_s28 = sshll.u32 (!%p248_p11), %s254_s26, 6  ;;  %s2347_s8 = scalar_lea.vmem (!%p248_p11), [#allocation4], %s1754_s27 }
  0x35   : > { %s2349_s18 = scalar_lea.vmem (!%p248_p11), [#allocation5], %s1755_s28  ;;  %p1758_p13 = scmp.ne.s32.totalorder (!%p248_p11), %s2164_s11, 0 }
  0x38   : > { %s287_s29 = scalar_select %p286_p12, %s2168_s12, 1 }
  0x39   : > { %301 = sbr.rel (%p1758_p13) target bundleno = 64 (0x40), region = 55 }
  0x3a   : > { %s1850_s30 = sshll.u32 %s287_s29, 8 }
  0x3b   : > { %s2345_s7 = scalar_lea.vmem %s2867_s1, %s1850_s30 }
  0x3e   : > { %v2182_v32 = vmov 0.0  }
  0x3f   : > { %302 = vst [vmem:[#allocation2] sm:$0xff] %v2182_v32  ;;  %303 = vst [vmem:[#allocation3] sm:$0xff] %v2182_v32 }
  0x40 PF: > { %v2353_v33 = vld [vmem:[%s2345_s7 + $0xe4] ss:$16 sps:$4 sm:$0xff]   ;;  %v2356_v34 = vld [vmem:[%s2345_s7 + $0xe0] ss:$16 sps:$4 sm:$0xff]   ;;  %v2183_v35 = vmov 0   ;;  %s1851_s9 = smul.u32 224, %s2168_s12 }
  0x41   : > { %538 = vmatprep.mubr.bf16.mxu0 %v2183_v35  ;;  %579 = vmatprep.mubr.bf16.mxu1 %v2183_v35  ;;  %v2362_v36 = vld [vmem:[%s2345_s7 + $0xc4] ss:$16 sps:$4 sm:$0xff]   ;;  %v2366_v37 = vld [vmem:[%s2345_s7 + $0xc0] ss:$16 sps:$4 sm:$0xff]   ;;  %v2373_v39 = vld [vmem:[%s2345_s7 + $0xec] ss:$16 sps:$4 sm:$0xff]  }
  0x42   : > { %506 = vmatprep.subr.bf16.mxu0 %v2353_v33  ;;  %v2370_v38 = vld [vmem:[%s2345_s7 + $0xa4] ss:$16 sps:$4 sm:$0xff]   ;;  %v2376_v40 = vld [vmem:[%s2345_s7 + $0xe8] ss:$16 sps:$4 sm:$0xff]   ;;  %v2380_v41 = vld [vmem:[%s2345_s7 + $0xa0] ss:$16 sps:$4 sm:$0xff]   ;;  %547 = vmatprep.subr.bf16.mxu1 %v2373_v39  ;;  %s339_s19 = scalar_lea.vmem %s2347_s8, %s1851_s9 [#allocation4] }
  0x43   : > { %507 = vmatpush1.bf16.msra.mxu0 %v2356_v34  ;;  %v2385_v42 = vld [vmem:[%s2345_s7 + $0x84] ss:$16 sps:$4 sm:$0xff]   ;;  %548 = vmatpush1.bf16.msra.mxu1 %v2376_v40  ;;  %v2389_v43 = vld [vmem:[%s2345_s7 + $0xcc] ss:$16 sps:$4 sm:$0xff]   ;;  %v2392_v44 = vld [vmem:[%s2345_s7 + $0xc8] ss:$16 sps:$4 sm:$0xff]  }
  0x44   : > { %508 = vmatprep.subr.bf16.mxu0 %v2362_v36  ;;  %549 = vmatprep.subr.bf16.mxu1 %v2389_v43  ;;  %v2397_v45 = vld [vmem:[%s2345_s7 + $0x80] ss:$16 sps:$4 sm:$0xff]   ;;  %v2400_v46 = vld [vmem:[%s2345_s7 + $0x64] ss:$16 sps:$4 sm:$0xff]   ;;  %v2403_v47 = vld [vmem:[%s2345_s7 + $0xac] ss:$16 sps:$4 sm:$0xff]  }
  0x45   : > { %v2408_v48 = vld [vmem:[%s2345_s7 + $0xa8] ss:$16 sps:$4 sm:$0xff]   ;;  %v2412_v49 = vld [vmem:[%s2345_s7 + $0x8c] ss:$16 sps:$4 sm:$0xff]   ;;  %v2416_v50 = vld [vmem:[%s2345_s7 + $0x60] ss:$16 sps:$4 sm:$0xff]  }
  0x46   : > { %v2420_v51 = vld [vmem:[%s2345_s7 + $0x44] ss:$16 sps:$4 sm:$0xff]   ;;  %v2424_v52 = vld [vmem:[%s2345_s7 + $0x88] ss:$16 sps:$4 sm:$0xff]   ;;  %v2428_v53 = vld [vmem:[%s2345_s7 + $0x6c] ss:$16 sps:$4 sm:$0xff]  }
  0x47   : > { %509 = vmatpush1.bf16.msra.mxu0 %v2366_v37  ;;  %550 = vmatpush1.bf16.msra.mxu1 %v2392_v44  ;;  %v2431_v54 = vld [vmem:[%s2345_s7 + $0x40] ss:$16 sps:$4 sm:$0xff]   ;;  %v2435_v55 = vld [vmem:[%s2345_s7 + $0x24] ss:$16 sps:$4 sm:$0xff]   ;;  %v2440_v56 = vld [vmem:[%s2345_s7 + $0x68] ss:$16 sps:$4 sm:$0xff]  }
  0x48   : > { %510 = vmatprep.subr.bf16.mxu0 %v2370_v38  ;;  %551 = vmatprep.subr.bf16.mxu1 %v2403_v47  ;;  %v2444_v57 = vld [vmem:[%s2345_s7 + $0x4c] ss:$16 sps:$4 sm:$0xff]   ;;  %v2448_v58 = vld [vmem:[%s2345_s7 + $0x20] ss:$16 sps:$4 sm:$0xff]   ;;  %v2452_v59 = vld [vmem:[%s2345_s7 + $0x4] ss:$16 sps:$4 sm:$0xff]  }
  0x49   : > { %v2456_v60 = vld [vmem:[%s2345_s7 + $0x48] ss:$16 sps:$4 sm:$0xff]   ;;  %v2460_v61 = vld [vmem:[%s2345_s7 + $0x2c] ss:$16 sps:$4 sm:$0xff]   ;;  %v2464_v62 = vld [vmem:[%s2345_s7] ss:$16 sps:$4 sm:$0xff]  }
  0x4a   : > { %v344_v63 = vld [vmem:[#allocation2] sm:$0xff]  ;;  %v2469_v0 = vld [vmem:[%s2345_s7 + $0x28] ss:$16 sps:$4 sm:$0xff]   ;;  %v2473_v1 = vld [vmem:[%s2345_s7 + $0xc] ss:$16 sps:$4 sm:$0xff]   ;;  %s1796_s20 = smul.u32 56, %s2168_s12 }
  0x4b   : > { %511 = vmatpush1.bf16.msra.mxu0 %v2380_v41  ;;  %552 = vmatpush1.bf16.msra.mxu1 %v2408_v48  ;;  %v345_v2 = vpack.c.bf16 %v344_v63, %v344_v63  ;;  %v2478_v3 = vld [vmem:[%s2345_s7 + $0x8] ss:$16 sps:$4 sm:$0xff]   ;;  %v340_v4 = vld [vmem:[%s339_s19] sm:$0xff]  ;;  %v342_v19 = vld [vmem:[%s339_s19 + $0x10] sm:$0xff]  ;;  %s623_s22 = smul.u32 6, %s2168_s12  ;;  %s2561_s23 = ssub.s32 1, %s2168_s12 }
  0x4c   : > { %512 = vmatprep.subr.bf16.mxu0 %v2385_v42  ;;  %553 = vmatprep.subr.bf16.mxu1 %v2412_v49  ;;  %v341_v6 = vld [vmem:[%s339_s19 + $0x8] sm:$0xff]  ;;  %v343_v16 = vld [vmem:[%s339_s19 + $0x18] sm:$0xff]  ;;  %s620_s21 = scalar_lea.vmem %s2349_s18, %s1796_s20 [#allocation5]  ;;  %s751_s29 = smul.u32 5, %s2168_s12 }
  0x4d   : > { %v611_v30 = vld [vmem:[#allocation3] sm:$0xff]  ;;  %s2564_s25 = sadd.s32 %s623_s22, %s2561_s23  ;;  %s1803_s30 = sshll.u32 %s2561_s23, 1 }
  0x4e   : > { %s1852_s24 = sshll.u32 %s2564_s25, 5  ;;  %s1802_s27 = sshll.u32 %s2564_s25, 3 }
  0x4f   : > { %513 = vmatpush1.bf16.msra.mxu0 %v2397_v45  ;;  %554 = vmatpush1.bf16.msra.mxu1 %v2424_v52  ;;  %s627_s26 = scalar_lea.vmem %s2347_s8, %s1852_s24 [#allocation4]  ;;  %s748_s28 = scalar_lea.vmem %s2349_s18, %s1802_s27 [#allocation5] }
  0x50   : > { %514 = vmatprep.subr.bf16.mxu0 %v2400_v46  ;;  %555 = vmatprep.subr.bf16.mxu1 %v2428_v53  ;;  %s2610_s4 = sadd.s32 %s1803_s30, %s751_s29  ;;  %s1810_s22 = sshll.u32 %s2168_s12, 2 }
  0x51   : > { %s1853_s5 = sshll.u32 %s2610_s4, 5  ;;  %s1809_s19 = sshll.u32 %s2610_s4, 3 }
  0x52   : > { %s755_s9 = scalar_lea.vmem %s2347_s8, %s1853_s5 [#allocation4]  ;;  %s876_s20 = scalar_lea.vmem %s2349_s18, %s1809_s19 [#allocation5] }
  0x53   : > { %515 = vmatpush1.bf16.msra.mxu0 %v2416_v50  ;;  %556 = vmatpush1.bf16.msra.mxu1 %v2440_v56  ;;  %s1007_s29 = smul.u32 3, %s2168_s12  ;;  %s1817_s30 = sshll.u32 %s2561_s23, 2 }
  0x54   : > { %516 = vmatprep.subr.bf16.mxu0 %v2420_v51  ;;  %557 = vmatprep.subr.bf16.mxu1 %v2444_v57 }
  0x55   : > { %s2702_s4 = sadd.s32 %s1817_s30, %s1007_s29  ;;  %s1262_s29 = smul.u32 6, %s2561_s23 }
  0x56   : > { %s1855_s5 = sshll.u32 %s2702_s4, 5  ;;  %s1823_s19 = sshll.u32 %s2702_s4, 3 }
  0x57   : > { %517 = vmatpush1.bf16.msra.mxu0 %v2431_v54  ;;  %558 = vmatpush1.bf16.msra.mxu1 %v2456_v60  ;;  %s2816_s30 = sadd.s32 %s2168_s12, %s1262_s29 }
  0x58   : > { %518 = vmatprep.subr.bf16.mxu0 %v2435_v55  ;;  %559 = vmatprep.subr.bf16.mxu1 %v2460_v61  ;;  %s1857_s4 = sshll.u32 %s2816_s30, 5 }
  0x5b   : > { %519 = vmatpush1.bf16.msra.mxu0 %v2448_v58  ;;  %560 = vmatpush1.bf16.msra.mxu1 %v2469_v0 }
  0x5c   : > { %520 = vmatprep.subr.bf16.mxu0 %v2452_v59  ;;  %561 = vmatprep.subr.bf16.mxu1 %v2473_v1 }
  0x5f   : > { %521 = vmatpush1.bf16.msra.mxu0 %v2464_v62  ;;  %562 = vmatpush1.bf16.msra.mxu1 %v2478_v3 }
  0x60   : > { %634 = vmatprep.subr.bf16.mxu0 %v2353_v33  ;;  %675 = vmatprep.subr.bf16.mxu1 %v2373_v39 }
  0x62   : > { %539 = vmatmul.mubr.bf16.vlgmr.msra.gmra.mxu0 %v345_v2  ;;  %580 = vmatmul.mubr.bf16.vlgmr.msra.gmra.mxu1 %v345_v2 }
  0x63   : > { %635 = vmatpush1.bf16.msra.mxu0 %v2356_v34  ;;  %666 = vmatprep.mubr.bf16.mxu0 %v2183_v35 }
  0x64   : > { %636 = vmatprep.subr.bf16.mxu0 %v2362_v36  ;;  %676 = vmatpush1.bf16.msra.mxu1 %v2376_v40 }
  0x65   : > { %677 = vmatprep.subr.bf16.mxu1 %v2389_v43  ;;  %707 = vmatprep.mubr.bf16.mxu1 %v2183_v35 }
  0x67   : > { %637 = vmatpush1.bf16.msra.mxu0 %v2366_v37 }
  0x68   : > { %638 = vmatprep.subr.bf16.mxu0 %v2370_v38  ;;  %678 = vmatpush1.bf16.msra.mxu1 %v2392_v44 }
  0x69   : > { %679 = vmatprep.subr.bf16.mxu1 %v2403_v47 }
  0x6b   : > { %639 = vmatpush1.bf16.msra.mxu0 %v2380_v41 }
  0x6c   : > { %640 = vmatprep.subr.bf16.mxu0 %v2385_v42  ;;  %680 = vmatpush1.bf16.msra.mxu1 %v2408_v48 }
  0x6d   : > { %681 = vmatprep.subr.bf16.mxu1 %v2412_v49 }
  0x6f   : > { %641 = vmatpush1.bf16.msra.mxu0 %v2397_v45 }
  0x70   : > { %642 = vmatprep.subr.bf16.mxu0 %v2400_v46  ;;  %682 = vmatpush1.bf16.msra.mxu1 %v2424_v52 }
  0x71   : > { %683 = vmatprep.subr.bf16.mxu1 %v2428_v53 }
  0x73   : > { %643 = vmatpush1.bf16.msra.mxu0 %v2416_v50 }
  0x74   : > { %644 = vmatprep.subr.bf16.mxu0 %v2420_v51  ;;  %684 = vmatpush1.bf16.msra.mxu1 %v2440_v56 }
  0x75   : > { %685 = vmatprep.subr.bf16.mxu1 %v2444_v57 }
  0x77   : > { %645 = vmatpush1.bf16.msra.mxu0 %v2431_v54 }
  0x78   : > { %646 = vmatprep.subr.bf16.mxu0 %v2435_v55  ;;  %686 = vmatpush1.bf16.msra.mxu1 %v2456_v60 }
  0x79   : > { %687 = vmatprep.subr.bf16.mxu1 %v2460_v61 }
  0x7b   : > { %647 = vmatpush1.bf16.msra.mxu0 %v2448_v58 }
  0x7c   : > { %648 = vmatprep.subr.bf16.mxu0 %v2452_v59  ;;  %688 = vmatpush1.bf16.msra.mxu1 %v2469_v0 }
  0x7d   : > { %689 = vmatprep.subr.bf16.mxu1 %v2473_v1 }
  0x7f   : > { %649 = vmatpush1.bf16.msra.mxu0 %v2464_v62 }
  0x80   : > { %762 = vmatprep.subr.bf16.mxu0 %v2353_v33  ;;  %690 = vmatpush1.bf16.msra.mxu1 %v2478_v3 }
  0x81   : > { %803 = vmatprep.subr.bf16.mxu1 %v2373_v39 }
 0x122   : > { %v540_v5 = vpop.f32.mrf.mxu0  ;;  %v581_v13 = vpop.f32.mrf.mxu1 }
 0x123   : > { %v588_v7 = vadd.f32 %v540_v5, %v340_v4  ;;  %v590_v21 = vadd.f32 %v581_v13, %v342_v19 }
 0x124   : > { %v542_v8 = vpop.f32.mrf.mxu0  ;;  %v583_v15 = vpop.f32.mrf.mxu1 }
 0x125   : > { %v1793_v9 = vmul.f32 -1.442695, %v588_v7  ;;  %v589_v10 = vadd.f32 %v542_v8, %v341_v6  ;;  %v591_v20 = vadd.f32 %v583_v15, %v343_v16 }
 0x126   : > { %v544_v11 = vpop.f32.mrf.mxu0  ;;  %v585_v17 = vpop.f32.mrf.mxu1 }
 0x127   : > { %1966 = vpow2.f32 %v1793_v9  ;;  %v1794_v12 = vmul.f32 -1.442695, %v589_v10  ;;  %v1795_v22 = vmul.f32 -1.442695, %v591_v20  ;;  %v628_v9 = vld [vmem:[%s627_s26] sm:$0xff] }
 0x128   : > { %v545_v14 = vpop.f32.mrf.mxu0  ;;  %v586_v18 = vpop.f32.mrf.mxu1 }
 0x129   : > { %1968 = vpow2.f32 %v1794_v12  ;;  %v629_v12 = vld [vmem:[%s627_s26 + $0x8] sm:$0xff] }
 0x12a   : > { %1970 = vtanh.f32 %v590_v21 }
 0x12b   : > { %1972 = vpow2.f32 %v1795_v22 }
 0x134   : > { %v1967_v23 = vpop.eup %1966 }
 0x135   : > { %v595_v24 = vadd.f32 1.0, %v1967_v23  ;;  %v631_v23 = vld [vmem:[%s627_s26 + $0x18] sm:$0xff] }
 0x136   : > { %v1969_v25 = vpop.eup %1968 }
 0x137   : > { %1974 = vrcp.f32 %v595_v24  ;;  %v601_v26 = vadd.f32 1.0, %v1969_v25  ;;  %v1971_v27 = vpop.eup %1970  ;;  %v630_v25 = vld [vmem:[%s627_s26 + $0x10] sm:$0xff] }
 0x138   : > { %v1973_v28 = vpop.eup %1972 }
 0x139   : > { %1976 = vrcp.f32 %v601_v26  ;;  %v608_v32 = vadd.f32 1.0, %v1973_v28 }
 0x13b   : > { %1978 = vrcp.f32 %v608_v32 }
 0x144   : > { %v1975_v29 = vpop.eup %1974 }
 0x145   : > { %v613_v2 = vmul.f32 %v1975_v29, %v1971_v27 }
 0x146   : > { %v1977_v31 = vpop.eup %1976 }
 0x147   : > { %v612_v63 = vmul.f32 %v1977_v31, %v611_v30 }
 0x148   : > { %v1979_v5 = vpop.eup %1978 }
 0x149   : > { %v2520_v4 = vadd.f32 %v613_v2, %v612_v63 }
 0x14b   : > { %1980 = vtanh.f32 %v2520_v4 }
 0x158   : > { %v1981_v6 = vpop.eup %1980 }
 0x159   : > { %v616_v7 = vmul.f32 %v1981_v6, %v1979_v5 }
 0x15b   : > { %621 = vst [vmem:[%s620_s21] sm:$0xff] %v616_v7  ;;  %v633_v8 = vpack.c.bf16 %v616_v7, %v616_v7  ;;  %s878_s21 = smul.u32 3, %s2561_s23 }
 0x15d   : > { %667 = vmatmul.mubr.bf16.vlgmr.msra.gmra.mxu0 %v633_v8  ;;  %708 = vmatmul.mubr.bf16.vlgmr.msra.gmra.mxu1 %v633_v8  ;;  %s2656_s25 = sadd.s32 %s1810_s22, %s878_s21  ;;  %s1134_s21 = smul.u32 5, %s2561_s23 }
 0x15e   : > { %763 = vmatpush1.bf16.msra.mxu0 %v2356_v34  ;;  %804 = vmatpush1.bf16.msra.mxu1 %v2376_v40  ;;  %s1854_s24 = sshll.u32 %s2656_s25, 5  ;;  %s1816_s27 = sshll.u32 %s2656_s25, 3 }
 0x15f   : > { %764 = vmatprep.subr.bf16.mxu0 %v2362_v36  ;;  %805 = vmatprep.subr.bf16.mxu1 %v2389_v43  ;;  %s883_s26 = scalar_lea.vmem %s2347_s8, %s1854_s24 [#allocation4]  ;;  %s1824_s22 = sshll.u32 %s2168_s12, 1 }
 0x160   : > { %794 = vmatprep.mubr.bf16.mxu0 %v2183_v35  ;;  %835 = vmatprep.mubr.bf16.mxu1 %v2183_v35  ;;  %s2772_s25 = sadd.s32 %s1824_s22, %s1134_s21  ;;  %s1523_s22 = smul.u32 (%p2255_p6), %s2164_s11, %s2561_s23 }
 0x161   : > { %s1856_s24 = sshll.u32 %s2772_s25, 5 }
 0x162   : > { %765 = vmatpush1.bf16.msra.mxu0 %v2366_v37  ;;  %806 = vmatpush1.bf16.msra.mxu1 %v2392_v44 }
 0x163   : > { %766 = vmatprep.subr.bf16.mxu0 %v2370_v38  ;;  %807 = vmatprep.subr.bf16.mxu1 %v2403_v47 }
 0x166   : > { %767 = vmatpush1.bf16.msra.mxu0 %v2380_v41  ;;  %808 = vmatpush1.bf16.msra.mxu1 %v2408_v48 }
 0x167   : > { %768 = vmatprep.subr.bf16.mxu0 %v2385_v42  ;;  %809 = vmatprep.subr.bf16.mxu1 %v2412_v49 }
 0x16a   : > { %769 = vmatpush1.bf16.msra.mxu0 %v2397_v45  ;;  %810 = vmatpush1.bf16.msra.mxu1 %v2424_v52 }
 0x16b   : > { %770 = vmatprep.subr.bf16.mxu0 %v2400_v46  ;;  %811 = vmatprep.subr.bf16.mxu1 %v2428_v53 }
 0x16e   : > { %771 = vmatpush1.bf16.msra.mxu0 %v2416_v50  ;;  %812 = vmatpush1.bf16.msra.mxu1 %v2440_v56 }
 0x16f   : > { %772 = vmatprep.subr.bf16.mxu0 %v2420_v51  ;;  %813 = vmatprep.subr.bf16.mxu1 %v2444_v57 }
 0x172   : > { %773 = vmatpush1.bf16.msra.mxu0 %v2431_v54  ;;  %814 = vmatpush1.bf16.msra.mxu1 %v2456_v60 }
 0x173   : > { %774 = vmatprep.subr.bf16.mxu0 %v2435_v55  ;;  %815 = vmatprep.subr.bf16.mxu1 %v2460_v61 }
 0x176   : > { %775 = vmatpush1.bf16.msra.mxu0 %v2448_v58  ;;  %816 = vmatpush1.bf16.msra.mxu1 %v2469_v0 }
 0x177   : > { %776 = vmatprep.subr.bf16.mxu0 %v2452_v59  ;;  %817 = vmatprep.subr.bf16.mxu1 %v2473_v1 }
 0x17a   : > { %777 = vmatpush1.bf16.msra.mxu0 %v2464_v62  ;;  %818 = vmatpush1.bf16.msra.mxu1 %v2478_v3 }
 0x17b   : > { %890 = vmatprep.subr.bf16.mxu0 %v2353_v33  ;;  %931 = vmatprep.subr.bf16.mxu1 %v2373_v39 }
 0x21d   : > { %v668_v10 = vpop.f32.mrf.mxu0  ;;  %v709_v11 = vpop.f32.mrf.mxu1 }
 0x21e   : > { %v716_v13 = vadd.f32 %v668_v10, %v628_v9  ;;  %v718_v28 = vadd.f32 %v709_v11, %v630_v25 }
 0x21f   : > { %v670_v14 = vpop.f32.mrf.mxu0  ;;  %v711_v15 = vpop.f32.mrf.mxu1 }
 0x220   : > { %v1799_v16 = vmul.f32 -1.442695, %v716_v13  ;;  %v717_v17 = vadd.f32 %v670_v14, %v629_v12  ;;  %v719_v24 = vadd.f32 %v711_v15, %v631_v23 }
 0x221   : > { %v672_v18 = vpop.f32.mrf.mxu0  ;;  %v713_v19 = vpop.f32.mrf.mxu1 }
 0x222   : > { %1982 = vpow2.f32 %v1799_v16  ;;  %v1800_v20 = vmul.f32 -1.442695, %v717_v17  ;;  %v1801_v26 = vmul.f32 -1.442695, %v719_v24  ;;  %v757_v16 = vld [vmem:[%s755_s9 + $0x8] sm:$0xff] }
 0x223   : > { %v673_v21 = vpop.f32.mrf.mxu0  ;;  %v714_v22 = vpop.f32.mrf.mxu1 }
 0x224   : > { %1984 = vpow2.f32 %v1800_v20 }
 0x225   : > { %1986 = vpow2.f32 %v1801_v26 }
 0x22f   : > { %v1983_v27 = vpop.eup %1982 }
 0x230   : > { %v723_v29 = vadd.f32 1.0, %v1983_v27  ;;  %v759_v27 = vld [vmem:[%s755_s9 + $0x18] sm:$0xff] }
 0x231   : > { %v1985_v30 = vpop.eup %1984 }
 0x232   : > { %1988 = vrcp.f32 %v723_v29  ;;  %v729_v31 = vadd.f32 1.0, %v1985_v30  ;;  %v1987_v32 = vpop.eup %1986  ;;  %v758_v29 = vld [vmem:[%s755_s9 + $0x10] sm:$0xff] }
 0x233   : > { %1990 = vtanh.f32 %v718_v28  ;;  %v736_v6 = vadd.f32 1.0, %v1987_v32 }
 0x234   : > { %1992 = vrcp.f32 %v729_v31 }
 0x235   : > { %1994 = vrcp.f32 %v736_v6 }
 0x23f   : > { %v1989_v63 = vpop.eup %1988 }
 0x240   : > { %v1991_v2 = vpop.eup %1990 }
 0x241   : > { %v1993_v5 = vpop.eup %1992  ;;  %v741_v7 = vmul.f32 %v1991_v2, %v1989_v63 }
 0x242   : > { %v740_v8 = vmul.f32 %v1993_v5, %v2520_v4  ;;  %v1995_v10 = vpop.eup %1994  ;;  %v756_v4 = vld [vmem:[%s755_s9] sm:$0xff]  ;;  %s1011_s9 = scalar_lea.vmem %s2347_s8, %s1855_s5 [#allocation4]  ;;  %s1266_s5 = scalar_lea.vmem %s2347_s8, %s1857_s4 [#allocation4] }
 0x244   : > { %v2569_v9 = vadd.f32 %v741_v7, %v740_v8 }
 0x246   : > { %1996 = vtanh.f32 %v2569_v9 }
 0x253   : > { %v1997_v11 = vpop.eup %1996 }
 0x254   : > { %v744_v12 = vmul.f32 %v1997_v11, %v1995_v10 }
 0x256   : > { %749 = vst [vmem:[%s748_s28] sm:$0xff] %v744_v12  ;;  %v761_v13 = vpack.c.bf16 %v744_v12, %v744_v12  ;;  %s1004_s28 = scalar_lea.vmem %s2349_s18, %s1816_s27 [#allocation5]  ;;  %s1830_s27 = sshll.u32 %s2772_s25, 3 }
 0x257   : > { %s1524_s25 = ssub.s32 (%p2255_p6), 1, %s2164_s11 }
 0x258   : > { %795 = vmatmul.mubr.bf16.vlgmr.msra.gmra.mxu0 %v761_v13  ;;  %836 = vmatmul.mubr.bf16.vlgmr.msra.gmra.mxu1 %v761_v13 }
 0x259   : > { %891 = vmatpush1.bf16.msra.mxu0 %v2356_v34  ;;  %932 = vmatpush1.bf16.msra.mxu1 %v2376_v40 }
 0x25a   : > { %892 = vmatprep.subr.bf16.mxu0 %v2362_v36  ;;  %933 = vmatprep.subr.bf16.mxu1 %v2389_v43 }
 0x25b   : > { %922 = vmatprep.mubr.bf16.mxu0 %v2183_v35  ;;  %963 = vmatprep.mubr.bf16.mxu1 %v2183_v35 }
 0x25d   : > { %893 = vmatpush1.bf16.msra.mxu0 %v2366_v37  ;;  %934 = vmatpush1.bf16.msra.mxu1 %v2392_v44 }
 0x25e   : > { %894 = vmatprep.subr.bf16.mxu0 %v2370_v38  ;;  %935 = vmatprep.subr.bf16.mxu1 %v2403_v47 }
 0x261   : > { %895 = vmatpush1.bf16.msra.mxu0 %v2380_v41  ;;  %936 = vmatpush1.bf16.msra.mxu1 %v2408_v48 }
 0x262   : > { %896 = vmatprep.subr.bf16.mxu0 %v2385_v42  ;;  %937 = vmatprep.subr.bf16.mxu1 %v2412_v49 }
 0x265   : > { %897 = vmatpush1.bf16.msra.mxu0 %v2397_v45  ;;  %938 = vmatpush1.bf16.msra.mxu1 %v2424_v52 }
 0x266   : > { %898 = vmatprep.subr.bf16.mxu0 %v2400_v46  ;;  %939 = vmatprep.subr.bf16.mxu1 %v2428_v53 }
 0x269   : > { %899 = vmatpush1.bf16.msra.mxu0 %v2416_v50  ;;  %940 = vmatpush1.bf16.msra.mxu1 %v2440_v56 }
 0x26a   : > { %900 = vmatprep.subr.bf16.mxu0 %v2420_v51  ;;  %941 = vmatprep.subr.bf16.mxu1 %v2444_v57 }
 0x26d   : > { %901 = vmatpush1.bf16.msra.mxu0 %v2431_v54  ;;  %942 = vmatpush1.bf16.msra.mxu1 %v2456_v60 }
 0x26e   : > { %902 = vmatprep.subr.bf16.mxu0 %v2435_v55  ;;  %943 = vmatprep.subr.bf16.mxu1 %v2460_v61 }
 0x271   : > { %903 = vmatpush1.bf16.msra.mxu0 %v2448_v58  ;;  %944 = vmatpush1.bf16.msra.mxu1 %v2469_v0 }
 0x272   : > { %904 = vmatprep.subr.bf16.mxu0 %v2452_v59  ;;  %945 = vmatprep.subr.bf16.mxu1 %v2473_v1 }
 0x275   : > { %905 = vmatpush1.bf16.msra.mxu0 %v2464_v62  ;;  %946 = vmatpush1.bf16.msra.mxu1 %v2478_v3 }
 0x276   : > { %1018 = vmatprep.subr.bf16.mxu0 %v2353_v33  ;;  %1059 = vmatprep.subr.bf16.mxu1 %v2373_v39 }
 0x318   : > { %v796_v14 = vpop.f32.mrf.mxu0  ;;  %v837_v15 = vpop.f32.mrf.mxu1 }
 0x319   : > { %v844_v17 = vadd.f32 %v796_v14, %v756_v4  ;;  %v846_v32 = vadd.f32 %v837_v15, %v758_v29 }
 0x31a   : > { %v798_v18 = vpop.f32.mrf.mxu0  ;;  %v839_v19 = vpop.f32.mrf.mxu1 }
 0x31b   : > { %v1806_v20 = vmul.f32 -1.442695, %v844_v17  ;;  %v845_v21 = vadd.f32 %v798_v18, %v757_v16  ;;  %v847_v28 = vadd.f32 %v839_v19, %v759_v27 }
 0x31c   : > { %v800_v22 = vpop.f32.mrf.mxu0  ;;  %v841_v23 = vpop.f32.mrf.mxu1 }
 0x31d   : > { %1998 = vpow2.f32 %v1806_v20  ;;  %v1807_v24 = vmul.f32 -1.442695, %v845_v21  ;;  %v1808_v30 = vmul.f32 -1.442695, %v847_v28  ;;  %v885_v20 = vld [vmem:[%s883_s26 + $0x8] sm:$0xff] }
 0x31e   : > { %v801_v25 = vpop.f32.mrf.mxu0  ;;  %v842_v26 = vpop.f32.mrf.mxu1 }
 0x31f   : > { %2000 = vpow2.f32 %v1807_v24 }
 0x320   : > { %2002 = vpow2.f32 %v1808_v30 }
 0x32a   : > { %v1999_v31 = vpop.eup %1998 }
 0x32b   : > { %v851_v63 = vadd.f32 1.0, %v1999_v31  ;;  %v887_v31 = vld [vmem:[%s883_s26 + $0x18] sm:$0xff] }
 0x32c   : > { %v2001_v2 = vpop.eup %2000 }
 0x32d   : > { %2004 = vrcp.f32 %v851_v63  ;;  %v857_v5 = vadd.f32 1.0, %v2001_v2  ;;  %v2003_v6 = vpop.eup %2002  ;;  %v886_v63 = vld [vmem:[%s883_s26 + $0x10] sm:$0xff] }
 0x32e   : > { %2006 = vtanh.f32 %v846_v32  ;;  %v864_v11 = vadd.f32 1.0, %v2003_v6 }
 0x32f   : > { %2008 = vrcp.f32 %v857_v5 }
 0x330   : > { %2010 = vrcp.f32 %v864_v11 }
 0x33a   : > { %v2005_v7 = vpop.eup %2004 }
 0x33b   : > { %v2007_v8 = vpop.eup %2006 }
 0x33c   : > { %v2009_v10 = vpop.eup %2008  ;;  %v869_v12 = vmul.f32 %v2007_v8, %v2005_v7 }
 0x33d   : > { %v868_v13 = vmul.f32 %v2009_v10, %v2569_v9  ;;  %v2011_v14 = vpop.eup %2010  ;;  %v884_v9 = vld [vmem:[%s883_s26] sm:$0xff]  ;;  %s1139_s26 = scalar_lea.vmem %s2347_s8, %s1856_s24 [#allocation4]  ;;  %s1525_s24 = smul.u32 (%p2255_p6), %s2168_s12, %s1524_s25 }
 0x33f   : > { %v2615_v4 = vadd.f32 %v869_v12, %v868_v13 }
 0x341   : > { %2012 = vtanh.f32 %v2615_v4 }
 0x34e   : > { %v2013_v15 = vpop.eup %2012 }
 0x34f   : > { %v872_v16 = vmul.f32 %v2013_v15, %v2011_v14 }
 0x351   : > { %877 = vst [vmem:[%s876_s20] sm:$0xff] %v872_v16  ;;  %v889_v17 = vpack.c.bf16 %v872_v16, %v872_v16  ;;  %s1132_s20 = scalar_lea.vmem %s2349_s18, %s1823_s19 [#allocation5]  ;;  %s1858_s19 = smul.u32 224, %s2561_s23 }
 0x353   : > { %923 = vmatmul.mubr.bf16.vlgmr.msra.gmra.mxu0 %v889_v17  ;;  %964 = vmatmul.mubr.bf16.vlgmr.msra.gmra.mxu1 %v889_v17 }
 0x354   : > { %1019 = vmatpush1.bf16.msra.mxu0 %v2356_v34  ;;  %1060 = vmatpush1.bf16.msra.mxu1 %v2376_v40 }
 0x355   : > { %1020 = vmatprep.subr.bf16.mxu0 %v2362_v36  ;;  %1061 = vmatprep.subr.bf16.mxu1 %v2389_v43 }
 0x356   : > { %1050 = vmatprep.mubr.bf16.mxu0 %v2183_v35  ;;  %1091 = vmatprep.mubr.bf16.mxu1 %v2183_v35 }
 0x358   : > { %1021 = vmatpush1.bf16.msra.mxu0 %v2366_v37  ;;  %1062 = vmatpush1.bf16.msra.mxu1 %v2392_v44 }
 0x359   : > { %1022 = vmatprep.subr.bf16.mxu0 %v2370_v38  ;;  %1063 = vmatprep.subr.bf16.mxu1 %v2403_v47 }
 0x35c   : > { %1023 = vmatpush1.bf16.msra.mxu0 %v2380_v41  ;;  %1064 = vmatpush1.bf16.msra.mxu1 %v2408_v48 }
 0x35d   : > { %1024 = vmatprep.subr.bf16.mxu0 %v2385_v42  ;;  %1065 = vmatprep.subr.bf16.mxu1 %v2412_v49 }
 0x360   : > { %1025 = vmatpush1.bf16.msra.mxu0 %v2397_v45  ;;  %1066 = vmatpush1.bf16.msra.mxu1 %v2424_v52 }
 0x361   : > { %1026 = vmatprep.subr.bf16.mxu0 %v2400_v46  ;;  %1067 = vmatprep.subr.bf16.mxu1 %v2428_v53 }
 0x364   : > { %1027 = vmatpush1.bf16.msra.mxu0 %v2416_v50  ;;  %1068 = vmatpush1.bf16.msra.mxu1 %v2440_v56 }
 0x365   : > { %1028 = vmatprep.subr.bf16.mxu0 %v2420_v51  ;;  %1069 = vmatprep.subr.bf16.mxu1 %v2444_v57 }
 0x368   : > { %1029 = vmatpush1.bf16.msra.mxu0 %v2431_v54  ;;  %1070 = vmatpush1.bf16.msra.mxu1 %v2456_v60 }
 0x369   : > { %1030 = vmatprep.subr.bf16.mxu0 %v2435_v55  ;;  %1071 = vmatprep.subr.bf16.mxu1 %v2460_v61 }
 0x36c   : > { %1031 = vmatpush1.bf16.msra.mxu0 %v2448_v58  ;;  %1072 = vmatpush1.bf16.msra.mxu1 %v2469_v0 }
 0x36d   : > { %1032 = vmatprep.subr.bf16.mxu0 %v2452_v59  ;;  %1073 = vmatprep.subr.bf16.mxu1 %v2473_v1 }
 0x370   : > { %1033 = vmatpush1.bf16.msra.mxu0 %v2464_v62  ;;  %1074 = vmatpush1.bf16.msra.mxu1 %v2478_v3 }
 0x371   : > { %1146 = vmatprep.subr.bf16.mxu0 %v2353_v33  ;;  %1187 = vmatprep.subr.bf16.mxu1 %v2373_v39 }
 0x413   : > { %v924_v18 = vpop.f32.mrf.mxu0  ;;  %v965_v19 = vpop.f32.mrf.mxu1 }
 0x414   : > { %v972_v21 = vadd.f32 %v924_v18, %v884_v9  ;;  %v974_v6 = vadd.f32 %v965_v19, %v886_v63 }
 0x415   : > { %v926_v22 = vpop.f32.mrf.mxu0  ;;  %v967_v23 = vpop.f32.mrf.mxu1 }
 0x416   : > { %v1813_v24 = vmul.f32 -1.442695, %v972_v21  ;;  %v973_v25 = vadd.f32 %v926_v22, %v885_v20  ;;  %v975_v32 = vadd.f32 %v967_v23, %v887_v31 }
 0x417   : > { %v928_v26 = vpop.f32.mrf.mxu0  ;;  %v969_v27 = vpop.f32.mrf.mxu1 }
 0x418   : > { %2014 = vpow2.f32 %v1813_v24  ;;  %v1814_v28 = vmul.f32 -1.442695, %v973_v25  ;;  %v1815_v2 = vmul.f32 -1.442695, %v975_v32  ;;  %v1015_v25 = vld [vmem:[%s1011_s9 + $0x18] sm:$0xff]  ;;  %v1014_v27 = vld [vmem:[%s1011_s9 + $0x10] sm:$0xff] }
 0x419   : > { %v929_v29 = vpop.f32.mrf.mxu0  ;;  %v970_v30 = vpop.f32.mrf.mxu1 }
 0x41a   : > { %2016 = vpow2.f32 %v1814_v28 }
 0x41b   : > { %2018 = vpow2.f32 %v1815_v2 }
 0x425   : > { %v2015_v5 = vpop.eup %2014 }
 0x426   : > { %v979_v7 = vadd.f32 1.0, %v2015_v5 }
 0x427   : > { %v2017_v8 = vpop.eup %2016 }
 0x428   : > { %2020 = vrcp.f32 %v979_v7  ;;  %v985_v10 = vadd.f32 1.0, %v2017_v8  ;;  %v2019_v11 = vpop.eup %2018 }
 0x429   : > { %2022 = vtanh.f32 %v974_v6  ;;  %v992_v15 = vadd.f32 1.0, %v2019_v11 }
 0x42a   : > { %2024 = vrcp.f32 %v985_v10 }
 0x42b   : > { %2026 = vrcp.f32 %v992_v15 }
 0x435   : > { %v2021_v12 = vpop.eup %2020 }
 0x436   : > { %v2023_v13 = vpop.eup %2022 }
 0x437   : > { %v2025_v14 = vpop.eup %2024  ;;  %v997_v16 = vmul.f32 %v2023_v13, %v2021_v12 }
 0x438   : > { %v996_v17 = vmul.f32 %v2025_v14, %v2615_v4  ;;  %v2027_v18 = vpop.eup %2026 }
 0x43a   : > { %v2661_v9 = vadd.f32 %v997_v16, %v996_v17  ;;  %v2713_v17 = vld [vmem:[%s2345_s7 + $0xe0] ss:$16 sps:$4 sm:$0xff]  }
 0x43c   : > { %2028 = vtanh.f32 %v2661_v9 }
 0x449   : > { %v2029_v19 = vpop.eup %2028 }
 0x44a   : > { %v1000_v20 = vmul.f32 %v2029_v19, %v2027_v18  ;;  %v2721_v18 = vld [vmem:[%s2345_s7 + $0xc4] ss:$16 sps:$4 sm:$0xff]   ;;  %v2728_v19 = vld [vmem:[%s2345_s7 + $0xc0] ss:$16 sps:$4 sm:$0xff]  }
 0x44c   : > { %1005 = vst [vmem:[%s1004_s28] sm:$0xff] %v1000_v20  ;;  %v1017_v21 = vpack.c.bf16 %v1000_v20, %v1000_v20  ;;  %v2733_v20 = vld [vmem:[%s2345_s7 + $0xa4] ss:$16 sps:$4 sm:$0xff]   ;;  %s1260_s28 = scalar_lea.vmem %s2349_s18, %s1830_s27 [#allocation5] }
 0x44e   : > { %1051 = vmatmul.mubr.bf16.vlgmr.msra.gmra.mxu0 %v1017_v21  ;;  %1092 = vmatmul.mubr.bf16.vlgmr.msra.gmra.mxu1 %v1017_v21  ;;  %v2738_v21 = vld [vmem:[%s2345_s7 + $0xa0] ss:$16 sps:$4 sm:$0xff]  }
 0x44f   : > { %1147 = vmatpush1.bf16.msra.mxu0 %v2356_v34  ;;  %1188 = vmatpush1.bf16.msra.mxu1 %v2376_v40  ;;  %v1012_v34 = vld [vmem:[%s1011_s9] sm:$0xff] }
 0x450   : > { %1148 = vmatprep.subr.bf16.mxu0 %v2362_v36  ;;  %1189 = vmatprep.subr.bf16.mxu1 %v2389_v43 }
 0x451   : > { %1178 = vmatprep.mubr.bf16.mxu0 %v2183_v35  ;;  %1219 = vmatprep.mubr.bf16.mxu1 %v2183_v35 }
 0x453   : > { %1149 = vmatpush1.bf16.msra.mxu0 %v2366_v37  ;;  %1190 = vmatpush1.bf16.msra.mxu1 %v2392_v44 }
 0x454   : > { %1150 = vmatprep.subr.bf16.mxu0 %v2370_v38  ;;  %1191 = vmatprep.subr.bf16.mxu1 %v2403_v47  ;;  %v1013_v38 = vld [vmem:[%s1011_s9 + $0x8] sm:$0xff] }
 0x457   : > { %1151 = vmatpush1.bf16.msra.mxu0 %v2380_v41  ;;  %1192 = vmatpush1.bf16.msra.mxu1 %v2408_v48 }
 0x458   : > { %1152 = vmatprep.subr.bf16.mxu0 %v2385_v42  ;;  %1193 = vmatprep.subr.bf16.mxu1 %v2412_v49 }
 0x45b   : > { %1153 = vmatpush1.bf16.msra.mxu0 %v2397_v45  ;;  %1194 = vmatpush1.bf16.msra.mxu1 %v2424_v52 }
 0x45c   : > { %1154 = vmatprep.subr.bf16.mxu0 %v2400_v46  ;;  %1195 = vmatprep.subr.bf16.mxu1 %v2428_v53 }
 0x45f   : > { %1155 = vmatpush1.bf16.msra.mxu0 %v2416_v50  ;;  %1196 = vmatpush1.bf16.msra.mxu1 %v2440_v56 }
 0x460   : > { %1156 = vmatprep.subr.bf16.mxu0 %v2420_v51  ;;  %1197 = vmatprep.subr.bf16.mxu1 %v2444_v57 }
 0x463   : > { %1157 = vmatpush1.bf16.msra.mxu0 %v2431_v54  ;;  %1198 = vmatpush1.bf16.msra.mxu1 %v2456_v60 }
 0x464   : > { %1158 = vmatprep.subr.bf16.mxu0 %v2435_v55  ;;  %1199 = vmatprep.subr.bf16.mxu1 %v2460_v61 }
 0x467   : > { %1159 = vmatpush1.bf16.msra.mxu0 %v2448_v58  ;;  %1200 = vmatpush1.bf16.msra.mxu1 %v2469_v0 }
 0x468   : > { %1160 = vmatprep.subr.bf16.mxu0 %v2452_v59  ;;  %1201 = vmatprep.subr.bf16.mxu1 %v2473_v1 }
 0x46b   : > { %1161 = vmatpush1.bf16.msra.mxu0 %v2464_v62  ;;  %1202 = vmatpush1.bf16.msra.mxu1 %v2478_v3 }
 0x46c   : > { %1273 = vmatprep.subr.bf16.mxu0 %v2353_v33  ;;  %1314 = vmatprep.subr.bf16.mxu1 %v2373_v39 }
 0x50e   : > { %v1052_v36 = vpop.f32.mrf.mxu0  ;;  %v1093_v37 = vpop.f32.mrf.mxu1 }
 0x50f   : > { %v1100_v40 = vadd.f32 %v1052_v36, %v1012_v34  ;;  %v1102_v30 = vadd.f32 %v1093_v37, %v1014_v27 }
 0x510   : > { %v1054_v41 = vpop.f32.mrf.mxu0  ;;  %v1095_v42 = vpop.f32.mrf.mxu1 }
 0x511   : > { %v1820_v46 = vmul.f32 -1.442695, %v1100_v40  ;;  %v1101_v4 = vadd.f32 %v1054_v41, %v1013_v38  ;;  %v1103_v26 = vadd.f32 %v1095_v42, %v1015_v25 }
 0x512   : > { %v1056_v22 = vpop.f32.mrf.mxu0  ;;  %v1097_v33 = vpop.f32.mrf.mxu1 }
 0x513   : > { %2030 = vpow2.f32 %v1820_v46  ;;  %v1821_v39 = vmul.f32 -1.442695, %v1101_v4  ;;  %v1822_v28 = vmul.f32 -1.442695, %v1103_v26 }
 0x514   : > { %v1057_v23 = vpop.f32.mrf.mxu0  ;;  %v1098_v24 = vpop.f32.mrf.mxu1 }
 0x515   : > { %2032 = vpow2.f32 %v1821_v39 }
 0x516   : > { %2034 = vpow2.f32 %v1822_v28  ;;  %v2104_v28 = vld [vmem:[%s2345_s7 + $0xcc] ss:$16 sps:$4 sm:$0xff]  }
 0x520   : > { %v2031_v29 = vpop.eup %2030 }
 0x521   : > { %v1107_v31 = vadd.f32 1.0, %v2031_v29  ;;  %v2105_v29 = vld [vmem:[%s2345_s7 + $0xc8] ss:$16 sps:$4 sm:$0xff]  }
 0x522   : > { %v2033_v32 = vpop.eup %2032 }
 0x523   : > { %2036 = vrcp.f32 %v1107_v31  ;;  %v1113_v63 = vadd.f32 1.0, %v2033_v32  ;;  %v2035_v2 = vpop.eup %2034  ;;  %v2107_v31 = vld [vmem:[%s2345_s7 + $0xa8] ss:$16 sps:$4 sm:$0xff]   ;;  %v2109_v32 = vld [vmem:[%s2345_s7 + $0x80] ss:$16 sps:$4 sm:$0xff]  }
 0x524   : > { %2038 = vtanh.f32 %v1102_v30  ;;  %v1120_v8 = vadd.f32 1.0, %v2035_v2  ;;  %v2106_v30 = vld [vmem:[%s2345_s7 + $0xac] ss:$16 sps:$4 sm:$0xff]  }
 0x525   : > { %2040 = vrcp.f32 %v1113_v63  ;;  %v2110_v63 = vld [vmem:[%s2345_s7 + $0x88] ss:$16 sps:$4 sm:$0xff]   ;;  %v2111_v2 = vld [vmem:[%s2345_s7 + $0x6c] ss:$16 sps:$4 sm:$0xff]  }
 0x526   : > { %2042 = vrcp.f32 %v1120_v8  ;;  %v2115_v8 = vld [vmem:[%s2345_s7 + $0x4c] ss:$16 sps:$4 sm:$0xff]  }
 0x530   : > { %v2037_v5 = vpop.eup %2036 }
 0x531   : > { %v2039_v6 = vpop.eup %2038 }
 0x532   : > { %v2041_v7 = vpop.eup %2040  ;;  %v1125_v10 = vmul.f32 %v2039_v6, %v2037_v5  ;;  %v2112_v5 = vld [vmem:[%s2345_s7 + $0x60] ss:$16 sps:$4 sm:$0xff]   ;;  %v2113_v6 = vld [vmem:[%s2345_s7 + $0x68] ss:$16 sps:$4 sm:$0xff]  }
 0x533   : > { %v1124_v11 = vmul.f32 %v2041_v7, %v2661_v9  ;;  %v2043_v13 = vpop.eup %2042  ;;  %v2717_v9 = vld [vmem:[%s2345_s7 + $0xe8] ss:$16 sps:$4 sm:$0xff]   ;;  %v2114_v7 = vld [vmem:[%s2345_s7 + $0x44] ss:$16 sps:$4 sm:$0xff]  }
 0x535   : > { %v2707_v12 = vadd.f32 %v1125_v10, %v1124_v11  ;;  %v2116_v10 = vld [vmem:[%s2345_s7 + $0x40] ss:$16 sps:$4 sm:$0xff]   ;;  %v2117_v11 = vld [vmem:[%s2345_s7 + $0x48] ss:$16 sps:$4 sm:$0xff]  }
 0x537   : > { %2044 = vtanh.f32 %v2707_v12 }
 0x544   : > { %v2045_v14 = vpop.eup %2044 }
 0x545   : > { %v1128_v15 = vmul.f32 %v2045_v14, %v2043_v13  ;;  %v2119_v13 = vld [vmem:[%s2345_s7 + $0x2c] ss:$16 sps:$4 sm:$0xff]   ;;  %v2120_v14 = vld [vmem:[%s2345_s7 + $0x20] ss:$16 sps:$4 sm:$0xff]  }
 0x547   : > { %1133 = vst [vmem:[%s1132_s20] sm:$0xff] %v1128_v15  ;;  %v1145_v16 = vpack.c.bf16 %v1128_v15, %v1128_v15  ;;  %v2121_v15 = vld [vmem:[%s2345_s7 + $0x28] ss:$16 sps:$4 sm:$0xff]   ;;  %s1392_s20 = scalar_lea.vmem %s2347_s8, %s1858_s19 [#allocation4]  ;;  %s1842_s8 = smul.u32 56, %s2561_s23 }
 0x549   : > { %1179 = vmatmul.mubr.bf16.vlgmr.msra.gmra.mxu0 %v1145_v16  ;;  %1220 = vmatmul.mubr.bf16.vlgmr.msra.gmra.mxu1 %v1145_v16  ;;  %v2122_v16 = vld [vmem:[%s2345_s7 + $0x4] ss:$16 sps:$4 sm:$0xff]   ;;  %s1513_s21 = scalar_lea.vmem %s2349_s18, %s1842_s8 [#allocation5] }
 0x54a   : > { %1274 = vmatpush1.bf16.msra.mxu0 %v2713_v17  ;;  %1315 = vmatpush1.bf16.msra.mxu1 %v2717_v9 }
 0x54b   : > { %1275 = vmatprep.subr.bf16.mxu0 %v2721_v18  ;;  %1316 = vmatprep.subr.bf16.mxu1 %v2389_v43  ;;  %v2743_v43 = vld [vmem:[%s2345_s7 + $0x84] ss:$16 sps:$4 sm:$0xff]  }
 0x54c   : > { %1305 = vmatprep.mubr.bf16.mxu0 %v2183_v35  ;;  %1346 = vmatprep.mubr.bf16.mxu1 %v2183_v35 }
 0x54e   : > { %1276 = vmatpush1.bf16.msra.mxu0 %v2728_v19  ;;  %1317 = vmatpush1.bf16.msra.mxu1 %v2392_v44  ;;  %v2750_v44 = vld [vmem:[%s2345_s7 + $0x64] ss:$16 sps:$4 sm:$0xff]  }
 0x54f   : > { %1277 = vmatprep.subr.bf16.mxu0 %v2733_v20  ;;  %1318 = vmatprep.subr.bf16.mxu1 %v2403_v47  ;;  %v2103_v47 = vld [vmem:[%s2345_s7 + $0xec] ss:$16 sps:$4 sm:$0xff]  }
 0x552   : > { %1278 = vmatpush1.bf16.msra.mxu0 %v2738_v21  ;;  %1319 = vmatpush1.bf16.msra.mxu1 %v2408_v48  ;;  %v1140_v48 = vld [vmem:[%s1139_s26] sm:$0xff] }
 0x553   : > { %1279 = vmatprep.subr.bf16.mxu0 %v2743_v43  ;;  %1320 = vmatprep.subr.bf16.mxu1 %v2412_v49 }
 0x556   : > { %1280 = vmatpush1.bf16.msra.mxu0 %v2397_v45  ;;  %1321 = vmatpush1.bf16.msra.mxu1 %v2424_v52  ;;  %v2102_v45 = vld [vmem:[%s2345_s7 + $0xe4] ss:$16 sps:$4 sm:$0xff]  }
 0x557   : > { %1281 = vmatprep.subr.bf16.mxu0 %v2750_v44  ;;  %1322 = vmatprep.subr.bf16.mxu1 %v2428_v53 }
 0x55a   : > { %1282 = vmatpush1.bf16.msra.mxu0 %v2416_v50  ;;  %1323 = vmatpush1.bf16.msra.mxu1 %v2440_v56 }
 0x55b   : > { %1283 = vmatprep.subr.bf16.mxu0 %v2420_v51  ;;  %1324 = vmatprep.subr.bf16.mxu1 %v2444_v57  ;;  %v1141_v51 = vld [vmem:[%s1139_s26 + $0x8] sm:$0xff] }
 0x55e   : > { %1284 = vmatpush1.bf16.msra.mxu0 %v2431_v54  ;;  %1325 = vmatpush1.bf16.msra.mxu1 %v2456_v60 }
 0x55f   : > { %1285 = vmatprep.subr.bf16.mxu0 %v2435_v55  ;;  %1326 = vmatprep.subr.bf16.mxu1 %v2460_v61 }
 0x562   : > { %1286 = vmatpush1.bf16.msra.mxu0 %v2448_v58  ;;  %1327 = vmatpush1.bf16.msra.mxu1 %v2469_v0 }
 0x563   : > { %1287 = vmatprep.subr.bf16.mxu0 %v2452_v59  ;;  %1328 = vmatprep.subr.bf16.mxu1 %v2473_v1  ;;  %v1142_v1 = vld [vmem:[%s1139_s26 + $0x10] sm:$0xff] }
 0x566   : > { %1288 = vmatpush1.bf16.msra.mxu0 %v2464_v62  ;;  %1329 = vmatpush1.bf16.msra.mxu1 %v2478_v3  ;;  %v1143_v62 = vld [vmem:[%s1139_s26 + $0x18] sm:$0xff]  ;;  %s1526_s26 = sadd.s32 (%p2255_p6), %s1525_s24, %s1523_s22 }
 0x567   : > { %1399 = vmatprep.subr.bf16.mxu0 %v2102_v45  ;;  %1440 = vmatprep.subr.bf16.mxu1 %v2103_v47  ;;  %s1859_s3 = sshll.u32 (%p2255_p6), %s1526_s26, 4 }
 0x568   : > { %s1529_s27 = sadd.s32 (%p2255_p6), %s2168_s12, %s1859_s3 }
 0x609   : > { %v1180_v49 = vpop.f32.mrf.mxu0  ;;  %v1221_v50 = vpop.f32.mrf.mxu1 }
 0x60a   : > { %v1228_v52 = vadd.f32 %v1180_v49, %v1140_v48  ;;  %v1230_v36 = vadd.f32 %v1221_v50, %v1142_v1 }
 0x60b   : > { %v1182_v53 = vpop.f32.mrf.mxu0  ;;  %v1223_v54 = vpop.f32.mrf.mxu1 }
 0x60c   : > { %v1827_v55 = vmul.f32 -1.442695, %v1228_v52  ;;  %v1229_v56 = vadd.f32 %v1182_v53, %v1141_v51  ;;  %v1231_v0 = vadd.f32 %v1223_v54, %v1143_v62 }
 0x60d   : > { %v1184_v57 = vpop.f32.mrf.mxu0  ;;  %v1225_v58 = vpop.f32.mrf.mxu1 }
 0x60e   : > { %2046 = vpow2.f32 %v1827_v55  ;;  %v1828_v59 = vmul.f32 -1.442695, %v1229_v56  ;;  %v1829_v3 = vmul.f32 -1.442695, %v1231_v0  ;;  %v1270_v55 = vld [vmem:[%s1266_s5 + $0x18] sm:$0xff]  ;;  %v1269_v57 = vld [vmem:[%s1266_s5 + $0x10] sm:$0xff] }
 0x60f   : > { %v1185_v60 = vpop.f32.mrf.mxu0  ;;  %v1226_v61 = vpop.f32.mrf.mxu1 }
 0x610   : > { %2048 = vpow2.f32 %v1828_v59 }
 0x611   : > { %2050 = vpow2.f32 %v1829_v3 }
 0x61b   : > { %v2047_v34 = vpop.eup %2046 }
 0x61c   : > { %v1235_v37 = vadd.f32 1.0, %v2047_v34 }
 0x61d   : > { %v2049_v38 = vpop.eup %2048 }
 0x61e   : > { %2052 = vrcp.f32 %v1235_v37  ;;  %v1241_v40 = vadd.f32 1.0, %v2049_v38  ;;  %v2051_v41 = vpop.eup %2050 }
 0x61f   : > { %2054 = vtanh.f32 %v1230_v36  ;;  %v1248_v22 = vadd.f32 1.0, %v2051_v41 }
 0x620   : > { %2056 = vrcp.f32 %v1241_v40 }
 0x621   : > { %2058 = vrcp.f32 %v1248_v22 }
 0x62b   : > { %v2053_v42 = vpop.eup %2052 }
 0x62c   : > { %v2055_v46 = vpop.eup %2054 }
 0x62d   : > { %v2057_v4 = vpop.eup %2056  ;;  %v1253_v33 = vmul.f32 %v2055_v46, %v2053_v42 }
 0x62e   : > { %v1252_v39 = vmul.f32 %v2057_v4, %v2707_v12  ;;  %v2059_v24 = vpop.eup %2058  ;;  %v2118_v12 = vld [vmem:[%s2345_s7 + $0x24] ss:$16 sps:$4 sm:$0xff]  }
 0x630   : > { %v2777_v23 = vadd.f32 %v1253_v33, %v1252_v39  ;;  %v1393_v33 = vld [vmem:[%s1392_s20] sm:$0xff] }
 0x632   : > { %2060 = vtanh.f32 %v2777_v23 }
 0x63f   : > { %v2061_v25 = vpop.eup %2060 }
 0x640   : > { %v1256_v26 = vmul.f32 %v2061_v25, %v2059_v24  ;;  %v1394_v25 = vld [vmem:[%s1392_s20 + $0x8] sm:$0xff] }
 0x642   : > { %1261 = vst [vmem:[%s1260_s28] sm:$0xff] %v1256_v26  ;;  %v1272_v27 = vpack.c.bf16 %v1256_v26, %v1256_v26  ;;  %s1846_s28 = sshll.u32 (%p2255_p6), %s1529_s27, 3 }
 0x643   : > { %s1531_s4 = scalar_lea.vmem (%p2255_p6), %s2868_s2, %s1846_s28 }
 0x644   : > { %1306 = vmatmul.mubr.bf16.vlgmr.msra.gmra.mxu0 %v1272_v27  ;;  %1347 = vmatmul.mubr.bf16.vlgmr.msra.gmra.mxu1 %v1272_v27 }
 0x645   : > { %1400 = vmatpush1.bf16.msra.mxu0 %v2713_v17  ;;  %1441 = vmatpush1.bf16.msra.mxu1 %v2717_v9  ;;  %v2123_v17 = vld [vmem:[%s2345_s7 + $0xc] ss:$16 sps:$4 sm:$0xff]   ;;  %v2124_v9 = vld [vmem:[%s2345_s7] ss:$16 sps:$4 sm:$0xff]  }
 0x646   : > { %1401 = vmatprep.subr.bf16.mxu0 %v2721_v18  ;;  %1442 = vmatprep.subr.bf16.mxu1 %v2104_v28  ;;  %v2125_v18 = vld [vmem:[%s2345_s7 + $0x8] ss:$16 sps:$4 sm:$0xff]  }
 0x647   : > { %1431 = vmatprep.mubr.bf16.mxu0 %v2183_v35  ;;  %1472 = vmatprep.mubr.bf16.mxu1 %v2183_v35  ;;  %v2108_v35 = vld [vmem:[%s2345_s7 + $0x8c] ss:$16 sps:$4 sm:$0xff]   ;;  %s1836_s7 = sshll.u32 %s2816_s30, 3 }
 0x648   : > { %s1387_s9 = scalar_lea.vmem %s2349_s18, %s1836_s7 [#allocation5] }
 0x649   : > { %1402 = vmatpush1.bf16.msra.mxu0 %v2728_v19  ;;  %1443 = vmatpush1.bf16.msra.mxu1 %v2105_v29  ;;  %v1267_v19 = vld [vmem:[%s1266_s5] sm:$0xff] }
 0x64a   : > { %1403 = vmatprep.subr.bf16.mxu0 %v2733_v20  ;;  %1444 = vmatprep.subr.bf16.mxu1 %v2106_v30 }
 0x64d   : > { %1404 = vmatpush1.bf16.msra.mxu0 %v2738_v21  ;;  %1445 = vmatpush1.bf16.msra.mxu1 %v2107_v31 }
 0x64e   : > { %1405 = vmatprep.subr.bf16.mxu0 %v2743_v43  ;;  %1446 = vmatprep.subr.bf16.mxu1 %v2108_v35  ;;  %v1268_v43 = vld [vmem:[%s1266_s5 + $0x8] sm:$0xff] }
 0x651   : > { %1406 = vmatpush1.bf16.msra.mxu0 %v2109_v32  ;;  %1447 = vmatpush1.bf16.msra.mxu1 %v2110_v63 }
 0x652   : > { %1407 = vmatprep.subr.bf16.mxu0 %v2750_v44  ;;  %1448 = vmatprep.subr.bf16.mxu1 %v2111_v2  ;;  %v1396_v2 = vld [vmem:[%s1392_s20 + $0x18] sm:$0xff] }
 0x655   : > { %1408 = vmatpush1.bf16.msra.mxu0 %v2112_v5  ;;  %1449 = vmatpush1.bf16.msra.mxu1 %v2113_v6  ;;  %v1395_v6 = vld [vmem:[%s1392_s20 + $0x10] sm:$0xff] }
 0x656   : > { %1409 = vmatprep.subr.bf16.mxu0 %v2114_v7  ;;  %1450 = vmatprep.subr.bf16.mxu1 %v2115_v8 }
 0x659   : > { %1410 = vmatpush1.bf16.msra.mxu0 %v2116_v10  ;;  %1451 = vmatpush1.bf16.msra.mxu1 %v2117_v11 }
 0x65a   : > { %1411 = vmatprep.subr.bf16.mxu0 %v2118_v12  ;;  %1452 = vmatprep.subr.bf16.mxu1 %v2119_v13 }
 0x65d   : > { %1412 = vmatpush1.bf16.msra.mxu0 %v2120_v14  ;;  %1453 = vmatpush1.bf16.msra.mxu1 %v2121_v15 }
 0x65e   : > { %1413 = vmatprep.subr.bf16.mxu0 %v2122_v16  ;;  %1454 = vmatprep.subr.bf16.mxu1 %v2123_v17 }
 0x661   : > { %1414 = vmatpush1.bf16.msra.mxu0 %v2124_v9  ;;  %1455 = vmatpush1.bf16.msra.mxu1 %v2125_v18 }
 0x704   : > { %v1307_v20 = vpop.f32.mrf.mxu0  ;;  %v1348_v21 = vpop.f32.mrf.mxu1 }
 0x705   : > { %v1355_v44 = vadd.f32 %v1307_v20, %v1267_v19  ;;  %v1357_v60 = vadd.f32 %v1348_v21, %v1269_v57 }
 0x706   : > { %v1309_v45 = vpop.f32.mrf.mxu0  ;;  %v1350_v47 = vpop.f32.mrf.mxu1 }
 0x707   : > { %v1833_v48 = vmul.f32 -1.442695, %v1355_v44  ;;  %v1356_v49 = vadd.f32 %v1309_v45, %v1268_v43  ;;  %v1358_v56 = vadd.f32 %v1350_v47, %v1270_v55 }
 0x708   : > { %v1311_v50 = vpop.f32.mrf.mxu0  ;;  %v1352_v51 = vpop.f32.mrf.mxu1 }
 0x709   : > { %2062 = vpow2.f32 %v1833_v48  ;;  %v1834_v52 = vmul.f32 -1.442695, %v1356_v49  ;;  %v1835_v58 = vmul.f32 -1.442695, %v1358_v56 }
 0x70a   : > { %v1312_v53 = vpop.f32.mrf.mxu0  ;;  %v1353_v54 = vpop.f32.mrf.mxu1 }
 0x70b   : > { %2064 = vpow2.f32 %v1834_v52 }
 0x70c   : > { %2066 = vpow2.f32 %v1835_v58 }
 0x716   : > { %v2063_v59 = vpop.eup %2062 }
 0x717   : > { %v1362_v61 = vadd.f32 1.0, %v2063_v59 }
 0x718   : > { %v2065_v62 = vpop.eup %2064 }
 0x719   : > { %2068 = vrcp.f32 %v1362_v61  ;;  %v1368_v0 = vadd.f32 1.0, %v2065_v62  ;;  %v2067_v1 = vpop.eup %2066 }
 0x71a   : > { %2070 = vtanh.f32 %v1357_v60  ;;  %v1375_v37 = vadd.f32 1.0, %v2067_v1 }
 0x71b   : > { %2072 = vrcp.f32 %v1368_v0 }
 0x71c   : > { %2074 = vrcp.f32 %v1375_v37 }
 0x726   : > { %v2069_v3 = vpop.eup %2068 }
 0x727   : > { %v2071_v34 = vpop.eup %2070 }
 0x728   : > { %v2073_v36 = vpop.eup %2072  ;;  %v1380_v38 = vmul.f32 %v2071_v34, %v2069_v3 }
 0x729   : > { %v1379_v40 = vmul.f32 %v2073_v36, %v2777_v23  ;;  %v2075_v42 = vpop.eup %2074 }
 0x72b   : > { %v1381_v41 = vadd.f32 %v1380_v38, %v1379_v40 }
 0x72d   : > { %2076 = vtanh.f32 %v1381_v41 }
 0x73a   : > { %v2077_v46 = vpop.eup %2076 }
 0x73b   : > { %v1383_v4 = vmul.f32 %v2077_v46, %v2075_v42 }
 0x73d   : > { %1388 = vst [vmem:[%s1387_s9] sm:$0xff] %v1383_v4  ;;  %v1398_v22 = vpack.c.bf16 %v1383_v4, %v1383_v4 }
 0x73f   : > { %1432 = vmatmul.mubr.bf16.vlgmr.msra.gmra.mxu0 %v1398_v22  ;;  %1473 = vmatmul.mubr.bf16.vlgmr.msra.gmra.mxu1 %v1398_v22 }
 0x7ff   : > { %v1433_v39 = vpop.f32.mrf.mxu0  ;;  %v1474_v24 = vpop.f32.mrf.mxu1 }
 0x800   : > { %v1481_v26 = vadd.f32 %v1433_v39, %v1393_v33  ;;  %v1483_v10 = vadd.f32 %v1474_v24, %v1395_v6 }
 0x801   : > { %v1435_v23 = vpop.f32.mrf.mxu0  ;;  %v1476_v27 = vpop.f32.mrf.mxu1 }
 0x802   : > { %v1839_v28 = vmul.f32 -1.442695, %v1481_v26  ;;  %v1482_v29 = vadd.f32 %v1435_v23, %v1394_v25  ;;  %v1484_v5 = vadd.f32 %v1476_v27, %v1396_v2 }
 0x803   : > { %v1437_v30 = vpop.f32.mrf.mxu0  ;;  %v1478_v31 = vpop.f32.mrf.mxu1 }
 0x804   : > { %2078 = vpow2.f32 %v1839_v28  ;;  %v1840_v35 = vmul.f32 -1.442695, %v1482_v29  ;;  %v1841_v7 = vmul.f32 -1.442695, %v1484_v5 }
 0x805   : > { %v1438_v32 = vpop.f32.mrf.mxu0  ;;  %v1479_v63 = vpop.f32.mrf.mxu1 }
 0x806   : > { %2080 = vpow2.f32 %v1840_v35 }
 0x807   : > { %2082 = vpow2.f32 %v1841_v7 }
 0x811   : > { %v2079_v8 = vpop.eup %2078 }
 0x812   : > { %v1488_v11 = vadd.f32 1.0, %v2079_v8 }
 0x813   : > { %v2081_v12 = vpop.eup %2080 }
 0x814   : > { %2084 = vrcp.f32 %v1488_v11  ;;  %v1494_v13 = vadd.f32 1.0, %v2081_v12  ;;  %v2083_v14 = vpop.eup %2082 }
 0x815   : > { %2086 = vtanh.f32 %v1483_v10  ;;  %v1501_v9 = vadd.f32 1.0, %v2083_v14 }
 0x816   : > { %2088 = vrcp.f32 %v1494_v13 }
 0x817   : > { %2090 = vrcp.f32 %v1501_v9 }
 0x821   : > { %v2085_v15 = vpop.eup %2084 }
 0x822   : > { %v2087_v16 = vpop.eup %2086 }
 0x823   : > { %v2089_v17 = vpop.eup %2088  ;;  %v1506_v18 = vmul.f32 %v2087_v16, %v2085_v15 }
 0x824   : > { %v1505_v19 = vmul.f32 %v2089_v17, %v1381_v41  ;;  %v2091_v21 = vpop.eup %2090 }
 0x826   : > { %v1507_v20 = vadd.f32 %v1506_v18, %v1505_v19 }
 0x828   : > { %2092 = vtanh.f32 %v1507_v20  ;;  %1510 = vst [vmem:[#allocation3] sm:$0xff] %v1507_v20 }
 0x834   : > { %1521 = sbr.rel (!%p2255_p6) target bundleno = 2117 (0x845), region = 59 }
 0x835   : > { %v2093_v43 = vpop.eup %2092 }
 0x836   : > { %v1509_v44 = vmul.f32 %v2093_v43, %v2091_v21 }
 0x838   : > { %1511 = vst [vmem:[#allocation2] sm:$0xff] %v1509_v44  ;;  %1514 = vst [vmem:[%s1513_s21] sm:$0xff] %v1509_v44 }
 0x83f   : > { %v1574_v45 = vld [vmem:[%s2349_s18] sm:$0xff]  ;;  %v1576_v47 = vld [vmem:[%s2349_s18 + $0x8] sm:$0xff]  ;;  %v1578_v48 = vld [vmem:[%s2349_s18 + $0x10] sm:$0xff] }
 0x840   : > { %v1580_v49 = vld [vmem:[%s2349_s18 + $0x18] sm:$0xff]  ;;  %v1582_v50 = vld [vmem:[%s2349_s18 + $0x20] sm:$0xff]  ;;  %v1584_v51 = vld [vmem:[%s2349_s18 + $0x28] sm:$0xff]  ;;  %1575 = vst [vmem:[%s1531_s4] sm:$0xff] %v1574_v45 }
 0x841   : > { %v1586_v52 = vld [vmem:[%s2349_s18 + $0x30] sm:$0xff]  ;;  %v1588_v53 = vld [vmem:[%s2349_s18 + $0x38] sm:$0xff]  ;;  %1577 = vst [vmem:[%s1531_s4 + $0x10] sm:$0xff] %v1576_v47  ;;  %1579 = vst [vmem:[%s1531_s4 + $0x20] sm:$0xff] %v1578_v48 }
 0x842   : > { %1581 = vst [vmem:[%s1531_s4 + $0x30] sm:$0xff] %v1580_v49  ;;  %1583 = vst [vmem:[%s1531_s4 + $0x40] sm:$0xff] %v1582_v50 }
 0x843   : > { %1585 = vst [vmem:[%s1531_s4 + $0x50] sm:$0xff] %v1584_v51  ;;  %1587 = vst [vmem:[%s1531_s4 + $0x60] sm:$0xff] %v1586_v52 }
 0x844   : > { %1589 = vst [vmem:[%s1531_s4 + $0x70] sm:$0xff] %v1588_v53 }
 0x845 PF: > { %s12_s15 = sadd.s32 1, %s2180_s15   ;;  %s2870_s9 = smov %s2160_s10 }
 0x846   : > { %p9_p0 = scmp.ge.s32.totalorder %s12_s15, 6   ;;  %s2871_s10 = smov %s2261_s6 }
 0x847   : > { %s2872_s11 = smov %s2172_s13  ;;  %s2873_s12 = smov %s2176_s14 }
 0x848   : > { %s2874_s13 = smov %s2877_s16  ;;  %s2875_s14 = smov %s2881_s17 }
 0x849   :  { %11 = sbr.rel (!%p9_p0) target bundleno = 4 (0x4), region = 147 }

// kernel: lstm_extractor_w2v.3
= control target key start
LH: loop header
LB: loop body
LE: loop exit
PB: predicated region body
PF: predicated region fallthrough
CT: control target
= control target key end

     0   :  { %s2452_s12 = smov 0   ;;  %s2454_s13 = smov 0   ;;  %s3322_s0 = inlined_call_operand.vmem [shape: bf16[128,256], index: 0, kind: input, shape index: {}]   ;;  %s3323_s1 = inlined_call_operand.vmem [shape: bf16[256,1024], index: 1, kind: input, shape index: {}]   ;;  %s3324_s2 = inlined_call_operand.vmem [shape: f32[1,1024], index: 2, kind: input, shape index: {}]   ;;  %s3325_s3 = inlined_call_operand.vmem [shape: f32[128,1024], index: 3, kind: output, shape index: {}]  }
   0x1   :  { %s2456_s14 = smov 0   ;;  %s2458_s15 = smov 0  }
   0x2   :  { %s2460_s16 = smov 0  }
   0x3 LB: > { %s22_s17 = sadd.s32 1, %s2424_s15  ;;  %p41_p1 = scmp.ne.s32.totalorder %s2416_s13, %s2412_s12  ;;  %s2428_s16 = sphi %s2460_s16, %s13_s16   ;;  %s2424_s15 = sphi %s2458_s15, %s3329_s15   ;;  %s2420_s14 = sphi %s2456_s14, %s3328_s14   ;;  %s2416_s13 = sphi %s2454_s13, %s3327_s13   ;;  %s2412_s12 = sphi %s2452_s12, %s3326_s12  }
   0x4   : > { %p23_p0 = scmp.ge.s32.totalorder %s22_s17, 2  ;;  %p42_p2 = scmp.eq.s32.totalorder %s2428_s16, 0 }
   0x5   : > { %s34_s19 = sadd.s32 1, %s2416_s13  ;;  %p2253_p5 = scmp.ge.s32.totalorder %s2428_s16, 2 }
   0x6   : > { %s3331_s17 = smov (%p23_p0, %s22_s17), 0  ;;  %p43_p3 = por %p42_p2, %p41_p1 }
   0x7   : > { %s30_s18 = ssub.s32 %s2424_s15, %s3331_s17  ;;  %143 = sbr.rel (%p2253_p5) target bundleno = 26 (0x1a), region = 20 }
   0x8   : > { %p32_p4 = scmp.eq.s32.totalorder %s30_s18, 0 }
   0xa   : > { %s2487_s20 = scalar_select %p32_p4, %s2416_s13, %s34_s19  }
   0xc   : > { %146 = sbr.rel (!%p43_p3) target bundleno = 26 (0x1a), region = 24  ;;  %s148_s21 = sand.u32 (%p43_p3), 1, %s2416_s13  }
   0xd   : > { %s2255_s22 = sshll.u32 (%p43_p3), %s2424_s15, 2  ;;  %s2254_s23 = sshll.u32 (%p43_p3), %s148_s21, 6 }
   0xe   : > { %s2495_s26 = scalar_lea.vmem (%p43_p3), %s3322_s0, %s2255_s22  ;;  %s150_s27 = scalar_lea.vmem (%p43_p3), [#allocation3], %s2254_s23 }
   0xf   : > { %v172_v0 = vld [vmem:[%s2495_s26] sm:$0xf] (%p43_p3)  ;;  %v174_v1 = vld [vmem:[%s2495_s26 + $0x8] sm:$0xf] (%p43_p3)  ;;  %v176_v2 = vld [vmem:[%s2495_s26 + $0x10] sm:$0xf] (%p43_p3) }
  0x10   : > { %173 = vst [vmem:[%s150_s27] sm:$0xf] (%p43_p3), %v172_v0  ;;  %175 = vst [vmem:[%s150_s27 + $0x4] sm:$0xf] (%p43_p3), %v174_v1  ;;  %v178_v3 = vld [vmem:[%s2495_s26 + $0x18] sm:$0xf] (%p43_p3) }
  0x11   : > { %v180_v4 = vld [vmem:[%s2495_s26 + $0x20] sm:$0xf]  ;;  %177 = vst [vmem:[%s150_s27 + $0x8] sm:$0xf] %v176_v2  ;;  %179 = vst [vmem:[%s150_s27 + $0xc] sm:$0xf] %v178_v3 }
  0x12   : > { %181 = vst [vmem:[%s150_s27 + $0x10] sm:$0xf] %v180_v4  ;;  %v182_v5 = vld [vmem:[%s2495_s26 + $0x28] sm:$0xf]  ;;  %v184_v6 = vld [vmem:[%s2495_s26 + $0x30] sm:$0xf] }
  0x13   : > { %v186_v7 = vld [vmem:[%s2495_s26 + $0x38] sm:$0xf]  ;;  %183 = vst [vmem:[%s150_s27 + $0x14] sm:$0xf] %v182_v5  ;;  %185 = vst [vmem:[%s150_s27 + $0x18] sm:$0xf] %v184_v6 }
  0x14   : > { %187 = vst [vmem:[%s150_s27 + $0x1c] sm:$0xf] %v186_v7  ;;  %v188_v8 = vld [vmem:[%s2495_s26 + $0x40] sm:$0xf]  ;;  %v190_v9 = vld [vmem:[%s2495_s26 + $0x48] sm:$0xf] }
  0x15   : > { %v192_v10 = vld [vmem:[%s2495_s26 + $0x50] sm:$0xf]  ;;  %189 = vst [vmem:[%s150_s27 + $0x20] sm:$0xf] %v188_v8  ;;  %191 = vst [vmem:[%s150_s27 + $0x24] sm:$0xf] %v190_v9 }
  0x16   : > { %193 = vst [vmem:[%s150_s27 + $0x28] sm:$0xf] %v192_v10  ;;  %v194_v11 = vld [vmem:[%s2495_s26 + $0x58] sm:$0xf]  ;;  %v196_v12 = vld [vmem:[%s2495_s26 + $0x60] sm:$0xf] }
  0x17   : > { %v198_v13 = vld [vmem:[%s2495_s26 + $0x68] sm:$0xf]  ;;  %195 = vst [vmem:[%s150_s27 + $0x2c] sm:$0xf] %v194_v11  ;;  %197 = vst [vmem:[%s150_s27 + $0x30] sm:$0xf] %v196_v12 }
  0x18   : > { %199 = vst [vmem:[%s150_s27 + $0x34] sm:$0xf] %v198_v13  ;;  %v200_v14 = vld [vmem:[%s2495_s26 + $0x70] sm:$0xf]  ;;  %v202_v15 = vld [vmem:[%s2495_s26 + $0x78] sm:$0xf] }
  0x19   : > { %201 = vst [vmem:[%s150_s27 + $0x38] sm:$0xf] %v200_v14  ;;  %203 = vst [vmem:[%s150_s27 + $0x3c] sm:$0xf] %v202_v15 }
  0x1a PF: > { %p2256_p6 = scmp.ge.s32.totalorder %s2428_s16, 1  ;;  %p268_p7 = scmp.lt.s32.totalorder %s2428_s16, 3 }
  0x1c   : > { %p269_p8 = pnand %p2256_p6, %p268_p7 }
  0x1d   : > { %s275_s28 = sand.u32 (!%p269_p8), 1, %s2412_s12   ;;  %s2258_s29 = sshll.u32 (!%p269_p8), %s2420_s14, 4 }
  0x1e   : > { %272 = sbr.rel (%p269_p8) target bundleno = 537 (0x219), region = 69  ;;  %s2257_s30 = sshll.u32 (!%p269_p8), %s275_s28, 6 }
  0x1f   : > { %p307_p9 = scmp.lt.s32.totalorder (!%p269_p8), %s2258_s29, 31  ;;  %s2522_s8 = scalar_lea.vmem (!%p269_p8), [#allocation3], %s2257_s30 }
  0x20   : > { %p2261_p10 = scmp.ne.s32.totalorder (!%p269_p8), %s2420_s14, 0 }
  0x23   : > { %s3333_s29 = smov (!%p307_p9, %s2258_s29), 31  ;;  %324 = sbr.rel (%p2261_p10) target bundleno = 105 (0x69), region = 77 }
  0x24   : > { %s2339_s4 = sshll.u32 %s3333_s29, 5 }
  0x25   : > { %s2520_s7 = scalar_lea.vmem %s3323_s1, %s2339_s4 }
  0x28   : > { %v2430_v16 = vmov 0.0  }
  0x29   : > { %325 = vst [vmem:[#allocation2 + $0x2b0] sm:$0xff] %v2430_v16  ;;  %326 = vst [vmem:[#allocation2 + $0x3b0] sm:$0xff] %v2430_v16 }
  0x2a   : > { %327 = vst [vmem:[#allocation2 + $0xd8] sm:$0xff] %v2430_v16  ;;  %328 = vst [vmem:[#allocation2 + $0x18] sm:$0xff] %v2430_v16 }
  0x2b   : > { %329 = vst [vmem:[#allocation2 + $0x50] sm:$0xff] %v2430_v16  ;;  %330 = vst [vmem:[#allocation2 + $0x368] sm:$0xff] %v2430_v16 }
  0x2c   : > { %331 = vst [vmem:[#allocation2 + $0x330] sm:$0xff] %v2430_v16  ;;  %332 = vst [vmem:[#allocation2 + $0x48] sm:$0xff] %v2430_v16 }
  0x2d   : > { %333 = vst [vmem:[#allocation2 + $0x380] sm:$0xff] %v2430_v16  ;;  %334 = vst [vmem:[#allocation2 + $0x110] sm:$0xff] %v2430_v16 }
  0x2e   : > { %335 = vst [vmem:[#allocation2 + $0x118] sm:$0xff] %v2430_v16  ;;  %336 = vst [vmem:[#allocation2 + $0x98] sm:$0xff] %v2430_v16 }
  0x2f   : > { %337 = vst [vmem:[#allocation2 + $0x320] sm:$0xff] %v2430_v16  ;;  %338 = vst [vmem:[#allocation2 + $0x150] sm:$0xff] %v2430_v16 }
  0x30   : > { %339 = vst [vmem:[#allocation2 + $0x108] sm:$0xff] %v2430_v16  ;;  %340 = vst [vmem:[#allocation2 + $0x60] sm:$0xff] %v2430_v16 }
  0x31   : > { %341 = vst [vmem:[#allocation2 + $0x2e0] sm:$0xff] %v2430_v16  ;;  %342 = vst [vmem:[#allocation2 + $0x388] sm:$0xff] %v2430_v16 }
  0x32   : > { %343 = vst [vmem:[#allocation2 + $0x338] sm:$0xff] %v2430_v16  ;;  %344 = vst [vmem:[#allocation2 + $0x340] sm:$0xff] %v2430_v16 }
  0x33   : > { %345 = vst [vmem:[#allocation2 + $0x80] sm:$0xff] %v2430_v16  ;;  %346 = vst [vmem:[#allocation2 + $0x1a8] sm:$0xff] %v2430_v16 }
  0x34   : > { %347 = vst [vmem:[#allocation2 + $0x1b8] sm:$0xff] %v2430_v16  ;;  %348 = vst [vmem:[#allocation2 + $0x168] sm:$0xff] %v2430_v16 }
  0x35   : > { %349 = vst [vmem:[#allocation2 + $0x3e8] sm:$0xff] %v2430_v16  ;;  %350 = vst [vmem:[#allocation2 + $0x2f8] sm:$0xff] %v2430_v16 }
  0x36   : > { %351 = vst [vmem:[#allocation2 + $0x290] sm:$0xff] %v2430_v16  ;;  %352 = vst [vmem:[#allocation2 + $0x28] sm:$0xff] %v2430_v16 }
  0x37   : > { %353 = vst [vmem:[#allocation2 + $0x138] sm:$0xff] %v2430_v16  ;;  %354 = vst [vmem:[#allocation2 + $0xc0] sm:$0xff] %v2430_v16 }
  0x38   : > { %355 = vst [vmem:[#allocation2 + $0x1c0] sm:$0xff] %v2430_v16  ;;  %356 = vst [vmem:[#allocation2 + $0x280] sm:$0xff] %v2430_v16 }
  0x39   : > { %357 = vst [vmem:[#allocation2 + $0x100] sm:$0xff] %v2430_v16  ;;  %358 = vst [vmem:[#allocation2 + $0x3c0] sm:$0xff] %v2430_v16 }
  0x3a   : > { %359 = vst [vmem:[#allocation2 + $0x158] sm:$0xff] %v2430_v16  ;;  %360 = vst [vmem:[#allocation2 + $0x3e0] sm:$0xff] %v2430_v16 }
  0x3b   : > { %361 = vst [vmem:[#allocation2 + $0x218] sm:$0xff] %v2430_v16  ;;  %362 = vst [vmem:[#allocation2 + $0x3f8] sm:$0xff] %v2430_v16 }
  0x3c   : > { %363 = vst [vmem:[#allocation2 + $0x8] sm:$0xff] %v2430_v16  ;;  %364 = vst [vmem:[#allocation2 + $0x128] sm:$0xff] %v2430_v16 }
  0x3d   : > { %365 = vst [vmem:[#allocation2 + $0x2a0] sm:$0xff] %v2430_v16  ;;  %366 = vst [vmem:[#allocation2 + $0x3f0] sm:$0xff] %v2430_v16 }
  0x3e   : > { %367 = vst [vmem:[#allocation2 + $0xa0] sm:$0xff] %v2430_v16  ;;  %368 = vst [vmem:[#allocation2 + $0x2c0] sm:$0xff] %v2430_v16 }
  0x3f   : > { %369 = vst [vmem:[#allocation2 + $0xb0] sm:$0xff] %v2430_v16  ;;  %370 = vst [vmem:[#allocation2 + $0x1e0] sm:$0xff] %v2430_v16 }
  0x40   : > { %371 = vst [vmem:[#allocation2 + $0x1f0] sm:$0xff] %v2430_v16  ;;  %372 = vst [vmem:[#allocation2 + $0x10] sm:$0xff] %v2430_v16 }
  0x41   : > { %373 = vst [vmem:[#allocation2 + $0x230] sm:$0xff] %v2430_v16  ;;  %374 = vst [vmem:[#allocation2 + $0x240] sm:$0xff] %v2430_v16 }
  0x42   : > { %375 = vst [vmem:[#allocation2 + $0x90] sm:$0xff] %v2430_v16  ;;  %376 = vst [vmem:[#allocation2 + $0x3a0] sm:$0xff] %v2430_v16 }
  0x43   : > { %377 = vst [vmem:[#allocation2 + $0x208] sm:$0xff] %v2430_v16  ;;  %378 = vst [vmem:[#allocation2 + $0xd0] sm:$0xff] %v2430_v16 }
  0x44   : > { %379 = vst [vmem:[#allocation2 + $0x88] sm:$0xff] %v2430_v16  ;;  %380 = vst [vmem:[#allocation2 + $0x2f0] sm:$0xff] %v2430_v16 }
  0x45   : > { %381 = vst [vmem:[#allocation2 + $0x358] sm:$0xff] %v2430_v16  ;;  %382 = vst [vmem:[#allocation2 + $0x268] sm:$0xff] %v2430_v16 }
  0x46   : > { %383 = vst [vmem:[#allocation2 + $0x350] sm:$0xff] %v2430_v16  ;;  %384 = vst [vmem:[#allocation2 + $0x188] sm:$0xff] %v2430_v16 }
  0x47   : > { %385 = vst [vmem:[#allocation2 + $0x1d8] sm:$0xff] %v2430_v16  ;;  %386 = vst [vmem:[#allocation2 + $0x30] sm:$0xff] %v2430_v16 }
  0x48   : > { %387 = vst [vmem:[#allocation2 + $0x140] sm:$0xff] %v2430_v16  ;;  %388 = vst [vmem:[#allocation2 + $0x2a8] sm:$0xff] %v2430_v16 }
  0x49   : > { %389 = vst [vmem:[#allocation2 + $0x130] sm:$0xff] %v2430_v16  ;;  %390 = vst [vmem:[#allocation2 + $0x200] sm:$0xff] %v2430_v16 }
  0x4a   : > { %391 = vst [vmem:[#allocation2 + $0x318] sm:$0xff] %v2430_v16  ;;  %392 = vst [vmem:[#allocation2 + $0x220] sm:$0xff] %v2430_v16 }
  0x4b   : > { %393 = vst [vmem:[#allocation2 + $0x70] sm:$0xff] %v2430_v16  ;;  %394 = vst [vmem:[#allocation2 + $0x300] sm:$0xff] %v2430_v16 }
  0x4c   : > { %395 = vst [vmem:[#allocation2 + $0xe0] sm:$0xff] %v2430_v16  ;;  %396 = vst [vmem:[#allocation2 + $0x178] sm:$0xff] %v2430_v16 }
  0x4d   : > { %397 = vst [vmem:[#allocation2 + $0x328] sm:$0xff] %v2430_v16  ;;  %398 = vst [vmem:[#allocation2 + $0x260] sm:$0xff] %v2430_v16 }
  0x4e   : > { %399 = vst [vmem:[#allocation2 + $0x3b8] sm:$0xff] %v2430_v16  ;;  %400 = vst [vmem:[#allocation2 + $0x2b8] sm:$0xff] %v2430_v16 }
  0x4f   : > { %401 = vst [vmem:[#allocation2 + $0x248] sm:$0xff] %v2430_v16  ;;  %402 = vst [vmem:[#allocation2 + $0x40] sm:$0xff] %v2430_v16 }
  0x50   : > { %403 = vst [vmem:[#allocation2 + $0x20] sm:$0xff] %v2430_v16  ;;  %404 = vst [vmem:[#allocation2 + $0xe8] sm:$0xff] %v2430_v16 }
  0x51   : > { %405 = vst [vmem:[#allocation2 + $0x288] sm:$0xff] %v2430_v16  ;;  %406 = vst [vmem:[#allocation2 + $0x3a8] sm:$0xff] %v2430_v16 }
  0x52   : > { %407 = vst [vmem:[#allocation2 + $0x3c8] sm:$0xff] %v2430_v16  ;;  %408 = vst [vmem:[#allocation2 + $0x160] sm:$0xff] %v2430_v16 }
  0x53   : > { %409 = vst [vmem:[#allocation2 + $0x2c8] sm:$0xff] %v2430_v16  ;;  %410 = vst [vmem:[#allocation2 + $0x210] sm:$0xff] %v2430_v16 }
  0x54   : > { %411 = vst [vmem:[#allocation2 + $0x3d8] sm:$0xff] %v2430_v16  ;;  %412 = vst [vmem:[#allocation2 + $0x1e8] sm:$0xff] %v2430_v16 }
  0x55   : > { %413 = vst [vmem:[#allocation2 + $0x1b0] sm:$0xff] %v2430_v16  ;;  %414 = vst [vmem:[#allocation2 + $0x1c8] sm:$0xff] %v2430_v16 }
  0x56   : > { %415 = vst [vmem:[#allocation2 + $0x2d0] sm:$0xff] %v2430_v16  ;;  %416 = vst [vmem:[#allocation2 + $0x1d0] sm:$0xff] %v2430_v16 }
  0x57   : > { %417 = vst [vmem:[#allocation2 + $0x58] sm:$0xff] %v2430_v16  ;;  %418 = vst [vmem:[#allocation2 + $0x120] sm:$0xff] %v2430_v16 }
  0x58   : > { %419 = vst [vmem:[#allocation2 + $0x198] sm:$0xff] %v2430_v16  ;;  %420 = vst [vmem:[#allocation2 + $0x2e8] sm:$0xff] %v2430_v16 }
  0x59   : > { %421 = vst [vmem:[#allocation2 + $0x1f8] sm:$0xff] %v2430_v16  ;;  %422 = vst [vmem:[#allocation2 + $0x238] sm:$0xff] %v2430_v16 }
  0x5a   : > { %423 = vst [vmem:[#allocation2 + $0x398] sm:$0xff] %v2430_v16  ;;  %424 = vst [vmem:[#allocation2 + $0x390] sm:$0xff] %v2430_v16 }
  0x5b   : > { %425 = vst [vmem:[#allocation2 + $0x1a0] sm:$0xff] %v2430_v16  ;;  %426 = vst [vmem:[#allocation2 + $0xa8] sm:$0xff] %v2430_v16 }
  0x5c   : > { %427 = vst [vmem:[#allocation2 + $0x258] sm:$0xff] %v2430_v16  ;;  %428 = vst [vmem:[#allocation2 + $0x2d8] sm:$0xff] %v2430_v16 }
  0x5d   : > { %429 = vst [vmem:[#allocation2 + $0xf0] sm:$0xff] %v2430_v16  ;;  %430 = vst [vmem:[#allocation2 + $0x180] sm:$0xff] %v2430_v16 }
  0x5e   : > { %431 = vst [vmem:[#allocation2 + $0x170] sm:$0xff] %v2430_v16  ;;  %432 = vst [vmem:[#allocation2 + $0x3d0] sm:$0xff] %v2430_v16 }
  0x5f   : > { %433 = vst [vmem:[#allocation2 + $0x250] sm:$0xff] %v2430_v16  ;;  %434 = vst [vmem:[#allocation2 + $0x378] sm:$0xff] %v2430_v16 }
  0x60   : > { %435 = vst [vmem:[#allocation2 + $0xb8] sm:$0xff] %v2430_v16  ;;  %436 = vst [vmem:[#allocation2 + $0x38] sm:$0xff] %v2430_v16 }
  0x61   : > { %437 = vst [vmem:[#allocation2 + $0x78] sm:$0xff] %v2430_v16  ;;  %438 = vst [vmem:[#allocation2 + $0x308] sm:$0xff] %v2430_v16 }
  0x62   : > { %439 = vst [vmem:[#allocation2 + $0x370] sm:$0xff] %v2430_v16  ;;  %440 = vst [vmem:[#allocation2 + $0xc8] sm:$0xff] %v2430_v16 }
  0x63   : > { %441 = vst [vmem:[#allocation2 + $0x278] sm:$0xff] %v2430_v16  ;;  %442 = vst [vmem:[#allocation2 + $0x360] sm:$0xff] %v2430_v16 }
  0x64   : > { %443 = vst [vmem:[#allocation2 + $0x228] sm:$0xff] %v2430_v16  ;;  %444 = vst [vmem:[#allocation2 + $0x348] sm:$0xff] %v2430_v16 }
  0x65   : > { %445 = vst [vmem:[#allocation2 + $0x148] sm:$0xff] %v2430_v16  ;;  %446 = vst [vmem:[#allocation2 + $0xf8] sm:$0xff] %v2430_v16 }
  0x66   : > { %447 = vst [vmem:[#allocation2 + $0x68] sm:$0xff] %v2430_v16  ;;  %448 = vst [vmem:[#allocation2] sm:$0xff] %v2430_v16 }
  0x67   : > { %449 = vst [vmem:[#allocation2 + $0x298] sm:$0xff] %v2430_v16  ;;  %450 = vst [vmem:[#allocation2 + $0x270] sm:$0xff] %v2430_v16 }
  0x68   : > { %451 = vst [vmem:[#allocation2 + $0x310] sm:$0xff] %v2430_v16  ;;  %452 = vst [vmem:[#allocation2 + $0x190] sm:$0xff] %v2430_v16 }
  0x69 PF: > { %v653_v17 = vld [vmem:[%s2520_s7 + $0x1c0] sm:$0xff]  ;;  %v654_v19 = vld [vmem:[%s2520_s7 + $0x1c8] sm:$0xff]  ;;  %v2431_v25 = vmov 0   ;;  %v655_v16 = vld [vmem:[%s2520_s7 + $0x1d0] sm:$0xff]  ;;  %p2334_p11 = scmp.ne.s32.totalorder %s2420_s14, 1 }
  0x6a   : > { %v657_v18 = vld [vmem:[%s2520_s7 + $0x1e0] sm:$0xff]  ;;  %v658_v21 = vld [vmem:[%s2520_s7 + $0x1e8] sm:$0xff]  ;;  %1061 = vmatprep.mubr.bf16.mxu0 %v2431_v25  ;;  %1174 = vmatprep.mubr.bf16.mxu1 %v2431_v25 }
  0x6b   : > { %v2327_v20 = vcombine.high %v653_v17, %v657_v18  ;;  %v2326_v22 = vcombine.low %v653_v17, %v657_v18  ;;  %v645_v23 = vld [vmem:[%s2520_s7 + $0x180] sm:$0xff]  ;;  %v2329_v26 = vcombine.high %v654_v19, %v658_v21  ;;  %v2328_v27 = vcombine.low %v654_v19, %v658_v21  ;;  %v646_v29 = vld [vmem:[%s2520_s7 + $0x188] sm:$0xff]  ;;  %v659_v17 = vld [vmem:[%s2520_s7 + $0x1f0] sm:$0xff] }
  0x6c   : > { %v649_v24 = vld [vmem:[%s2520_s7 + $0x1a0] sm:$0xff]  ;;  %v650_v30 = vld [vmem:[%s2520_s7 + $0x1a8] sm:$0xff]  ;;  %v656_v18 = vld [vmem:[%s2520_s7 + $0x1d8] sm:$0xff] }
  0x6d   : > { %v2319_v28 = vcombine.high %v645_v23, %v649_v24  ;;  %v637_v31 = vld [vmem:[%s2520_s7 + $0x140] sm:$0xff]  ;;  %1029 = vmatprep.subr.bf16.mxu0 %v2327_v20  ;;  %v2321_v32 = vcombine.high %v646_v29, %v650_v30  ;;  %v638_v34 = vld [vmem:[%s2520_s7 + $0x148] sm:$0xff]  ;;  %1142 = vmatprep.subr.bf16.mxu1 %v2329_v26  ;;  %v2318_v36 = vcombine.low %v645_v23, %v649_v24  ;;  %v660_v19 = vld [vmem:[%s2520_s7 + $0x1f8] sm:$0xff] }
  0x6e   : > { %v641_v33 = vld [vmem:[%s2520_s7 + $0x160] sm:$0xff]  ;;  %v642_v35 = vld [vmem:[%s2520_s7 + $0x168] sm:$0xff]  ;;  %1030 = vmatpush1.bf16.msra.mxu0 %v2326_v22  ;;  %1143 = vmatpush1.bf16.msra.mxu1 %v2328_v27  ;;  %v2320_v37 = vcombine.low %v646_v29, %v650_v30  ;;  %v2331_v22 = vcombine.high %v655_v16, %v659_v17  ;;  %v2333_v23 = vcombine.high %v656_v18, %v660_v19  ;;  %v647_v26 = vld [vmem:[%s2520_s7 + $0x190] sm:$0xff] }
  0x6f   : > { %1031 = vmatprep.subr.bf16.mxu0 %v2319_v28  ;;  %v2311_v38 = vcombine.high %v637_v31, %v641_v33  ;;  %1144 = vmatprep.subr.bf16.mxu1 %v2321_v32  ;;  %v2313_v39 = vcombine.high %v638_v34, %v642_v35  ;;  %v629_v40 = vld [vmem:[%s2520_s7 + $0x100] sm:$0xff]  ;;  %v630_v42 = vld [vmem:[%s2520_s7 + $0x108] sm:$0xff]  ;;  %v2310_v44 = vcombine.low %v637_v31, %v641_v33  ;;  %v651_v27 = vld [vmem:[%s2520_s7 + $0x1b0] sm:$0xff] }
  0x70   : > { %v633_v41 = vld [vmem:[%s2520_s7 + $0x120] sm:$0xff]  ;;  %v634_v43 = vld [vmem:[%s2520_s7 + $0x128] sm:$0xff]  ;;  %v2312_v45 = vcombine.low %v638_v34, %v642_v35  ;;  %v2330_v28 = vcombine.low %v655_v16, %v659_v17  ;;  %v648_v29 = vld [vmem:[%s2520_s7 + $0x198] sm:$0xff]  ;;  %v2332_v31 = vcombine.low %v656_v18, %v660_v19  ;;  %v2323_v32 = vcombine.high %v647_v26, %v651_v27 }
  0x71   : > { %v2303_v46 = vcombine.high %v629_v40, %v633_v41  ;;  %v2305_v47 = vcombine.high %v630_v42, %v634_v43  ;;  %v621_v48 = vld [vmem:[%s2520_s7 + $0xc0] sm:$0xff]  ;;  %v622_v50 = vld [vmem:[%s2520_s7 + $0xc8] sm:$0xff]  ;;  %v2302_v52 = vcombine.low %v629_v40, %v633_v41  ;;  %v2304_v53 = vcombine.low %v630_v42, %v634_v43  ;;  %v652_v30 = vld [vmem:[%s2520_s7 + $0x1b8] sm:$0xff] }
  0x72   : > { %1032 = vmatpush1.bf16.msra.mxu0 %v2318_v36  ;;  %1145 = vmatpush1.bf16.msra.mxu1 %v2320_v37  ;;  %v625_v49 = vld [vmem:[%s2520_s7 + $0xe0] sm:$0xff]  ;;  %v626_v51 = vld [vmem:[%s2520_s7 + $0xe8] sm:$0xff]  ;;  %v639_v33 = vld [vmem:[%s2520_s7 + $0x150] sm:$0xff]  ;;  %v2325_v35 = vcombine.high %v648_v29, %v652_v30 }
  0x73   : > { %1033 = vmatprep.subr.bf16.mxu0 %v2311_v38  ;;  %1146 = vmatprep.subr.bf16.mxu1 %v2313_v39  ;;  %v2295_v54 = vcombine.high %v621_v48, %v625_v49  ;;  %v2297_v55 = vcombine.high %v622_v50, %v626_v51  ;;  %v613_v56 = vld [vmem:[%s2520_s7 + $0x80] sm:$0xff]  ;;  %v614_v58 = vld [vmem:[%s2520_s7 + $0x88] sm:$0xff]  ;;  %v2294_v60 = vcombine.low %v621_v48, %v625_v49  ;;  %v643_v34 = vld [vmem:[%s2520_s7 + $0x170] sm:$0xff] }
  0x74   : > { %v617_v57 = vld [vmem:[%s2520_s7 + $0xa0] sm:$0xff]  ;;  %v618_v59 = vld [vmem:[%s2520_s7 + $0xa8] sm:$0xff]  ;;  %v2296_v61 = vcombine.low %v622_v50, %v626_v51  ;;  %v640_v36 = vld [vmem:[%s2520_s7 + $0x158] sm:$0xff]  ;;  %v2322_v38 = vcombine.low %v647_v26, %v651_v27  ;;  %v2324_v39 = vcombine.low %v648_v29, %v652_v30  ;;  %v2315_v40 = vcombine.high %v639_v33, %v643_v34 }
  0x75   : > { %v2287_v62 = vcombine.high %v613_v56, %v617_v57  ;;  %v2289_v63 = vcombine.high %v614_v58, %v618_v59  ;;  %v605_v0 = vld [vmem:[%s2520_s7 + $0x40] sm:$0xff]  ;;  %v606_v2 = vld [vmem:[%s2520_s7 + $0x48] sm:$0xff]  ;;  %v2286_v4 = vcombine.low %v613_v56, %v617_v57  ;;  %v2288_v5 = vcombine.low %v614_v58, %v618_v59  ;;  %v644_v37 = vld [vmem:[%s2520_s7 + $0x178] sm:$0xff] }
  0x76   : > { %1034 = vmatpush1.bf16.msra.mxu0 %v2310_v44  ;;  %1147 = vmatpush1.bf16.msra.mxu1 %v2312_v45  ;;  %v609_v1 = vld [vmem:[%s2520_s7 + $0x60] sm:$0xff]  ;;  %v610_v3 = vld [vmem:[%s2520_s7 + $0x68] sm:$0xff]  ;;  %v2317_v41 = vcombine.high %v640_v36, %v644_v37  ;;  %v631_v43 = vld [vmem:[%s2520_s7 + $0x110] sm:$0xff]  ;;  %v2316_v48 = vcombine.low %v640_v36, %v644_v37 }
  0x77   : > { %1035 = vmatprep.subr.bf16.mxu0 %v2303_v46  ;;  %1148 = vmatprep.subr.bf16.mxu1 %v2305_v47  ;;  %v2279_v6 = vcombine.high %v605_v0, %v609_v1  ;;  %v597_v7 = vld [vmem:[%s2520_s7] sm:$0xff]  ;;  %v2281_v8 = vcombine.high %v606_v2, %v610_v3  ;;  %v598_v10 = vld [vmem:[%s2520_s7 + $0x8] sm:$0xff]  ;;  %v2278_v12 = vcombine.low %v605_v0, %v609_v1  ;;  %v635_v44 = vld [vmem:[%s2520_s7 + $0x130] sm:$0xff] }
  0x78   : > { %v601_v9 = vld [vmem:[%s2520_s7 + $0x20] sm:$0xff]  ;;  %v602_v11 = vld [vmem:[%s2520_s7 + $0x28] sm:$0xff]  ;;  %v2280_v13 = vcombine.low %v606_v2, %v610_v3  ;;  %v632_v45 = vld [vmem:[%s2520_s7 + $0x118] sm:$0xff]  ;;  %v2314_v47 = vcombine.low %v639_v33, %v643_v34  ;;  %v2307_v49 = vcombine.high %v631_v43, %v635_v44 }
  0x79   : > { %v2271_v14 = vcombine.high %v597_v7, %v601_v9  ;;  %v2273_v15 = vcombine.high %v598_v10, %v602_v11  ;;  %v2270_v20 = vcombine.low %v597_v7, %v601_v9  ;;  %v2272_v21 = vcombine.low %v598_v10, %v602_v11  ;;  %v2692_v24 = vld [vmem:[%s2522_s8] sm:$0xff]   ;;  %v2707_v42 = vld [vmem:[%s2522_s8 + $0x8] sm:$0xff]   ;;  %v636_v46 = vld [vmem:[%s2520_s7 + $0x138] sm:$0xff] }
  0x7a   : > { %1036 = vmatpush1.bf16.msra.mxu0 %v2302_v52  ;;  %1149 = vmatpush1.bf16.msra.mxu1 %v2304_v53  ;;  %v2309_v50 = vcombine.high %v632_v45, %v636_v46  ;;  %v623_v51 = vld [vmem:[%s2520_s7 + $0xd0] sm:$0xff]  ;;  %v624_v53 = vld [vmem:[%s2520_s7 + $0xd8] sm:$0xff]  ;;  %v2308_v56 = vcombine.low %v632_v45, %v636_v46  ;;  %v2387_v26 = vld [vmem:[%s2522_s8 + $0x28] sm:$0xff]  }
  0x7b   : > { %1037 = vmatprep.subr.bf16.mxu0 %v2295_v54  ;;  %1150 = vmatprep.subr.bf16.mxu1 %v2297_v55  ;;  %v627_v52 = vld [vmem:[%s2520_s7 + $0xf0] sm:$0xff]  ;;  %v628_v54 = vld [vmem:[%s2520_s7 + $0xf8] sm:$0xff]  ;;  %v2306_v55 = vcombine.low %v631_v43, %v635_v44  ;;  %v461_v37 = vld [vmem:[#allocation2 + $0x380] sm:$0xff] }
  0x7c   : > { %v2299_v57 = vcombine.high %v623_v51, %v627_v52  ;;  %v2722_v58 = vld [vmem:[%s2522_s8 + $0x10] sm:$0xff]   ;;  %v2301_v59 = vcombine.high %v624_v53, %v628_v54  ;;  %v2298_v0 = vcombine.low %v623_v51, %v627_v52  ;;  %v2300_v1 = vcombine.low %v624_v53, %v628_v54  ;;  %v612_v7 = vld [vmem:[%s2520_s7 + $0x78] sm:$0xff]  ;;  %v470_v54 = vld [vmem:[#allocation2 + $0x388] sm:$0xff] }
  0x7d   : > { %v2385_v11 = vld [vmem:[%s2522_s8 + $0x18] sm:$0xff]   ;;  %v2388_v27 = vld [vmem:[%s2522_s8 + $0x30] sm:$0xff]  }
  0x7e   : > { %1038 = vmatpush1.bf16.msra.mxu0 %v2294_v60  ;;  %1151 = vmatpush1.bf16.msra.mxu1 %v2296_v61  ;;  %v615_v60 = vld [vmem:[%s2520_s7 + $0x90] sm:$0xff]  ;;  %v604_v16 = vld [vmem:[%s2520_s7 + $0x38] sm:$0xff] }
  0x7f   : > { %1039 = vmatprep.subr.bf16.mxu0 %v2287_v62  ;;  %1152 = vmatprep.subr.bf16.mxu1 %v2289_v63  ;;  %v619_v61 = vld [vmem:[%s2520_s7 + $0xb0] sm:$0xff]  ;;  %v616_v62 = vld [vmem:[%s2520_s7 + $0x98] sm:$0xff] }
  0x80   : > { %v620_v63 = vld [vmem:[%s2520_s7 + $0xb8] sm:$0xff]  ;;  %v2291_v2 = vcombine.high %v615_v60, %v619_v61 }
  0x81   : > { %v2293_v3 = vcombine.high %v616_v62, %v620_v63  ;;  %v2292_v9 = vcombine.low %v616_v62, %v620_v63  ;;  %v455_v29 = vld [vmem:[#allocation2 + $0xd8] sm:$0xff]  ;;  %v479_v63 = vld [vmem:[#allocation2 + $0x290] sm:$0xff] }
  0x82   : > { %1040 = vmatpush1.bf16.msra.mxu0 %v2286_v4  ;;  %1153 = vmatpush1.bf16.msra.mxu1 %v2288_v5  ;;  %v607_v4 = vld [vmem:[%s2520_s7 + $0x50] sm:$0xff]  ;;  %v456_v34 = vld [vmem:[#allocation2 + $0x18] sm:$0xff] }
  0x83   : > { %1041 = vmatprep.subr.bf16.mxu0 %v2279_v6  ;;  %1154 = vmatprep.subr.bf16.mxu1 %v2281_v8  ;;  %v611_v5 = vld [vmem:[%s2520_s7 + $0x70] sm:$0xff]  ;;  %v608_v6 = vld [vmem:[%s2520_s7 + $0x58] sm:$0xff]  ;;  %v2290_v8 = vcombine.low %v615_v60, %v619_v61  ;;  %v477_v60 = vld [vmem:[#allocation2 + $0x3e8] sm:$0xff] }
  0x84   : > { %v2283_v10 = vcombine.high %v607_v4, %v611_v5  ;;  %v2282_v17 = vcombine.low %v607_v4, %v611_v5  ;;  %v2284_v18 = vcombine.low %v608_v6, %v612_v7  ;;  %v464_v45 = vld [vmem:[#allocation2 + $0x98] sm:$0xff]  ;;  %v480_v5 = vld [vmem:[#allocation2 + $0x28] sm:$0xff] }
  0x85   : > { %v471_v51 = vld [vmem:[#allocation2 + $0x338] sm:$0xff] }
  0x86   : > { %1042 = vmatpush1.bf16.msra.mxu0 %v2278_v12  ;;  %1155 = vmatpush1.bf16.msra.mxu1 %v2280_v13  ;;  %v2285_v12 = vcombine.high %v608_v6, %v612_v7  ;;  %v599_v13 = vld [vmem:[%s2520_s7 + $0x10] sm:$0xff] }
  0x87   : > { %1043 = vmatprep.subr.bf16.mxu0 %v2271_v14  ;;  %1156 = vmatprep.subr.bf16.mxu1 %v2273_v15  ;;  %v603_v14 = vld [vmem:[%s2520_s7 + $0x30] sm:$0xff]  ;;  %v600_v15 = vld [vmem:[%s2520_s7 + $0x18] sm:$0xff] }
  0x88   : > { %v2275_v19 = vcombine.high %v599_v13, %v603_v14 }
  0x8a   : > { %1044 = vmatpush1.bf16.msra.mxu0 %v2270_v20  ;;  %1157 = vmatpush1.bf16.msra.mxu1 %v2272_v21  ;;  %v2277_v20 = vcombine.high %v600_v15, %v604_v16  ;;  %v2274_v21 = vcombine.low %v599_v13, %v603_v14  ;;  %v486_v14 = vld [vmem:[#allocation2 + $0x3c0] sm:$0xff] }
  0x8b   : > { %1255 = vmatprep.subr.bf16.mxu0 %v2331_v22  ;;  %1368 = vmatprep.subr.bf16.mxu1 %v2333_v23  ;;  %v2276_v22 = vcombine.low %v600_v15, %v604_v16  ;;  %v2386_v23 = vld [vmem:[%s2522_s8 + $0x20] sm:$0xff]  }
  0x8d   : > { %1062 = vmatmul.mubr.bf16.vlgmr.msra.gmra.mxu0 %v2692_v24  ;;  %1175 = vmatmul.mubr.bf16.vlgmr.msra.gmra.mxu1 %v2692_v24 }
  0x8e   : > { %1256 = vmatpush1.bf16.msra.mxu0 %v2330_v28  ;;  %1369 = vmatpush1.bf16.msra.mxu1 %v2332_v31  ;;  %v2389_v28 = vld [vmem:[%s2522_s8 + $0x38] sm:$0xff]   ;;  %v454_v31 = vld [vmem:[#allocation2 + $0x3b0] sm:$0xff] }
  0x8f   : > { %1071 = vmatprep.mubr.bf16.mxu0 %v2431_v25  ;;  %1184 = vmatprep.mubr.bf16.mxu1 %v2431_v25 }
  0x90   : > { %1257 = vmatprep.subr.bf16.mxu0 %v2323_v32  ;;  %1370 = vmatprep.subr.bf16.mxu1 %v2325_v35 }
  0x92   : > { %1258 = vmatpush1.bf16.msra.mxu0 %v2322_v38  ;;  %1371 = vmatpush1.bf16.msra.mxu1 %v2324_v39 }
  0x93   : > { %1259 = vmatprep.subr.bf16.mxu0 %v2315_v40  ;;  %1372 = vmatprep.subr.bf16.mxu1 %v2317_v41  ;;  %v463_v40 = vld [vmem:[#allocation2 + $0x118] sm:$0xff] }
  0x95   : > { %1072 = vmatmul.mubr.bf16.gmra.mxu0 %v2707_v42  ;;  %1185 = vmatmul.mubr.bf16.gmra.mxu1 %v2707_v42 }
  0x96   : > { %1081 = vmatprep.mubr.bf16.mxu0 %v2431_v25  ;;  %1194 = vmatprep.mubr.bf16.mxu1 %v2431_v25 }
  0x97   : > { %1260 = vmatpush1.bf16.msra.mxu0 %v2314_v47  ;;  %1373 = vmatpush1.bf16.msra.mxu1 %v2316_v48  ;;  %v469_v48 = vld [vmem:[#allocation2 + $0x2e0] sm:$0xff] }
  0x98   : > { %1261 = vmatprep.subr.bf16.mxu0 %v2307_v49  ;;  %1374 = vmatprep.subr.bf16.mxu1 %v2309_v50 }
  0x9b   : > { %1262 = vmatpush1.bf16.msra.mxu0 %v2306_v55  ;;  %1375 = vmatpush1.bf16.msra.mxu1 %v2308_v56 }
  0x9c   : > { %1263 = vmatprep.subr.bf16.mxu0 %v2299_v57  ;;  %1376 = vmatprep.subr.bf16.mxu1 %v2301_v59  ;;  %v472_v57 = vld [vmem:[#allocation2 + $0x340] sm:$0xff] }
  0x9d   : > { %1082 = vmatmul.mubr.bf16.gmra.mxu0 %v2722_v58  ;;  %1195 = vmatmul.mubr.bf16.gmra.mxu1 %v2722_v58 }
  0x9e   : > { %1091 = vmatprep.mubr.bf16.mxu0 %v2431_v25  ;;  %1204 = vmatprep.mubr.bf16.mxu1 %v2431_v25 }
  0x9f   : > { %1264 = vmatpush1.bf16.msra.mxu0 %v2298_v0  ;;  %1377 = vmatpush1.bf16.msra.mxu1 %v2300_v1 }
  0xa0   : > { %1265 = vmatprep.subr.bf16.mxu0 %v2291_v2  ;;  %1378 = vmatprep.subr.bf16.mxu1 %v2293_v3  ;;  %v478_v2 = vld [vmem:[#allocation2 + $0x2f8] sm:$0xff] }
  0xa3   : > { %1266 = vmatpush1.bf16.msra.mxu0 %v2290_v8  ;;  %1379 = vmatpush1.bf16.msra.mxu1 %v2292_v9  ;;  %v485_v8 = vld [vmem:[#allocation2 + $0x100] sm:$0xff] }
  0xa4   : > { %1267 = vmatprep.subr.bf16.mxu0 %v2283_v10  ;;  %1380 = vmatprep.subr.bf16.mxu1 %v2285_v12 }
  0xa5   : > { %1092 = vmatmul.mubr.bf16.gmra.mxu0 %v2385_v11  ;;  %1205 = vmatmul.mubr.bf16.gmra.mxu1 %v2385_v11 }
  0xa6   : > { %1101 = vmatprep.mubr.bf16.mxu0 %v2431_v25  ;;  %1214 = vmatprep.mubr.bf16.mxu1 %v2431_v25 }
  0xa7   : > { %1268 = vmatpush1.bf16.msra.mxu0 %v2282_v17  ;;  %1381 = vmatpush1.bf16.msra.mxu1 %v2284_v18  ;;  %v488_v17 = vld [vmem:[#allocation2 + $0x3e0] sm:$0xff] }
  0xa8   : > { %1269 = vmatprep.subr.bf16.mxu0 %v2275_v19  ;;  %1382 = vmatprep.subr.bf16.mxu1 %v2277_v20  ;;  %v493_v20 = vld [vmem:[#allocation2 + $0x2a0] sm:$0xff] }
  0xab   : > { %1270 = vmatpush1.bf16.msra.mxu0 %v2274_v21  ;;  %1383 = vmatpush1.bf16.msra.mxu1 %v2276_v22 }
  0xad   : > { %1102 = vmatmul.mubr.bf16.gmra.mxu0 %v2386_v23  ;;  %1215 = vmatmul.mubr.bf16.gmra.mxu1 %v2386_v23 }
  0xae   : > { %1111 = vmatprep.mubr.bf16.mxu0 %v2431_v25  ;;  %1224 = vmatprep.mubr.bf16.mxu1 %v2431_v25 }
  0xb5   : > { %1112 = vmatmul.mubr.bf16.gmra.mxu0 %v2387_v26  ;;  %1225 = vmatmul.mubr.bf16.gmra.mxu1 %v2387_v26 }
  0xb6   : > { %1121 = vmatprep.mubr.bf16.mxu0 %v2431_v25  ;;  %1234 = vmatprep.mubr.bf16.mxu1 %v2431_v25 }
  0xbd   : > { %1122 = vmatmul.mubr.bf16.gmra.mxu0 %v2388_v27  ;;  %1235 = vmatmul.mubr.bf16.gmra.mxu1 %v2388_v27 }
  0xbe   : > { %1131 = vmatprep.mubr.bf16.mxu0 %v2431_v25  ;;  %1244 = vmatprep.mubr.bf16.mxu1 %v2431_v25 }
  0xc5   : > { %1132 = vmatmul.mubr.bf16.gmra.mxu0 %v2389_v28  ;;  %1245 = vmatmul.mubr.bf16.gmra.mxu1 %v2389_v28 }
  0xc6   : > { %1287 = vmatprep.mubr.bf16.mxu0 %v2431_v25  ;;  %1400 = vmatprep.mubr.bf16.mxu1 %v2431_v25 }
  0xcd   : > { %1288 = vmatmul.mubr.bf16.vlgmr.msra.gmra.mxu0 %v2692_v24  ;;  %1401 = vmatmul.mubr.bf16.vlgmr.msra.gmra.mxu1 %v2692_v24  ;;  %v453_v24 = vld [vmem:[#allocation2 + $0x2b0] sm:$0xff] }
  0xce   : > { %1297 = vmatprep.mubr.bf16.mxu0 %v2431_v25  ;;  %1410 = vmatprep.mubr.bf16.mxu1 %v2431_v25 }
  0xd5   : > { %1298 = vmatmul.mubr.bf16.gmra.mxu0 %v2707_v42  ;;  %1411 = vmatmul.mubr.bf16.gmra.mxu1 %v2707_v42 }
  0xd6   : > { %1307 = vmatprep.mubr.bf16.mxu0 %v2431_v25  ;;  %1420 = vmatprep.mubr.bf16.mxu1 %v2431_v25 }
  0xdd   : > { %1308 = vmatmul.mubr.bf16.gmra.mxu0 %v2722_v58  ;;  %1421 = vmatmul.mubr.bf16.gmra.mxu1 %v2722_v58 }
  0xde   : > { %1317 = vmatprep.mubr.bf16.mxu0 %v2431_v25  ;;  %1430 = vmatprep.mubr.bf16.mxu1 %v2431_v25 }
  0xe5   : > { %1318 = vmatmul.mubr.bf16.gmra.mxu0 %v2385_v11  ;;  %1431 = vmatmul.mubr.bf16.gmra.mxu1 %v2385_v11  ;;  %v487_v11 = vld [vmem:[#allocation2 + $0x158] sm:$0xff] }
  0xe6   : > { %1327 = vmatprep.mubr.bf16.mxu0 %v2431_v25  ;;  %1440 = vmatprep.mubr.bf16.mxu1 %v2431_v25 }
  0xed   : > { %1328 = vmatmul.mubr.bf16.gmra.mxu0 %v2386_v23  ;;  %1441 = vmatmul.mubr.bf16.gmra.mxu1 %v2386_v23  ;;  %v495_v23 = vld [vmem:[#allocation2 + $0xa0] sm:$0xff] }
  0xee   : > { %1337 = vmatprep.mubr.bf16.mxu0 %v2431_v25  ;;  %1450 = vmatprep.mubr.bf16.mxu1 %v2431_v25 }
  0xf5   : > { %1338 = vmatmul.mubr.bf16.gmra.mxu0 %v2387_v26  ;;  %1451 = vmatmul.mubr.bf16.gmra.mxu1 %v2387_v26 }
  0xf6   : > { %1347 = vmatprep.mubr.bf16.mxu0 %v2431_v25  ;;  %1460 = vmatprep.mubr.bf16.mxu1 %v2431_v25 }
  0xfd   : > { %1348 = vmatmul.mubr.bf16.gmra.mxu0 %v2388_v27  ;;  %1461 = vmatmul.mubr.bf16.gmra.mxu1 %v2388_v27 }
  0xfe   : > { %1357 = vmatprep.mubr.bf16.mxu0 %v2431_v25  ;;  %1470 = vmatprep.mubr.bf16.mxu1 %v2431_v25  ;;  %v462_v25 = vld [vmem:[#allocation2 + $0x110] sm:$0xff] }
 0x105   : > { %1358 = vmatmul.mubr.bf16.gmra.mxu0 %v2389_v28  ;;  %1471 = vmatmul.mubr.bf16.gmra.mxu1 %v2389_v28  ;;  %v494_v28 = vld [vmem:[#allocation2 + $0x3f0] sm:$0xff] }
 0x14d   : > { %v1063_v30 = vpop.f32.mrf.mxu0  ;;  %v1176_v33 = vpop.f32.mrf.mxu1 }
 0x14e   : > { %v1481_v32 = vadd.f32 %v1063_v30, %v453_v24  ;;  %v1483_v35 = vadd.f32 %v1176_v33, %v455_v29  ;;  %v496_v30 = vld [vmem:[#allocation2 + $0x2c0] sm:$0xff]  ;;  %v501_v33 = vld [vmem:[#allocation2 + $0x230] sm:$0xff] }
 0x14f   : > { %v1065_v36 = vpop.f32.mrf.mxu0  ;;  %v1178_v39 = vpop.f32.mrf.mxu1 }
 0x150   : > { %1609 = vst [vmem:[#allocation2 + $0x2b0] sm:$0xff] %v1481_v32  ;;  %v1482_v38 = vadd.f32 %v1065_v36, %v454_v31  ;;  %1611 = vst [vmem:[#allocation2 + $0xd8] sm:$0xff] %v1483_v35  ;;  %v1484_v41 = vadd.f32 %v1178_v39, %v456_v34  ;;  %v503_v36 = vld [vmem:[#allocation2 + $0x90] sm:$0xff]  ;;  %v502_v39 = vld [vmem:[#allocation2 + $0x240] sm:$0xff] }
 0x151   : > { %v1067_v42 = vpop.f32.mrf.mxu0  ;;  %v1180_v44 = vpop.f32.mrf.mxu1 }
 0x152   : > { %1610 = vst [vmem:[#allocation2 + $0x3b0] sm:$0xff] %v1482_v38  ;;  %v1489_v43 = vadd.f32 %v1067_v42, %v461_v37  ;;  %1612 = vst [vmem:[#allocation2 + $0x18] sm:$0xff] %v1484_v41  ;;  %v1491_v46 = vadd.f32 %v1180_v44, %v463_v40  ;;  %v504_v42 = vld [vmem:[#allocation2 + $0x3a0] sm:$0xff]  ;;  %v509_v44 = vld [vmem:[#allocation2 + $0x358] sm:$0xff] }
 0x153   : > { %v1069_v47 = vpop.f32.mrf.mxu0  ;;  %v1182_v50 = vpop.f32.mrf.mxu1 }
 0x154   : > { %1617 = vst [vmem:[#allocation2 + $0x380] sm:$0xff] %v1489_v43  ;;  %v1490_v49 = vadd.f32 %v1069_v47, %v462_v25  ;;  %1619 = vst [vmem:[#allocation2 + $0x118] sm:$0xff] %v1491_v46  ;;  %v1492_v52 = vadd.f32 %v1182_v50, %v464_v45  ;;  %v511_v47 = vld [vmem:[#allocation2 + $0x350] sm:$0xff]  ;;  %v510_v50 = vld [vmem:[#allocation2 + $0x268] sm:$0xff] }
 0x155   : > { %v1073_v53 = vpop.f32.mrf.mxu0  ;;  %v1186_v56 = vpop.f32.mrf.mxu1 }
 0x156   : > { %1618 = vst [vmem:[#allocation2 + $0x110] sm:$0xff] %v1490_v49  ;;  %v1497_v55 = vadd.f32 %v1073_v53, %v469_v48  ;;  %1620 = vst [vmem:[#allocation2 + $0x98] sm:$0xff] %v1492_v52  ;;  %v1499_v58 = vadd.f32 %v1186_v56, %v471_v51  ;;  %v512_v53 = vld [vmem:[#allocation2 + $0x188] sm:$0xff]  ;;  %v517_v56 = vld [vmem:[#allocation2 + $0x130] sm:$0xff] }
 0x157   : > { %v1075_v59 = vpop.f32.mrf.mxu0  ;;  %v1188_v62 = vpop.f32.mrf.mxu1 }
 0x158   : > { %1625 = vst [vmem:[#allocation2 + $0x2e0] sm:$0xff] %v1497_v55  ;;  %v1498_v61 = vadd.f32 %v1075_v59, %v470_v54  ;;  %1627 = vst [vmem:[#allocation2 + $0x338] sm:$0xff] %v1499_v58  ;;  %v1500_v0 = vadd.f32 %v1188_v62, %v472_v57  ;;  %v519_v59 = vld [vmem:[#allocation2 + $0x318] sm:$0xff]  ;;  %v518_v62 = vld [vmem:[#allocation2 + $0x200] sm:$0xff] }
 0x159   : > { %v1077_v1 = vpop.f32.mrf.mxu0  ;;  %v1190_v4 = vpop.f32.mrf.mxu1 }
 0x15a   : > { %1626 = vst [vmem:[#allocation2 + $0x388] sm:$0xff] %v1498_v61  ;;  %v1505_v3 = vadd.f32 %v1077_v1, %v477_v60  ;;  %1628 = vst [vmem:[#allocation2 + $0x340] sm:$0xff] %v1500_v0  ;;  %v1507_v6 = vadd.f32 %v1190_v4, %v479_v63  ;;  %v520_v1 = vld [vmem:[#allocation2 + $0x220] sm:$0xff]  ;;  %v525_v4 = vld [vmem:[#allocation2 + $0x328] sm:$0xff] }
 0x15b   : > { %v1079_v7 = vpop.f32.mrf.mxu0  ;;  %v1192_v10 = vpop.f32.mrf.mxu1 }
 0x15c   : > { %1633 = vst [vmem:[#allocation2 + $0x3e8] sm:$0xff] %v1505_v3  ;;  %v1506_v9 = vadd.f32 %v1079_v7, %v478_v2  ;;  %1635 = vst [vmem:[#allocation2 + $0x290] sm:$0xff] %v1507_v6  ;;  %v1508_v12 = vadd.f32 %v1192_v10, %v480_v5  ;;  %v527_v7 = vld [vmem:[#allocation2 + $0x3b8] sm:$0xff]  ;;  %v526_v10 = vld [vmem:[#allocation2 + $0x260] sm:$0xff] }
 0x15d   : > { %v1083_v13 = vpop.f32.mrf.mxu0  ;;  %v1196_v16 = vpop.f32.mrf.mxu1 }
 0x15e   : > { %1634 = vst [vmem:[#allocation2 + $0x2f8] sm:$0xff] %v1506_v9  ;;  %v1513_v15 = vadd.f32 %v1083_v13, %v485_v8  ;;  %1636 = vst [vmem:[#allocation2 + $0x28] sm:$0xff] %v1508_v12  ;;  %v1515_v18 = vadd.f32 %v1196_v16, %v487_v11  ;;  %v528_v13 = vld [vmem:[#allocation2 + $0x2b8] sm:$0xff]  ;;  %v533_v16 = vld [vmem:[#allocation2 + $0x288] sm:$0xff] }
 0x15f   : > { %v1085_v19 = vpop.f32.mrf.mxu0  ;;  %v1198_v22 = vpop.f32.mrf.mxu1 }
 0x160   : > { %1641 = vst [vmem:[#allocation2 + $0x100] sm:$0xff] %v1513_v15  ;;  %v1514_v21 = vadd.f32 %v1085_v19, %v486_v14  ;;  %1643 = vst [vmem:[#allocation2 + $0x158] sm:$0xff] %v1515_v18  ;;  %v1516_v26 = vadd.f32 %v1198_v22, %v488_v17  ;;  %v535_v19 = vld [vmem:[#allocation2 + $0x3c8] sm:$0xff] }
 0x161   : > { %v1087_v27 = vpop.f32.mrf.mxu0  ;;  %v1200_v29 = vpop.f32.mrf.mxu1  ;;  %v534_v22 = vld [vmem:[#allocation2 + $0x3a8] sm:$0xff] }
 0x162   : > { %1642 = vst [vmem:[#allocation2 + $0x3c0] sm:$0xff] %v1514_v21  ;;  %v1521_v24 = vadd.f32 %v1087_v27, %v493_v20  ;;  %1644 = vst [vmem:[#allocation2 + $0x3e0] sm:$0xff] %v1516_v26  ;;  %v1523_v31 = vadd.f32 %v1200_v29, %v495_v23  ;;  %v536_v27 = vld [vmem:[#allocation2 + $0x160] sm:$0xff]  ;;  %v541_v29 = vld [vmem:[#allocation2 + $0x1b0] sm:$0xff] }
 0x163   : > { %v1089_v32 = vpop.f32.mrf.mxu0  ;;  %v1202_v35 = vpop.f32.mrf.mxu1 }
 0x164   : > { %1649 = vst [vmem:[#allocation2 + $0x2a0] sm:$0xff] %v1521_v24  ;;  %v1522_v34 = vadd.f32 %v1089_v32, %v494_v28  ;;  %1651 = vst [vmem:[#allocation2 + $0xa0] sm:$0xff] %v1523_v31  ;;  %v1524_v37 = vadd.f32 %v1202_v35, %v496_v30  ;;  %v543_v32 = vld [vmem:[#allocation2 + $0x2d0] sm:$0xff]  ;;  %v542_v35 = vld [vmem:[#allocation2 + $0x1c8] sm:$0xff] }
 0x165   : > { %v1093_v38 = vpop.f32.mrf.mxu0  ;;  %v1206_v41 = vpop.f32.mrf.mxu1 }
 0x166   : > { %1650 = vst [vmem:[#allocation2 + $0x3f0] sm:$0xff] %v1522_v34  ;;  %v1529_v40 = vadd.f32 %v1093_v38, %v501_v33  ;;  %1652 = vst [vmem:[#allocation2 + $0x2c0] sm:$0xff] %v1524_v37  ;;  %v1531_v25 = vadd.f32 %v1206_v41, %v503_v36  ;;  %v544_v38 = vld [vmem:[#allocation2 + $0x1d0] sm:$0xff]  ;;  %v549_v41 = vld [vmem:[#allocation2 + $0x1f8] sm:$0xff] }
 0x167   : > { %v1095_v43 = vpop.f32.mrf.mxu0  ;;  %v1208_v46 = vpop.f32.mrf.mxu1 }
 0x168   : > { %1657 = vst [vmem:[#allocation2 + $0x230] sm:$0xff] %v1529_v40  ;;  %v1530_v45 = vadd.f32 %v1095_v43, %v502_v39  ;;  %1659 = vst [vmem:[#allocation2 + $0x90] sm:$0xff] %v1531_v25  ;;  %v1532_v48 = vadd.f32 %v1208_v46, %v504_v42  ;;  %v551_v43 = vld [vmem:[#allocation2 + $0x398] sm:$0xff] }
 0x169   : > { %v1097_v49 = vpop.f32.mrf.mxu0  ;;  %v1210_v52 = vpop.f32.mrf.mxu1  ;;  %v550_v46 = vld [vmem:[#allocation2 + $0x238] sm:$0xff] }
 0x16a   : > { %1658 = vst [vmem:[#allocation2 + $0x240] sm:$0xff] %v1530_v45  ;;  %v1537_v51 = vadd.f32 %v1097_v49, %v509_v44  ;;  %1660 = vst [vmem:[#allocation2 + $0x3a0] sm:$0xff] %v1532_v48  ;;  %v1539_v54 = vadd.f32 %v1210_v52, %v511_v47  ;;  %v552_v49 = vld [vmem:[#allocation2 + $0x390] sm:$0xff] }
 0x16b   : > { %v1099_v55 = vpop.f32.mrf.mxu0  ;;  %v1212_v58 = vpop.f32.mrf.mxu1  ;;  %v557_v52 = vld [vmem:[#allocation2 + $0xf0] sm:$0xff] }
 0x16c   : > { %1665 = vst [vmem:[#allocation2 + $0x358] sm:$0xff] %v1537_v51  ;;  %v1538_v57 = vadd.f32 %v1099_v55, %v510_v50  ;;  %1667 = vst [vmem:[#allocation2 + $0x350] sm:$0xff] %v1539_v54  ;;  %v1540_v60 = vadd.f32 %v1212_v58, %v512_v53  ;;  %v559_v55 = vld [vmem:[#allocation2 + $0x170] sm:$0xff]  ;;  %v558_v58 = vld [vmem:[#allocation2 + $0x180] sm:$0xff] }
 0x16d   : > { %v1103_v61 = vpop.f32.mrf.mxu0  ;;  %v1216_v0 = vpop.f32.mrf.mxu1 }
 0x16e   : > { %1666 = vst [vmem:[#allocation2 + $0x268] sm:$0xff] %v1538_v57  ;;  %v1545_v63 = vadd.f32 %v1103_v61, %v517_v56  ;;  %1668 = vst [vmem:[#allocation2 + $0x188] sm:$0xff] %v1540_v60  ;;  %v1547_v2 = vadd.f32 %v1216_v0, %v519_v59  ;;  %v560_v61 = vld [vmem:[#allocation2 + $0x3d0] sm:$0xff]  ;;  %v565_v0 = vld [vmem:[#allocation2 + $0x78] sm:$0xff] }
 0x16f   : > { %v1105_v3 = vpop.f32.mrf.mxu0  ;;  %v1218_v6 = vpop.f32.mrf.mxu1 }
 0x170   : > { %1673 = vst [vmem:[#allocation2 + $0x130] sm:$0xff] %v1545_v63  ;;  %v1546_v5 = vadd.f32 %v1105_v3, %v518_v62  ;;  %1675 = vst [vmem:[#allocation2 + $0x318] sm:$0xff] %v1547_v2  ;;  %v1548_v8 = vadd.f32 %v1218_v6, %v520_v1  ;;  %v567_v3 = vld [vmem:[#allocation2 + $0x370] sm:$0xff]  ;;  %v566_v6 = vld [vmem:[#allocation2 + $0x308] sm:$0xff] }
 0x171   : > { %v1107_v9 = vpop.f32.mrf.mxu0  ;;  %v1220_v12 = vpop.f32.mrf.mxu1 }
 0x172   : > { %1674 = vst [vmem:[#allocation2 + $0x200] sm:$0xff] %v1546_v5  ;;  %v1553_v11 = vadd.f32 %v1107_v9, %v525_v4  ;;  %1676 = vst [vmem:[#allocation2 + $0x220] sm:$0xff] %v1548_v8  ;;  %v1555_v14 = vadd.f32 %v1220_v12, %v527_v7  ;;  %v568_v9 = vld [vmem:[#allocation2 + $0xc8] sm:$0xff] }
 0x173   : > { %v1109_v15 = vpop.f32.mrf.mxu0  ;;  %v1222_v18 = vpop.f32.mrf.mxu1  ;;  %v573_v12 = vld [vmem:[#allocation2 + $0x148] sm:$0xff] }
 0x174   : > { %1681 = vst [vmem:[#allocation2 + $0x328] sm:$0xff] %v1553_v11  ;;  %v1554_v17 = vadd.f32 %v1109_v15, %v526_v10  ;;  %1683 = vst [vmem:[#allocation2 + $0x3b8] sm:$0xff] %v1555_v14  ;;  %v1556_v20 = vadd.f32 %v1222_v18, %v528_v13  ;;  %v575_v15 = vld [vmem:[#allocation2 + $0x68] sm:$0xff]  ;;  %v574_v18 = vld [vmem:[#allocation2 + $0xf8] sm:$0xff] }
 0x175   : > { %v1113_v21 = vpop.f32.mrf.mxu0  ;;  %v1226_v26 = vpop.f32.mrf.mxu1 }
 0x176   : > { %1682 = vst [vmem:[#allocation2 + $0x260] sm:$0xff] %v1554_v17  ;;  %v1561_v23 = vadd.f32 %v1113_v21, %v533_v16  ;;  %1684 = vst [vmem:[#allocation2 + $0x2b8] sm:$0xff] %v1556_v20  ;;  %v1563_v28 = vadd.f32 %v1226_v26, %v535_v19  ;;  %v576_v21 = vld [vmem:[#allocation2] sm:$0xff]  ;;  %v457_v26 = vld [vmem:[#allocation2 + $0x50] sm:$0xff] }
 0x177   : > { %v1115_v24 = vpop.f32.mrf.mxu0  ;;  %v1228_v31 = vpop.f32.mrf.mxu1 }
 0x178   : > { %1689 = vst [vmem:[#allocation2 + $0x288] sm:$0xff] %v1561_v23  ;;  %v1562_v30 = vadd.f32 %v1115_v24, %v534_v22  ;;  %1691 = vst [vmem:[#allocation2 + $0x3c8] sm:$0xff] %v1563_v28  ;;  %v1564_v33 = vadd.f32 %v1228_v31, %v536_v27  ;;  %v459_v24 = vld [vmem:[#allocation2 + $0x330] sm:$0xff]  ;;  %v458_v31 = vld [vmem:[#allocation2 + $0x368] sm:$0xff] }
 0x179   : > { %v1117_v34 = vpop.f32.mrf.mxu0  ;;  %v1230_v37 = vpop.f32.mrf.mxu1 }
 0x17a   : > { %1690 = vst [vmem:[#allocation2 + $0x3a8] sm:$0xff] %v1562_v30  ;;  %v1569_v36 = vadd.f32 %v1117_v34, %v541_v29  ;;  %1692 = vst [vmem:[#allocation2 + $0x160] sm:$0xff] %v1564_v33  ;;  %v1571_v39 = vadd.f32 %v1230_v37, %v543_v32  ;;  %v460_v34 = vld [vmem:[#allocation2 + $0x48] sm:$0xff]  ;;  %v465_v37 = vld [vmem:[#allocation2 + $0x320] sm:$0xff] }
 0x17b   : > { %v1119_v40 = vpop.f32.mrf.mxu0  ;;  %v1232_v25 = vpop.f32.mrf.mxu1 }
 0x17c   : > { %1697 = vst [vmem:[#allocation2 + $0x1b0] sm:$0xff] %v1569_v36  ;;  %v1570_v42 = vadd.f32 %v1119_v40, %v542_v35  ;;  %1699 = vst [vmem:[#allocation2 + $0x2d0] sm:$0xff] %v1571_v39  ;;  %v1572_v44 = vadd.f32 %v1232_v25, %v544_v38  ;;  %v467_v40 = vld [vmem:[#allocation2 + $0x108] sm:$0xff]  ;;  %v466_v25 = vld [vmem:[#allocation2 + $0x150] sm:$0xff] }
 0x17d   : > { %v1123_v45 = vpop.f32.mrf.mxu0  ;;  %v1236_v48 = vpop.f32.mrf.mxu1 }
 0x17e   : > { %1698 = vst [vmem:[#allocation2 + $0x1c8] sm:$0xff] %v1570_v42  ;;  %v1577_v47 = vadd.f32 %v1123_v45, %v549_v41  ;;  %1700 = vst [vmem:[#allocation2 + $0x1d0] sm:$0xff] %v1572_v44  ;;  %v1579_v50 = vadd.f32 %v1236_v48, %v551_v43  ;;  %v468_v45 = vld [vmem:[#allocation2 + $0x60] sm:$0xff] }
 0x17f   : > { %v1125_v51 = vpop.f32.mrf.mxu0  ;;  %v1238_v54 = vpop.f32.mrf.mxu1  ;;  %v473_v48 = vld [vmem:[#allocation2 + $0x80] sm:$0xff] }
 0x180   : > { %1705 = vst [vmem:[#allocation2 + $0x1f8] sm:$0xff] %v1577_v47  ;;  %v1578_v53 = vadd.f32 %v1125_v51, %v550_v46  ;;  %1707 = vst [vmem:[#allocation2 + $0x398] sm:$0xff] %v1579_v50  ;;  %v1580_v56 = vadd.f32 %v1238_v54, %v552_v49  ;;  %v475_v51 = vld [vmem:[#allocation2 + $0x1b8] sm:$0xff]  ;;  %v474_v54 = vld [vmem:[#allocation2 + $0x1a8] sm:$0xff] }
 0x181   : > { %v1127_v57 = vpop.f32.mrf.mxu0  ;;  %v1240_v60 = vpop.f32.mrf.mxu1 }
 0x182   : > { %1706 = vst [vmem:[#allocation2 + $0x238] sm:$0xff] %v1578_v53  ;;  %v1585_v59 = vadd.f32 %v1127_v57, %v557_v52  ;;  %1708 = vst [vmem:[#allocation2 + $0x390] sm:$0xff] %v1580_v56  ;;  %v1587_v62 = vadd.f32 %v1240_v60, %v559_v55  ;;  %v476_v57 = vld [vmem:[#allocation2 + $0x168] sm:$0xff]  ;;  %v481_v60 = vld [vmem:[#allocation2 + $0x138] sm:$0xff] }
 0x183   : > { %v1129_v63 = vpop.f32.mrf.mxu0  ;;  %v1242_v2 = vpop.f32.mrf.mxu1 }
 0x184   : > { %1713 = vst [vmem:[#allocation2 + $0xf0] sm:$0xff] %v1585_v59  ;;  %v1586_v1 = vadd.f32 %v1129_v63, %v558_v58  ;;  %1715 = vst [vmem:[#allocation2 + $0x170] sm:$0xff] %v1587_v62  ;;  %v1588_v4 = vadd.f32 %v1242_v2, %v560_v61  ;;  %v483_v63 = vld [vmem:[#allocation2 + $0x1c0] sm:$0xff] }
 0x185   : > { %v1133_v5 = vpop.f32.mrf.mxu0  ;;  %v1246_v8 = vpop.f32.mrf.mxu1  ;;  %v482_v2 = vld [vmem:[#allocation2 + $0xc0] sm:$0xff] }
 0x186   : > { %1714 = vst [vmem:[#allocation2 + $0x180] sm:$0xff] %v1586_v1  ;;  %v1593_v7 = vadd.f32 %v1133_v5, %v565_v0  ;;  %1716 = vst [vmem:[#allocation2 + $0x3d0] sm:$0xff] %v1588_v4  ;;  %v1595_v10 = vadd.f32 %v1246_v8, %v567_v3  ;;  %v484_v5 = vld [vmem:[#allocation2 + $0x280] sm:$0xff]  ;;  %v489_v8 = vld [vmem:[#allocation2 + $0x218] sm:$0xff] }
 0x187   : > { %v1135_v11 = vpop.f32.mrf.mxu0  ;;  %v1248_v14 = vpop.f32.mrf.mxu1 }
 0x188   : > { %1721 = vst [vmem:[#allocation2 + $0x78] sm:$0xff] %v1593_v7  ;;  %v1594_v13 = vadd.f32 %v1135_v11, %v566_v6  ;;  %1723 = vst [vmem:[#allocation2 + $0x370] sm:$0xff] %v1595_v10  ;;  %v1596_v16 = vadd.f32 %v1248_v14, %v568_v9  ;;  %v491_v11 = vld [vmem:[#allocation2 + $0x8] sm:$0xff]  ;;  %v490_v14 = vld [vmem:[#allocation2 + $0x3f8] sm:$0xff] }
 0x189   : > { %v1137_v17 = vpop.f32.mrf.mxu0  ;;  %v1250_v20 = vpop.f32.mrf.mxu1 }
 0x18a   : > { %1722 = vst [vmem:[#allocation2 + $0x308] sm:$0xff] %v1594_v13  ;;  %v1601_v19 = vadd.f32 %v1137_v17, %v573_v12  ;;  %1724 = vst [vmem:[#allocation2 + $0xc8] sm:$0xff] %v1596_v16  ;;  %v1603_v22 = vadd.f32 %v1250_v20, %v575_v15  ;;  %v492_v17 = vld [vmem:[#allocation2 + $0x128] sm:$0xff]  ;;  %v497_v20 = vld [vmem:[#allocation2 + $0xb0] sm:$0xff] }
 0x18b   : > { %v1139_v23 = vpop.f32.mrf.mxu0  ;;  %v1252_v28 = vpop.f32.mrf.mxu1 }
 0x18c   : > { %1729 = vst [vmem:[#allocation2 + $0x148] sm:$0xff] %v1601_v19  ;;  %v1602_v27 = vadd.f32 %v1139_v23, %v574_v18  ;;  %1731 = vst [vmem:[#allocation2 + $0x68] sm:$0xff] %v1603_v22  ;;  %v1604_v29 = vadd.f32 %v1252_v28, %v576_v21  ;;  %v499_v23 = vld [vmem:[#allocation2 + $0x1f0] sm:$0xff]  ;;  %v498_v28 = vld [vmem:[#allocation2 + $0x1e0] sm:$0xff] }
 0x18d   : > { %v1289_v30 = vpop.f32.mrf.mxu0  ;;  %v1402_v33 = vpop.f32.mrf.mxu1 }
 0x18e   : > { %1730 = vst [vmem:[#allocation2 + $0xf8] sm:$0xff] %v1602_v27  ;;  %v1485_v32 = vadd.f32 %v1289_v30, %v457_v26  ;;  %1732 = vst [vmem:[#allocation2] sm:$0xff] %v1604_v29  ;;  %v1487_v35 = vadd.f32 %v1402_v33, %v459_v24  ;;  %v500_v30 = vld [vmem:[#allocation2 + $0x10] sm:$0xff]  ;;  %v505_v33 = vld [vmem:[#allocation2 + $0x208] sm:$0xff] }
 0x18f   : > { %v1291_v36 = vpop.f32.mrf.mxu0  ;;  %v1404_v39 = vpop.f32.mrf.mxu1 }
 0x190   : > { %1613 = vst [vmem:[#allocation2 + $0x50] sm:$0xff] %v1485_v32  ;;  %v1486_v38 = vadd.f32 %v1291_v36, %v458_v31  ;;  %1615 = vst [vmem:[#allocation2 + $0x330] sm:$0xff] %v1487_v35  ;;  %v1488_v41 = vadd.f32 %v1404_v39, %v460_v34  ;;  %v507_v36 = vld [vmem:[#allocation2 + $0x88] sm:$0xff]  ;;  %v506_v39 = vld [vmem:[#allocation2 + $0xd0] sm:$0xff] }
 0x191   : > { %v1293_v42 = vpop.f32.mrf.mxu0  ;;  %v1406_v44 = vpop.f32.mrf.mxu1 }
 0x192   : > { %1614 = vst [vmem:[#allocation2 + $0x368] sm:$0xff] %v1486_v38  ;;  %v1493_v43 = vadd.f32 %v1293_v42, %v465_v37  ;;  %1616 = vst [vmem:[#allocation2 + $0x48] sm:$0xff] %v1488_v41  ;;  %v1495_v46 = vadd.f32 %v1406_v44, %v467_v40  ;;  %v508_v42 = vld [vmem:[#allocation2 + $0x2f0] sm:$0xff]  ;;  %v513_v44 = vld [vmem:[#allocation2 + $0x1d8] sm:$0xff] }
 0x193   : > { %v1295_v47 = vpop.f32.mrf.mxu0  ;;  %v1408_v50 = vpop.f32.mrf.mxu1 }
 0x194   : > { %1621 = vst [vmem:[#allocation2 + $0x320] sm:$0xff] %v1493_v43  ;;  %v1494_v49 = vadd.f32 %v1295_v47, %v466_v25  ;;  %1623 = vst [vmem:[#allocation2 + $0x108] sm:$0xff] %v1495_v46  ;;  %v1496_v52 = vadd.f32 %v1408_v50, %v468_v45  ;;  %v515_v47 = vld [vmem:[#allocation2 + $0x140] sm:$0xff]  ;;  %v514_v50 = vld [vmem:[#allocation2 + $0x30] sm:$0xff] }
 0x195   : > { %v1299_v53 = vpop.f32.mrf.mxu0  ;;  %v1412_v56 = vpop.f32.mrf.mxu1 }
 0x196   : > { %1622 = vst [vmem:[#allocation2 + $0x150] sm:$0xff] %v1494_v49  ;;  %v1501_v55 = vadd.f32 %v1299_v53, %v473_v48  ;;  %1624 = vst [vmem:[#allocation2 + $0x60] sm:$0xff] %v1496_v52  ;;  %v1503_v58 = vadd.f32 %v1412_v56, %v475_v51  ;;  %v516_v53 = vld [vmem:[#allocation2 + $0x2a8] sm:$0xff]  ;;  %v521_v56 = vld [vmem:[#allocation2 + $0x70] sm:$0xff] }
 0x197   : > { %v1301_v59 = vpop.f32.mrf.mxu0  ;;  %v1414_v62 = vpop.f32.mrf.mxu1 }
 0x198   : > { %1629 = vst [vmem:[#allocation2 + $0x80] sm:$0xff] %v1501_v55  ;;  %v1502_v61 = vadd.f32 %v1301_v59, %v474_v54  ;;  %1631 = vst [vmem:[#allocation2 + $0x1b8] sm:$0xff] %v1503_v58  ;;  %v1504_v0 = vadd.f32 %v1414_v62, %v476_v57  ;;  %v523_v59 = vld [vmem:[#allocation2 + $0xe0] sm:$0xff] }
 0x199   : > { %v1303_v1 = vpop.f32.mrf.mxu0  ;;  %v1416_v4 = vpop.f32.mrf.mxu1  ;;  %v522_v62 = vld [vmem:[#allocation2 + $0x300] sm:$0xff] }
 0x19a   : > { %1630 = vst [vmem:[#allocation2 + $0x1a8] sm:$0xff] %v1502_v61  ;;  %v1509_v3 = vadd.f32 %v1303_v1, %v481_v60  ;;  %1632 = vst [vmem:[#allocation2 + $0x168] sm:$0xff] %v1504_v0  ;;  %v1511_v6 = vadd.f32 %v1416_v4, %v483_v63  ;;  %v524_v1 = vld [vmem:[#allocation2 + $0x178] sm:$0xff]  ;;  %v529_v4 = vld [vmem:[#allocation2 + $0x248] sm:$0xff] }
 0x19b   : > { %v1305_v7 = vpop.f32.mrf.mxu0  ;;  %v1418_v10 = vpop.f32.mrf.mxu1 }
 0x19c   : > { %1637 = vst [vmem:[#allocation2 + $0x138] sm:$0xff] %v1509_v3  ;;  %v1510_v9 = vadd.f32 %v1305_v7, %v482_v2  ;;  %1639 = vst [vmem:[#allocation2 + $0x1c0] sm:$0xff] %v1511_v6  ;;  %v1512_v12 = vadd.f32 %v1418_v10, %v484_v5  ;;  %v531_v7 = vld [vmem:[#allocation2 + $0x20] sm:$0xff] }
 0x19d   : > { %v1309_v13 = vpop.f32.mrf.mxu0  ;;  %v1422_v16 = vpop.f32.mrf.mxu1  ;;  %v530_v10 = vld [vmem:[#allocation2 + $0x40] sm:$0xff] }
 0x19e   : > { %1638 = vst [vmem:[#allocation2 + $0xc0] sm:$0xff] %v1510_v9  ;;  %v1517_v15 = vadd.f32 %v1309_v13, %v489_v8  ;;  %1640 = vst [vmem:[#allocation2 + $0x280] sm:$0xff] %v1512_v12  ;;  %v1519_v18 = vadd.f32 %v1422_v16, %v491_v11  ;;  %v532_v13 = vld [vmem:[#allocation2 + $0xe8] sm:$0xff] }
 0x19f   : > { %v1311_v19 = vpop.f32.mrf.mxu0  ;;  %v1424_v22 = vpop.f32.mrf.mxu1  ;;  %v537_v16 = vld [vmem:[#allocation2 + $0x2c8] sm:$0xff] }
 0x1a0   : > { %1645 = vst [vmem:[#allocation2 + $0x218] sm:$0xff] %v1517_v15  ;;  %v1518_v21 = vadd.f32 %v1311_v19, %v490_v14  ;;  %1647 = vst [vmem:[#allocation2 + $0x8] sm:$0xff] %v1519_v18  ;;  %v1520_v26 = vadd.f32 %v1424_v22, %v492_v17  ;;  %v539_v19 = vld [vmem:[#allocation2 + $0x3d8] sm:$0xff]  ;;  %v538_v22 = vld [vmem:[#allocation2 + $0x210] sm:$0xff] }
 0x1a1   : > { %v1313_v27 = vpop.f32.mrf.mxu0  ;;  %v1426_v29 = vpop.f32.mrf.mxu1 }
 0x1a2   : > { %1646 = vst [vmem:[#allocation2 + $0x3f8] sm:$0xff] %v1518_v21  ;;  %v1525_v24 = vadd.f32 %v1313_v27, %v497_v20  ;;  %1648 = vst [vmem:[#allocation2 + $0x128] sm:$0xff] %v1520_v26  ;;  %v1527_v31 = vadd.f32 %v1426_v29, %v499_v23  ;;  %v540_v27 = vld [vmem:[#allocation2 + $0x1e8] sm:$0xff]  ;;  %v545_v29 = vld [vmem:[#allocation2 + $0x58] sm:$0xff] }
 0x1a3   : > { %v1315_v32 = vpop.f32.mrf.mxu0  ;;  %v1428_v35 = vpop.f32.mrf.mxu1 }
 0x1a4   : > { %1653 = vst [vmem:[#allocation2 + $0xb0] sm:$0xff] %v1525_v24  ;;  %v1526_v34 = vadd.f32 %v1315_v32, %v498_v28  ;;  %1655 = vst [vmem:[#allocation2 + $0x1f0] sm:$0xff] %v1527_v31  ;;  %v1528_v37 = vadd.f32 %v1428_v35, %v500_v30  ;;  %v547_v32 = vld [vmem:[#allocation2 + $0x198] sm:$0xff]  ;;  %v546_v35 = vld [vmem:[#allocation2 + $0x120] sm:$0xff] }
 0x1a5   : > { %v1319_v38 = vpop.f32.mrf.mxu0  ;;  %v1432_v41 = vpop.f32.mrf.mxu1 }
 0x1a6   : > { %1654 = vst [vmem:[#allocation2 + $0x1e0] sm:$0xff] %v1526_v34  ;;  %v1533_v40 = vadd.f32 %v1319_v38, %v505_v33  ;;  %1656 = vst [vmem:[#allocation2 + $0x10] sm:$0xff] %v1528_v37  ;;  %v1535_v25 = vadd.f32 %v1432_v41, %v507_v36  ;;  %v548_v38 = vld [vmem:[#allocation2 + $0x2e8] sm:$0xff]  ;;  %v553_v41 = vld [vmem:[#allocation2 + $0x1a0] sm:$0xff] }
 0x1a7   : > { %v1321_v43 = vpop.f32.mrf.mxu0  ;;  %v1434_v46 = vpop.f32.mrf.mxu1 }
 0x1a8   : > { %1661 = vst [vmem:[#allocation2 + $0x208] sm:$0xff] %v1533_v40  ;;  %v1534_v45 = vadd.f32 %v1321_v43, %v506_v39  ;;  %1663 = vst [vmem:[#allocation2 + $0x88] sm:$0xff] %v1535_v25  ;;  %v1536_v48 = vadd.f32 %v1434_v46, %v508_v42  ;;  %v555_v43 = vld [vmem:[#allocation2 + $0x258] sm:$0xff]  ;;  %v554_v46 = vld [vmem:[#allocation2 + $0xa8] sm:$0xff] }
 0x1a9   : > { %v1323_v49 = vpop.f32.mrf.mxu0  ;;  %v1436_v52 = vpop.f32.mrf.mxu1 }
 0x1aa   : > { %1662 = vst [vmem:[#allocation2 + $0xd0] sm:$0xff] %v1534_v45  ;;  %v1541_v51 = vadd.f32 %v1323_v49, %v513_v44  ;;  %1664 = vst [vmem:[#allocation2 + $0x2f0] sm:$0xff] %v1536_v48  ;;  %v1543_v54 = vadd.f32 %v1436_v52, %v515_v47  ;;  %v556_v49 = vld [vmem:[#allocation2 + $0x2d8] sm:$0xff]  ;;  %v561_v52 = vld [vmem:[#allocation2 + $0x250] sm:$0xff] }
 0x1ab   : > { %v1325_v55 = vpop.f32.mrf.mxu0  ;;  %v1438_v58 = vpop.f32.mrf.mxu1 }
 0x1ac   : > { %1669 = vst [vmem:[#allocation2 + $0x1d8] sm:$0xff] %v1541_v51  ;;  %v1542_v57 = vadd.f32 %v1325_v55, %v514_v50  ;;  %1671 = vst [vmem:[#allocation2 + $0x140] sm:$0xff] %v1543_v54  ;;  %v1544_v60 = vadd.f32 %v1438_v58, %v516_v53  ;;  %v563_v55 = vld [vmem:[#allocation2 + $0xb8] sm:$0xff] }
 0x1ad   : > { %v1329_v61 = vpop.f32.mrf.mxu0  ;;  %v1442_v0 = vpop.f32.mrf.mxu1  ;;  %v562_v58 = vld [vmem:[#allocation2 + $0x378] sm:$0xff] }
 0x1ae   : > { %1670 = vst [vmem:[#allocation2 + $0x30] sm:$0xff] %v1542_v57  ;;  %v1549_v63 = vadd.f32 %v1329_v61, %v521_v56  ;;  %1672 = vst [vmem:[#allocation2 + $0x2a8] sm:$0xff] %v1544_v60  ;;  %v1551_v2 = vadd.f32 %v1442_v0, %v523_v59  ;;  %v564_v61 = vld [vmem:[#allocation2 + $0x38] sm:$0xff] }
 0x1af   : > { %v1331_v3 = vpop.f32.mrf.mxu0  ;;  %v1444_v6 = vpop.f32.mrf.mxu1  ;;  %v569_v0 = vld [vmem:[#allocation2 + $0x278] sm:$0xff] }
 0x1b0   : > { %1677 = vst [vmem:[#allocation2 + $0x70] sm:$0xff] %v1549_v63  ;;  %v1550_v5 = vadd.f32 %v1331_v3, %v522_v62  ;;  %1679 = vst [vmem:[#allocation2 + $0xe0] sm:$0xff] %v1551_v2  ;;  %v1552_v8 = vadd.f32 %v1444_v6, %v524_v1  ;;  %v571_v3 = vld [vmem:[#allocation2 + $0x228] sm:$0xff]  ;;  %v570_v6 = vld [vmem:[#allocation2 + $0x360] sm:$0xff] }
 0x1b1   : > { %v1333_v9 = vpop.f32.mrf.mxu0  ;;  %v1446_v12 = vpop.f32.mrf.mxu1 }
 0x1b2   : > { %1678 = vst [vmem:[#allocation2 + $0x300] sm:$0xff] %v1550_v5  ;;  %v1557_v11 = vadd.f32 %v1333_v9, %v529_v4  ;;  %1680 = vst [vmem:[#allocation2 + $0x178] sm:$0xff] %v1552_v8  ;;  %v1559_v14 = vadd.f32 %v1446_v12, %v531_v7  ;;  %v572_v9 = vld [vmem:[#allocation2 + $0x348] sm:$0xff]  ;;  %v577_v12 = vld [vmem:[#allocation2 + $0x298] sm:$0xff] }
 0x1b3   : > { %v1335_v15 = vpop.f32.mrf.mxu0  ;;  %v1448_v18 = vpop.f32.mrf.mxu1 }
 0x1b4   : > { %1685 = vst [vmem:[#allocation2 + $0x248] sm:$0xff] %v1557_v11  ;;  %v1558_v17 = vadd.f32 %v1335_v15, %v530_v10  ;;  %1687 = vst [vmem:[#allocation2 + $0x20] sm:$0xff] %v1559_v14  ;;  %v1560_v20 = vadd.f32 %v1448_v18, %v532_v13  ;;  %v579_v15 = vld [vmem:[#allocation2 + $0x310] sm:$0xff] }
 0x1b5   : > { %v1339_v21 = vpop.f32.mrf.mxu0  ;;  %v1452_v26 = vpop.f32.mrf.mxu1  ;;  %v578_v18 = vld [vmem:[#allocation2 + $0x270] sm:$0xff] }
 0x1b6   : > { %1686 = vst [vmem:[#allocation2 + $0x40] sm:$0xff] %v1558_v17  ;;  %v1565_v23 = vadd.f32 %v1339_v21, %v537_v16  ;;  %1688 = vst [vmem:[#allocation2 + $0xe8] sm:$0xff] %v1560_v20  ;;  %v1567_v28 = vadd.f32 %v1452_v26, %v539_v19  ;;  %v580_v21 = vld [vmem:[#allocation2 + $0x190] sm:$0xff] }
 0x1b7   : > { %v1341_v24 = vpop.f32.mrf.mxu0  ;;  %v1454_v31 = vpop.f32.mrf.mxu1 }
 0x1b8   : > { %1693 = vst [vmem:[#allocation2 + $0x2c8] sm:$0xff] %v1565_v23  ;;  %v1566_v30 = vadd.f32 %v1341_v24, %v538_v22  ;;  %1695 = vst [vmem:[#allocation2 + $0x3d8] sm:$0xff] %v1567_v28  ;;  %v1568_v33 = vadd.f32 %v1454_v31, %v540_v27 }
 0x1b9   : > { %v1343_v34 = vpop.f32.mrf.mxu0  ;;  %v1456_v37 = vpop.f32.mrf.mxu1 }
 0x1ba   : > { %1694 = vst [vmem:[#allocation2 + $0x210] sm:$0xff] %v1566_v30  ;;  %v1573_v36 = vadd.f32 %v1343_v34, %v545_v29  ;;  %1696 = vst [vmem:[#allocation2 + $0x1e8] sm:$0xff] %v1568_v33  ;;  %v1575_v39 = vadd.f32 %v1456_v37, %v547_v32 }
 0x1bb   : > { %v1345_v40 = vpop.f32.mrf.mxu0  ;;  %v1458_v25 = vpop.f32.mrf.mxu1 }
 0x1bc   : > { %1701 = vst [vmem:[#allocation2 + $0x58] sm:$0xff] %v1573_v36  ;;  %v1574_v42 = vadd.f32 %v1345_v40, %v546_v35  ;;  %1703 = vst [vmem:[#allocation2 + $0x198] sm:$0xff] %v1575_v39  ;;  %v1576_v44 = vadd.f32 %v1458_v25, %v548_v38 }
 0x1bd   : > { %v1349_v45 = vpop.f32.mrf.mxu0  ;;  %v1462_v48 = vpop.f32.mrf.mxu1 }
 0x1be   : > { %1702 = vst [vmem:[#allocation2 + $0x120] sm:$0xff] %v1574_v42  ;;  %v1581_v47 = vadd.f32 %v1349_v45, %v553_v41  ;;  %1704 = vst [vmem:[#allocation2 + $0x2e8] sm:$0xff] %v1576_v44  ;;  %v1583_v50 = vadd.f32 %v1462_v48, %v555_v43 }
 0x1bf   : > { %v1351_v51 = vpop.f32.mrf.mxu0  ;;  %v1464_v54 = vpop.f32.mrf.mxu1 }
 0x1c0   : > { %1709 = vst [vmem:[#allocation2 + $0x1a0] sm:$0xff] %v1581_v47  ;;  %v1582_v53 = vadd.f32 %v1351_v51, %v554_v46  ;;  %1711 = vst [vmem:[#allocation2 + $0x258] sm:$0xff] %v1583_v50  ;;  %v1584_v56 = vadd.f32 %v1464_v54, %v556_v49 }
 0x1c1   : > { %v1353_v57 = vpop.f32.mrf.mxu0  ;;  %v1466_v60 = vpop.f32.mrf.mxu1 }
 0x1c2   : > { %1710 = vst [vmem:[#allocation2 + $0xa8] sm:$0xff] %v1582_v53  ;;  %v1589_v59 = vadd.f32 %v1353_v57, %v561_v52  ;;  %1712 = vst [vmem:[#allocation2 + $0x2d8] sm:$0xff] %v1584_v56  ;;  %v1591_v62 = vadd.f32 %v1466_v60, %v563_v55 }
 0x1c3   : > { %v1355_v63 = vpop.f32.mrf.mxu0  ;;  %v1468_v2 = vpop.f32.mrf.mxu1 }
 0x1c4   : > { %1717 = vst [vmem:[#allocation2 + $0x250] sm:$0xff] %v1589_v59  ;;  %v1590_v1 = vadd.f32 %v1355_v63, %v562_v58  ;;  %1719 = vst [vmem:[#allocation2 + $0xb8] sm:$0xff] %v1591_v62  ;;  %v1592_v4 = vadd.f32 %v1468_v2, %v564_v61 }
 0x1c5   : > { %v1359_v5 = vpop.f32.mrf.mxu0  ;;  %v1472_v8 = vpop.f32.mrf.mxu1 }
 0x1c6   : > { %1718 = vst [vmem:[#allocation2 + $0x378] sm:$0xff] %v1590_v1  ;;  %v1597_v7 = vadd.f32 %v1359_v5, %v569_v0  ;;  %1720 = vst [vmem:[#allocation2 + $0x38] sm:$0xff] %v1592_v4  ;;  %v1599_v10 = vadd.f32 %v1472_v8, %v571_v3 }
 0x1c7   : > { %v1361_v11 = vpop.f32.mrf.mxu0  ;;  %v1474_v14 = vpop.f32.mrf.mxu1 }
 0x1c8   : > { %1725 = vst [vmem:[#allocation2 + $0x278] sm:$0xff] %v1597_v7  ;;  %v1598_v13 = vadd.f32 %v1361_v11, %v570_v6  ;;  %1727 = vst [vmem:[#allocation2 + $0x228] sm:$0xff] %v1599_v10  ;;  %v1600_v16 = vadd.f32 %v1474_v14, %v572_v9 }
 0x1c9   : > { %v1363_v17 = vpop.f32.mrf.mxu0  ;;  %v1476_v20 = vpop.f32.mrf.mxu1 }
 0x1ca   : > { %1726 = vst [vmem:[#allocation2 + $0x360] sm:$0xff] %v1598_v13  ;;  %v1605_v19 = vadd.f32 %v1363_v17, %v577_v12  ;;  %1728 = vst [vmem:[#allocation2 + $0x348] sm:$0xff] %v1600_v16  ;;  %v1607_v22 = vadd.f32 %v1476_v20, %v579_v15  ;;  %1740 = sbr.rel (%p2334_p11) target bundleno = 537 (0x219), region = 81 }
 0x1cb   : > { %v1365_v23 = vpop.f32.mrf.mxu0  ;;  %v1478_v27 = vpop.f32.mrf.mxu1 }
 0x1cc   : > { %1733 = vst [vmem:[#allocation2 + $0x298] sm:$0xff] %v1605_v19  ;;  %v1606_v26 = vadd.f32 %v1365_v23, %v578_v18  ;;  %1735 = vst [vmem:[#allocation2 + $0x310] sm:$0xff] %v1607_v22  ;;  %v1608_v28 = vadd.f32 %v1478_v27, %v580_v21 }
 0x1ce   : > { %1734 = vst [vmem:[#allocation2 + $0x270] sm:$0xff] %v1606_v26  ;;  %1736 = vst [vmem:[#allocation2 + $0x190] sm:$0xff] %v1608_v28 }
 0x1cf   : > { %v1871_v24 = vlaneseq  ;;  %v1869_v29 = vld [vmem:[%s3324_s2] sm:$0xff]  ;;  %v1741_v31 = vld [vmem:[#allocation2 + $0x2b0] sm:$0xff]  ;;  %v1743_v33 = vld [vmem:[#allocation2 + $0xd8] sm:$0xff] }
 0x1d0   : > { %v1742_v32 = vld [vmem:[#allocation2 + $0x3b0] sm:$0xff]  ;;  %v1744_v34 = vld [vmem:[#allocation2 + $0x18] sm:$0xff]  ;;  %v1746_v40 = vld [vmem:[#allocation2 + $0x368] sm:$0xff] }
 0x1d1   : > { %v1872_v30 = vshrl.u32 %v1871_v24, 7  ;;  %v1745_v39 = vld [vmem:[#allocation2 + $0x50] sm:$0xff]  ;;  %v1748_v42 = vld [vmem:[#allocation2 + $0x48] sm:$0xff]  ;;  %v1749_v46 = vld [vmem:[#allocation2 + $0x380] sm:$0xff] }
 0x1d2   : > { %v1747_v41 = vld [vmem:[#allocation2 + $0x330] sm:$0xff]  ;;  %v1751_v48 = vld [vmem:[#allocation2 + $0x118] sm:$0xff]  ;;  %v1753_v54 = vld [vmem:[#allocation2 + $0x320] sm:$0xff] }
 0x1d3   : > { %v1873_v35 = vsub.s32 0, %v1872_v30  ;;  %v1877_v36 = vsub.s32 1, %v1872_v30  ;;  %v1881_v37 = vsub.s32 2, %v1872_v30  ;;  %v1885_v38 = vsub.s32 3, %v1872_v30  ;;  %v1750_v47 = vld [vmem:[#allocation2 + $0x110] sm:$0xff]  ;;  %v1752_v49 = vld [vmem:[#allocation2 + $0x98] sm:$0xff] }
 0x1d4   : > { %v1889_v25 = vsub.s32 4, %v1872_v30  ;;  %v1893_v43 = vsub.s32 5, %v1872_v30  ;;  %v1897_v44 = vsub.s32 6, %v1872_v30  ;;  %v1901_v45 = vsub.s32 7, %v1872_v30  ;;  %v1754_v55 = vld [vmem:[#allocation2 + $0x150] sm:$0xff]  ;;  %v1755_v56 = vld [vmem:[#allocation2 + $0x108] sm:$0xff] }
 0x1d5   : > { %v2779_v50 = vrot.slane %v1869_v29, %v1873_v35  ;;  %v2781_v51 = vrot.slane %v1869_v29, %v1877_v36  ;;  %v2783_v52 = vrot.slane %v1869_v29, %v1881_v37  ;;  %v2785_v53 = vrot.slane %v1869_v29, %v1885_v38  ;;  %v1756_v57 = vld [vmem:[#allocation2 + $0x60] sm:$0xff]  ;;  %v1758_v63 = vld [vmem:[#allocation2 + $0x388] sm:$0xff]  ;;  %v1759_v0 = vld [vmem:[#allocation2 + $0x338] sm:$0xff] }
 0x1d6   : > { %v2787_v58 = vrot.slane %v1869_v29, %v1889_v25  ;;  %v2789_v59 = vrot.slane %v1869_v29, %v1893_v43  ;;  %v2791_v60 = vrot.slane %v1869_v29, %v1897_v44  ;;  %v2793_v61 = vrot.slane %v1869_v29, %v1901_v45  ;;  %v1757_v62 = vld [vmem:[#allocation2 + $0x2e0] sm:$0xff]  ;;  %v1762_v7 = vld [vmem:[#allocation2 + $0x1a8] sm:$0xff]  ;;  %v1763_v8 = vld [vmem:[#allocation2 + $0x1b8] sm:$0xff] }
 0x1d7   : > { %v1760_v1 = vld [vmem:[#allocation2 + $0x340] sm:$0xff]  ;;  %v1911_v2 = vadd.f32 %v2779_v50, %v1741_v31  ;;  %v1912_v3 = vadd.f32 %v2781_v51, %v1742_v32  ;;  %v1913_v4 = vadd.f32 %v2783_v52, %v1743_v33  ;;  %v1914_v5 = vadd.f32 %v2785_v53, %v1744_v34  ;;  %v1764_v9 = vld [vmem:[#allocation2 + $0x168] sm:$0xff]  ;;  %v1766_v15 = vld [vmem:[#allocation2 + $0x2f8] sm:$0xff] }
 0x1d8   : > { %v1761_v6 = vld [vmem:[#allocation2 + $0x80] sm:$0xff]  ;;  %v1915_v10 = vadd.f32 %v2787_v58, %v1745_v39  ;;  %v1916_v11 = vadd.f32 %v2789_v59, %v1746_v40  ;;  %v1917_v12 = vadd.f32 %v2791_v60, %v1747_v41  ;;  %v1918_v13 = vadd.f32 %v2793_v61, %v1748_v42  ;;  %v1765_v14 = vld [vmem:[#allocation2 + $0x3e8] sm:$0xff]  ;;  %v1767_v16 = vld [vmem:[#allocation2 + $0x290] sm:$0xff] }
 0x1d9   : > { %2039 = vst [vmem:[%s3325_s3] sm:$0xff] %v1911_v2  ;;  %2040 = vst [vmem:[%s3325_s3 + $0x8] sm:$0xff] %v1912_v3  ;;  %v1919_v17 = vadd.f32 %v2779_v50, %v1749_v46  ;;  %v1920_v18 = vadd.f32 %v2781_v51, %v1750_v47  ;;  %v1921_v19 = vadd.f32 %v2783_v52, %v1751_v48  ;;  %v1768_v21 = vld [vmem:[#allocation2 + $0x28] sm:$0xff]  ;;  %v1769_v22 = vld [vmem:[#allocation2 + $0x138] sm:$0xff] }
 0x1da   : > { %2041 = vst [vmem:[%s3325_s3 + $0x10] sm:$0xff] %v1913_v4  ;;  %2042 = vst [vmem:[%s3325_s3 + $0x18] sm:$0xff] %v1914_v5  ;;  %v1922_v20 = vadd.f32 %v2785_v53, %v1752_v49  ;;  %v1770_v23 = vld [vmem:[#allocation2 + $0xc0] sm:$0xff]  ;;  %v1923_v26 = vadd.f32 %v2787_v58, %v1753_v54  ;;  %v1924_v27 = vadd.f32 %v2789_v59, %v1754_v55  ;;  %v1775_v37 = vld [vmem:[#allocation2 + $0x158] sm:$0xff] }
 0x1db   : > { %2043 = vst [vmem:[%s3325_s3 + $0x20] sm:$0xff] %v1915_v10  ;;  %2044 = vst [vmem:[%s3325_s3 + $0x28] sm:$0xff] %v1916_v11  ;;  %v1925_v28 = vadd.f32 %v2791_v60, %v1755_v56  ;;  %v1926_v24 = vadd.f32 %v2793_v61, %v1756_v57  ;;  %v1771_v29 = vld [vmem:[#allocation2 + $0x1c0] sm:$0xff]  ;;  %v1927_v32 = vadd.f32 %v2779_v50, %v1757_v62  ;;  %v1777_v25 = vld [vmem:[#allocation2 + $0x218] sm:$0xff] }
 0x1dc   : > { %2045 = vst [vmem:[%s3325_s3 + $0x30] sm:$0xff] %v1917_v12  ;;  %2046 = vst [vmem:[%s3325_s3 + $0x38] sm:$0xff] %v1918_v13  ;;  %v1772_v30 = vld [vmem:[#allocation2 + $0x280] sm:$0xff]  ;;  %v1928_v33 = vadd.f32 %v2781_v51, %v1758_v63  ;;  %v1929_v34 = vadd.f32 %v2783_v52, %v1759_v0  ;;  %v1930_v35 = vadd.f32 %v2785_v53, %v1760_v1  ;;  %v1778_v43 = vld [vmem:[#allocation2 + $0x3f8] sm:$0xff] }
 0x1dd   : > { %v1773_v31 = vld [vmem:[#allocation2 + $0x100] sm:$0xff]  ;;  %2047 = vst [vmem:[%s3325_s3 + $0x40] sm:$0xff] %v1919_v17  ;;  %2048 = vst [vmem:[%s3325_s3 + $0x48] sm:$0xff] %v1920_v18  ;;  %v1931_v39 = vadd.f32 %v2787_v58, %v1761_v6  ;;  %v1932_v40 = vadd.f32 %v2789_v59, %v1762_v7  ;;  %v1933_v41 = vadd.f32 %v2791_v60, %v1763_v8  ;;  %v1779_v44 = vld [vmem:[#allocation2 + $0x8] sm:$0xff] }
 0x1de   : > { %2049 = vst [vmem:[%s3325_s3 + $0x50] sm:$0xff] %v1921_v19  ;;  %2050 = vst [vmem:[%s3325_s3 + $0x58] sm:$0xff] %v1922_v20  ;;  %v1774_v36 = vld [vmem:[#allocation2 + $0x3c0] sm:$0xff]  ;;  %v1934_v42 = vadd.f32 %v2793_v61, %v1764_v9  ;;  %v1935_v45 = vadd.f32 %v2779_v50, %v1765_v14  ;;  %v1936_v46 = vadd.f32 %v2781_v51, %v1766_v15  ;;  %v1780_v49 = vld [vmem:[#allocation2 + $0x128] sm:$0xff] }
 0x1df   : > { %v1776_v38 = vld [vmem:[#allocation2 + $0x3e0] sm:$0xff]  ;;  %2051 = vst [vmem:[%s3325_s3 + $0x60] sm:$0xff] %v1923_v26  ;;  %2052 = vst [vmem:[%s3325_s3 + $0x68] sm:$0xff] %v1924_v27  ;;  %v1937_v47 = vadd.f32 %v2783_v52, %v1767_v16  ;;  %v1938_v48 = vadd.f32 %v2785_v53, %v1768_v21  ;;  %v1782_v55 = vld [vmem:[#allocation2 + $0x3f0] sm:$0xff]  ;;  %v1939_v56 = vadd.f32 %v2787_v58, %v1769_v22 }
 0x1e0   : > { %2053 = vst [vmem:[%s3325_s3 + $0x70] sm:$0xff] %v1925_v28  ;;  %2054 = vst [vmem:[%s3325_s3 + $0x78] sm:$0xff] %v1926_v24  ;;  %v1781_v54 = vld [vmem:[#allocation2 + $0x2a0] sm:$0xff]  ;;  %v1940_v57 = vadd.f32 %v2789_v59, %v1770_v23  ;;  %v1941_v62 = vadd.f32 %v2791_v60, %v1771_v29  ;;  %v1942_v63 = vadd.f32 %v2793_v61, %v1772_v30  ;;  %v1785_v2 = vld [vmem:[#allocation2 + $0xb0] sm:$0xff] }
 0x1e1   : > { %2055 = vst [vmem:[%s3325_s3 + $0x80] sm:$0xff] %v1927_v32  ;;  %2056 = vst [vmem:[%s3325_s3 + $0x88] sm:$0xff] %v1928_v33  ;;  %v1783_v0 = vld [vmem:[#allocation2 + $0xa0] sm:$0xff]  ;;  %v1943_v3 = vadd.f32 %v2779_v50, %v1773_v31  ;;  %v1944_v4 = vadd.f32 %v2781_v51, %v1774_v36  ;;  %v1945_v5 = vadd.f32 %v2783_v52, %v1775_v37  ;;  %v1787_v8 = vld [vmem:[#allocation2 + $0x1f0] sm:$0xff] }
 0x1e2   : > { %2057 = vst [vmem:[%s3325_s3 + $0x90] sm:$0xff] %v1929_v34  ;;  %2058 = vst [vmem:[%s3325_s3 + $0x98] sm:$0xff] %v1930_v35  ;;  %v1784_v1 = vld [vmem:[#allocation2 + $0x2c0] sm:$0xff]  ;;  %v1946_v6 = vadd.f32 %v2785_v53, %v1776_v38  ;;  %v1788_v9 = vld [vmem:[#allocation2 + $0x10] sm:$0xff]  ;;  %v1947_v10 = vadd.f32 %v2787_v58, %v1777_v25  ;;  %v1948_v11 = vadd.f32 %v2789_v59, %v1778_v43 }
 0x1e3   : > { %2059 = vst [vmem:[%s3325_s3 + $0xa0] sm:$0xff] %v1931_v39  ;;  %2060 = vst [vmem:[%s3325_s3 + $0xa8] sm:$0xff] %v1932_v40  ;;  %v1786_v7 = vld [vmem:[#allocation2 + $0x1e0] sm:$0xff]  ;;  %v1949_v12 = vadd.f32 %v2791_v60, %v1779_v44  ;;  %v1950_v13 = vadd.f32 %v2793_v61, %v1780_v49  ;;  %v1789_v14 = vld [vmem:[#allocation2 + $0x230] sm:$0xff]  ;;  %v1951_v17 = vadd.f32 %v2779_v50, %v1781_v54 }
 0x1e4   : > { %2061 = vst [vmem:[%s3325_s3 + $0xb0] sm:$0xff] %v1933_v41  ;;  %2062 = vst [vmem:[%s3325_s3 + $0xb8] sm:$0xff] %v1934_v42  ;;  %v1790_v15 = vld [vmem:[#allocation2 + $0x240] sm:$0xff]  ;;  %v1791_v16 = vld [vmem:[#allocation2 + $0x90] sm:$0xff]  ;;  %v1952_v18 = vadd.f32 %v2781_v51, %v1782_v55  ;;  %v1953_v19 = vadd.f32 %v2783_v52, %v1783_v0  ;;  %v1954_v20 = vadd.f32 %v2785_v53, %v1784_v1 }
 0x1e5   : > { %2063 = vst [vmem:[%s3325_s3 + $0xc0] sm:$0xff] %v1935_v45  ;;  %2064 = vst [vmem:[%s3325_s3 + $0xc8] sm:$0xff] %v1936_v46  ;;  %v1792_v21 = vld [vmem:[#allocation2 + $0x3a0] sm:$0xff]  ;;  %v1793_v22 = vld [vmem:[#allocation2 + $0x208] sm:$0xff]  ;;  %v1955_v26 = vadd.f32 %v2787_v58, %v1785_v2  ;;  %v1956_v27 = vadd.f32 %v2789_v59, %v1786_v7  ;;  %v1957_v28 = vadd.f32 %v2791_v60, %v1787_v8 }
 0x1e6   : > { %2065 = vst [vmem:[%s3325_s3 + $0xd0] sm:$0xff] %v1937_v47  ;;  %2066 = vst [vmem:[%s3325_s3 + $0xd8] sm:$0xff] %v1938_v48  ;;  %v1794_v23 = vld [vmem:[#allocation2 + $0xd0] sm:$0xff]  ;;  %v1958_v24 = vadd.f32 %v2793_v61, %v1788_v9  ;;  %v1795_v29 = vld [vmem:[#allocation2 + $0x88] sm:$0xff]  ;;  %v1959_v32 = vadd.f32 %v2779_v50, %v1789_v14  ;;  %v1960_v33 = vadd.f32 %v2781_v51, %v1790_v15 }
 0x1e7   : > { %2067 = vst [vmem:[%s3325_s3 + $0xe0] sm:$0xff] %v1939_v56  ;;  %2068 = vst [vmem:[%s3325_s3 + $0xe8] sm:$0xff] %v1940_v57  ;;  %v1796_v30 = vld [vmem:[#allocation2 + $0x2f0] sm:$0xff]  ;;  %v1797_v31 = vld [vmem:[#allocation2 + $0x358] sm:$0xff]  ;;  %v1961_v34 = vadd.f32 %v2783_v52, %v1791_v16  ;;  %v1962_v35 = vadd.f32 %v2785_v53, %v1792_v21  ;;  %v1963_v39 = vadd.f32 %v2787_v58, %v1793_v22 }
 0x1e8   : > { %2069 = vst [vmem:[%s3325_s3 + $0xf0] sm:$0xff] %v1941_v62  ;;  %2070 = vst [vmem:[%s3325_s3 + $0xf8] sm:$0xff] %v1942_v63  ;;  %v1798_v36 = vld [vmem:[#allocation2 + $0x268] sm:$0xff]  ;;  %v1799_v37 = vld [vmem:[#allocation2 + $0x350] sm:$0xff]  ;;  %v1964_v40 = vadd.f32 %v2789_v59, %v1794_v23  ;;  %v1965_v41 = vadd.f32 %v2791_v60, %v1795_v29  ;;  %v1966_v42 = vadd.f32 %v2793_v61, %v1796_v30 }
 0x1e9   : > { %2071 = vst [vmem:[%s3325_s3 + $0x100] sm:$0xff] %v1943_v3  ;;  %2072 = vst [vmem:[%s3325_s3 + $0x108] sm:$0xff] %v1944_v4  ;;  %v1800_v38 = vld [vmem:[#allocation2 + $0x188] sm:$0xff]  ;;  %v1801_v25 = vld [vmem:[#allocation2 + $0x1d8] sm:$0xff]  ;;  %v1967_v45 = vadd.f32 %v2779_v50, %v1797_v31  ;;  %v1968_v46 = vadd.f32 %v2781_v51, %v1798_v36  ;;  %v1969_v47 = vadd.f32 %v2783_v52, %v1799_v37 }
 0x1ea   : > { %2073 = vst [vmem:[%s3325_s3 + $0x110] sm:$0xff] %v1945_v5  ;;  %2074 = vst [vmem:[%s3325_s3 + $0x118] sm:$0xff] %v1946_v6  ;;  %v1802_v43 = vld [vmem:[#allocation2 + $0x30] sm:$0xff]  ;;  %v1803_v44 = vld [vmem:[#allocation2 + $0x140] sm:$0xff]  ;;  %v1970_v48 = vadd.f32 %v2785_v53, %v1800_v38  ;;  %v1971_v56 = vadd.f32 %v2787_v58, %v1801_v25 }
 0x1eb   : > { %2075 = vst [vmem:[%s3325_s3 + $0x120] sm:$0xff] %v1947_v10  ;;  %2076 = vst [vmem:[%s3325_s3 + $0x128] sm:$0xff] %v1948_v11  ;;  %v1804_v49 = vld [vmem:[#allocation2 + $0x2a8] sm:$0xff]  ;;  %v1805_v54 = vld [vmem:[#allocation2 + $0x130] sm:$0xff]  ;;  %v1972_v57 = vadd.f32 %v2789_v59, %v1802_v43  ;;  %v1973_v62 = vadd.f32 %v2791_v60, %v1803_v44 }
 0x1ec   : > { %2077 = vst [vmem:[%s3325_s3 + $0x130] sm:$0xff] %v1949_v12  ;;  %2078 = vst [vmem:[%s3325_s3 + $0x138] sm:$0xff] %v1950_v13  ;;  %v1806_v55 = vld [vmem:[#allocation2 + $0x200] sm:$0xff]  ;;  %v1974_v63 = vadd.f32 %v2793_v61, %v1804_v49  ;;  %v1807_v0 = vld [vmem:[#allocation2 + $0x318] sm:$0xff]  ;;  %v1975_v3 = vadd.f32 %v2779_v50, %v1805_v54 }
 0x1ed   : > { %2079 = vst [vmem:[%s3325_s3 + $0x140] sm:$0xff] %v1951_v17  ;;  %2080 = vst [vmem:[%s3325_s3 + $0x148] sm:$0xff] %v1952_v18  ;;  %v1808_v1 = vld [vmem:[#allocation2 + $0x220] sm:$0xff]  ;;  %v1809_v2 = vld [vmem:[#allocation2 + $0x70] sm:$0xff]  ;;  %v1976_v4 = vadd.f32 %v2781_v51, %v1806_v55  ;;  %v1977_v5 = vadd.f32 %v2783_v52, %v1807_v0 }
 0x1ee   : > { %2081 = vst [vmem:[%s3325_s3 + $0x150] sm:$0xff] %v1953_v19  ;;  %2082 = vst [vmem:[%s3325_s3 + $0x158] sm:$0xff] %v1954_v20  ;;  %v1978_v6 = vadd.f32 %v2785_v53, %v1808_v1  ;;  %v1810_v7 = vld [vmem:[#allocation2 + $0x300] sm:$0xff]  ;;  %v1812_v9 = vld [vmem:[#allocation2 + $0x178] sm:$0xff]  ;;  %v1979_v10 = vadd.f32 %v2787_v58, %v1809_v2 }
 0x1ef   : > { %2083 = vst [vmem:[%s3325_s3 + $0x160] sm:$0xff] %v1955_v26  ;;  %2084 = vst [vmem:[%s3325_s3 + $0x168] sm:$0xff] %v1956_v27  ;;  %v1811_v8 = vld [vmem:[#allocation2 + $0xe0] sm:$0xff]  ;;  %v1980_v11 = vadd.f32 %v2789_v59, %v1810_v7  ;;  %v1982_v13 = vadd.f32 %v2793_v61, %v1812_v9  ;;  %v1813_v14 = vld [vmem:[#allocation2 + $0x328] sm:$0xff] }
 0x1f0   : > { %2085 = vst [vmem:[%s3325_s3 + $0x170] sm:$0xff] %v1957_v28  ;;  %2086 = vst [vmem:[%s3325_s3 + $0x178] sm:$0xff] %v1958_v24  ;;  %v1981_v12 = vadd.f32 %v2791_v60, %v1811_v8  ;;  %v1814_v15 = vld [vmem:[#allocation2 + $0x260] sm:$0xff]  ;;  %v1815_v16 = vld [vmem:[#allocation2 + $0x3b8] sm:$0xff]  ;;  %v1983_v17 = vadd.f32 %v2779_v50, %v1813_v14 }
 0x1f1   : > { %2087 = vst [vmem:[%s3325_s3 + $0x180] sm:$0xff] %v1959_v32  ;;  %2088 = vst [vmem:[%s3325_s3 + $0x188] sm:$0xff] %v1960_v33  ;;  %v1984_v18 = vadd.f32 %v2781_v51, %v1814_v15  ;;  %v1985_v19 = vadd.f32 %v2783_v52, %v1815_v16  ;;  %v1816_v20 = vld [vmem:[#allocation2 + $0x2b8] sm:$0xff]  ;;  %v1817_v21 = vld [vmem:[#allocation2 + $0x248] sm:$0xff] }
 0x1f2   : > { %2089 = vst [vmem:[%s3325_s3 + $0x190] sm:$0xff] %v1961_v34  ;;  %2090 = vst [vmem:[%s3325_s3 + $0x198] sm:$0xff] %v1962_v35  ;;  %v1818_v22 = vld [vmem:[#allocation2 + $0x40] sm:$0xff]  ;;  %v1986_v23 = vadd.f32 %v2785_v53, %v1816_v20  ;;  %v1987_v26 = vadd.f32 %v2787_v58, %v1817_v21  ;;  %v1820_v24 = vld [vmem:[#allocation2 + $0xe8] sm:$0xff] }
 0x1f3   : > { %2091 = vst [vmem:[%s3325_s3 + $0x1a0] sm:$0xff] %v1963_v39  ;;  %2092 = vst [vmem:[%s3325_s3 + $0x1a8] sm:$0xff] %v1964_v40  ;;  %v1988_v27 = vadd.f32 %v2789_v59, %v1818_v22  ;;  %v1819_v28 = vld [vmem:[#allocation2 + $0x20] sm:$0xff]  ;;  %v1821_v29 = vld [vmem:[#allocation2 + $0x288] sm:$0xff]  ;;  %v1990_v31 = vadd.f32 %v2793_v61, %v1820_v24 }
 0x1f4   : > { %2093 = vst [vmem:[%s3325_s3 + $0x1b0] sm:$0xff] %v1965_v41  ;;  %2094 = vst [vmem:[%s3325_s3 + $0x1b8] sm:$0xff] %v1966_v42  ;;  %v1989_v30 = vadd.f32 %v2791_v60, %v1819_v28  ;;  %v1991_v32 = vadd.f32 %v2779_v50, %v1821_v29  ;;  %v1822_v33 = vld [vmem:[#allocation2 + $0x3a8] sm:$0xff]  ;;  %v1824_v35 = vld [vmem:[#allocation2 + $0x160] sm:$0xff] }
 0x1f5   : > { %2095 = vst [vmem:[%s3325_s3 + $0x1c0] sm:$0xff] %v1967_v45  ;;  %2096 = vst [vmem:[%s3325_s3 + $0x1c8] sm:$0xff] %v1968_v46  ;;  %v1823_v34 = vld [vmem:[#allocation2 + $0x3c8] sm:$0xff]  ;;  %v1992_v36 = vadd.f32 %v2781_v51, %v1822_v33  ;;  %v1994_v38 = vadd.f32 %v2785_v53, %v1824_v35  ;;  %v1826_v40 = vld [vmem:[#allocation2 + $0x210] sm:$0xff] }
 0x1f6   : > { %2097 = vst [vmem:[%s3325_s3 + $0x1d0] sm:$0xff] %v1969_v47  ;;  %2098 = vst [vmem:[%s3325_s3 + $0x1d8] sm:$0xff] %v1970_v48  ;;  %v1993_v37 = vadd.f32 %v2783_v52, %v1823_v34  ;;  %v1825_v39 = vld [vmem:[#allocation2 + $0x2c8] sm:$0xff]  ;;  %v1827_v41 = vld [vmem:[#allocation2 + $0x3d8] sm:$0xff]  ;;  %v1996_v25 = vadd.f32 %v2789_v59, %v1826_v40 }
 0x1f7   : > { %2099 = vst [vmem:[%s3325_s3 + $0x1e0] sm:$0xff] %v1971_v56  ;;  %2100 = vst [vmem:[%s3325_s3 + $0x1e8] sm:$0xff] %v1972_v57  ;;  %v1995_v42 = vadd.f32 %v2787_v58, %v1825_v39  ;;  %v1997_v43 = vadd.f32 %v2791_v60, %v1827_v41  ;;  %v1828_v44 = vld [vmem:[#allocation2 + $0x1e8] sm:$0xff]  ;;  %v1829_v45 = vld [vmem:[#allocation2 + $0x1b0] sm:$0xff] }
 0x1f8   : > { %2101 = vst [vmem:[%s3325_s3 + $0x1f0] sm:$0xff] %v1973_v62  ;;  %2102 = vst [vmem:[%s3325_s3 + $0x1f8] sm:$0xff] %v1974_v63  ;;  %v1830_v46 = vld [vmem:[#allocation2 + $0x1c8] sm:$0xff]  ;;  %v1998_v47 = vadd.f32 %v2793_v61, %v1828_v44  ;;  %v1999_v48 = vadd.f32 %v2779_v50, %v1829_v45  ;;  %v1831_v54 = vld [vmem:[#allocation2 + $0x2d0] sm:$0xff] }
 0x1f9   : > { %2103 = vst [vmem:[%s3325_s3 + $0x200] sm:$0xff] %v1975_v3  ;;  %2104 = vst [vmem:[%s3325_s3 + $0x208] sm:$0xff] %v1976_v4  ;;  %v2000_v49 = vadd.f32 %v2781_v51, %v1830_v46  ;;  %v1832_v55 = vld [vmem:[#allocation2 + $0x1d0] sm:$0xff]  ;;  %v1833_v56 = vld [vmem:[#allocation2 + $0x58] sm:$0xff]  ;;  %v2001_v57 = vadd.f32 %v2783_v52, %v1831_v54 }
 0x1fa   : > { %2105 = vst [vmem:[%s3325_s3 + $0x210] sm:$0xff] %v1977_v5  ;;  %2106 = vst [vmem:[%s3325_s3 + $0x218] sm:$0xff] %v1978_v6  ;;  %v2002_v62 = vadd.f32 %v2785_v53, %v1832_v55  ;;  %v2003_v63 = vadd.f32 %v2787_v58, %v1833_v56  ;;  %v1834_v0 = vld [vmem:[#allocation2 + $0x120] sm:$0xff]  ;;  %v1835_v1 = vld [vmem:[#allocation2 + $0x198] sm:$0xff] }
 0x1fb   : > { %2107 = vst [vmem:[%s3325_s3 + $0x220] sm:$0xff] %v1979_v10  ;;  %2108 = vst [vmem:[%s3325_s3 + $0x228] sm:$0xff] %v1980_v11  ;;  %v1836_v2 = vld [vmem:[#allocation2 + $0x2e8] sm:$0xff]  ;;  %v2004_v3 = vadd.f32 %v2789_v59, %v1834_v0  ;;  %v2005_v4 = vadd.f32 %v2791_v60, %v1835_v1  ;;  %v1837_v6 = vld [vmem:[#allocation2 + $0x1f8] sm:$0xff] }
 0x1fc   : > { %2109 = vst [vmem:[%s3325_s3 + $0x230] sm:$0xff] %v1981_v12  ;;  %2110 = vst [vmem:[%s3325_s3 + $0x238] sm:$0xff] %v1982_v13  ;;  %v2006_v5 = vadd.f32 %v2793_v61, %v1836_v2  ;;  %v1838_v7 = vld [vmem:[#allocation2 + $0x238] sm:$0xff]  ;;  %v2007_v9 = vadd.f32 %v2779_v50, %v1837_v6  ;;  %v1840_v12 = vld [vmem:[#allocation2 + $0x390] sm:$0xff] }
 0x1fd   : > { %2111 = vst [vmem:[%s3325_s3 + $0x240] sm:$0xff] %v1983_v17  ;;  %2112 = vst [vmem:[%s3325_s3 + $0x248] sm:$0xff] %v1984_v18  ;;  %v1839_v8 = vld [vmem:[#allocation2 + $0x398] sm:$0xff]  ;;  %v2008_v10 = vadd.f32 %v2781_v51, %v1838_v7  ;;  %v1841_v13 = vld [vmem:[#allocation2 + $0x1a0] sm:$0xff]  ;;  %v2010_v15 = vadd.f32 %v2785_v53, %v1840_v12 }
 0x1fe   : > { %2113 = vst [vmem:[%s3325_s3 + $0x250] sm:$0xff] %v1985_v19  ;;  %2114 = vst [vmem:[%s3325_s3 + $0x258] sm:$0xff] %v1986_v23  ;;  %v2009_v11 = vadd.f32 %v2783_v52, %v1839_v8  ;;  %v1842_v14 = vld [vmem:[#allocation2 + $0xa8] sm:$0xff]  ;;  %v2011_v16 = vadd.f32 %v2787_v58, %v1841_v13  ;;  %v1843_v18 = vld [vmem:[#allocation2 + $0x258] sm:$0xff] }
 0x1ff   : > { %2115 = vst [vmem:[%s3325_s3 + $0x260] sm:$0xff] %v1987_v26  ;;  %2116 = vst [vmem:[%s3325_s3 + $0x268] sm:$0xff] %v1988_v27  ;;  %v2012_v17 = vadd.f32 %v2789_v59, %v1842_v14  ;;  %v1844_v19 = vld [vmem:[#allocation2 + $0x2d8] sm:$0xff]  ;;  %v1845_v20 = vld [vmem:[#allocation2 + $0xf0] sm:$0xff]  ;;  %v2013_v21 = vadd.f32 %v2791_v60, %v1843_v18 }
 0x200   : > { %2117 = vst [vmem:[%s3325_s3 + $0x270] sm:$0xff] %v1989_v30  ;;  %2118 = vst [vmem:[%s3325_s3 + $0x278] sm:$0xff] %v1990_v31  ;;  %v2014_v22 = vadd.f32 %v2793_v61, %v1844_v19  ;;  %v2015_v23 = vadd.f32 %v2779_v50, %v1845_v20  ;;  %v1846_v26 = vld [vmem:[#allocation2 + $0x180] sm:$0xff]  ;;  %v1847_v27 = vld [vmem:[#allocation2 + $0x170] sm:$0xff] }
 0x201   : > { %2119 = vst [vmem:[%s3325_s3 + $0x280] sm:$0xff] %v1991_v32  ;;  %2120 = vst [vmem:[%s3325_s3 + $0x288] sm:$0xff] %v1992_v36  ;;  %v1848_v28 = vld [vmem:[#allocation2 + $0x3d0] sm:$0xff]  ;;  %v2016_v24 = vadd.f32 %v2781_v51, %v1846_v26  ;;  %v2017_v29 = vadd.f32 %v2783_v52, %v1847_v27  ;;  %v1850_v32 = vld [vmem:[#allocation2 + $0x378] sm:$0xff] }
 0x202   : > { %2121 = vst [vmem:[%s3325_s3 + $0x290] sm:$0xff] %v1993_v37  ;;  %2122 = vst [vmem:[%s3325_s3 + $0x298] sm:$0xff] %v1994_v38  ;;  %v2018_v30 = vadd.f32 %v2785_v53, %v1848_v28  ;;  %v1849_v31 = vld [vmem:[#allocation2 + $0x250] sm:$0xff]  ;;  %v1851_v33 = vld [vmem:[#allocation2 + $0xb8] sm:$0xff]  ;;  %v2020_v35 = vadd.f32 %v2789_v59, %v1850_v32 }
 0x203   : > { %2123 = vst [vmem:[%s3325_s3 + $0x2a0] sm:$0xff] %v1995_v42  ;;  %2124 = vst [vmem:[%s3325_s3 + $0x2a8] sm:$0xff] %v1996_v25  ;;  %v2019_v34 = vadd.f32 %v2787_v58, %v1849_v31  ;;  %v2021_v36 = vadd.f32 %v2791_v60, %v1851_v33  ;;  %v1852_v37 = vld [vmem:[#allocation2 + $0x38] sm:$0xff]  ;;  %v1854_v39 = vld [vmem:[#allocation2 + $0x308] sm:$0xff] }
 0x204   : > { %2125 = vst [vmem:[%s3325_s3 + $0x2b0] sm:$0xff] %v1997_v43  ;;  %2126 = vst [vmem:[%s3325_s3 + $0x2b8] sm:$0xff] %v1998_v47  ;;  %v1853_v38 = vld [vmem:[#allocation2 + $0x78] sm:$0xff]  ;;  %v2022_v40 = vadd.f32 %v2793_v61, %v1852_v37  ;;  %v2024_v42 = vadd.f32 %v2781_v51, %v1854_v39  ;;  %v1855_v25 = vld [vmem:[#allocation2 + $0x370] sm:$0xff] }
 0x205   : > { %2127 = vst [vmem:[%s3325_s3 + $0x2c0] sm:$0xff] %v1999_v48  ;;  %2128 = vst [vmem:[%s3325_s3 + $0x2c8] sm:$0xff] %v2000_v49  ;;  %v2023_v41 = vadd.f32 %v2779_v50, %v1853_v38  ;;  %v1856_v43 = vld [vmem:[#allocation2 + $0xc8] sm:$0xff]  ;;  %v1857_v44 = vld [vmem:[#allocation2 + $0x278] sm:$0xff]  ;;  %v2025_v45 = vadd.f32 %v2783_v52, %v1855_v25 }
 0x206   : > { %2129 = vst [vmem:[%s3325_s3 + $0x2d0] sm:$0xff] %v2001_v57  ;;  %2130 = vst [vmem:[%s3325_s3 + $0x2d8] sm:$0xff] %v2002_v62  ;;  %v2026_v46 = vadd.f32 %v2785_v53, %v1856_v43  ;;  %v2027_v47 = vadd.f32 %v2787_v58, %v1857_v44  ;;  %v1858_v48 = vld [vmem:[#allocation2 + $0x360] sm:$0xff]  ;;  %v1859_v49 = vld [vmem:[#allocation2 + $0x228] sm:$0xff] }
 0x207   : > { %2131 = vst [vmem:[%s3325_s3 + $0x2e0] sm:$0xff] %v2003_v63  ;;  %2132 = vst [vmem:[%s3325_s3 + $0x2e8] sm:$0xff] %v2004_v3  ;;  %v1860_v54 = vld [vmem:[#allocation2 + $0x348] sm:$0xff]  ;;  %v2028_v55 = vadd.f32 %v2789_v59, %v1858_v48  ;;  %v2029_v56 = vadd.f32 %v2791_v60, %v1859_v49  ;;  %v1862_v63 = vld [vmem:[#allocation2 + $0xf8] sm:$0xff] }
 0x208   : > { %2133 = vst [vmem:[%s3325_s3 + $0x2f0] sm:$0xff] %v2005_v4  ;;  %2134 = vst [vmem:[%s3325_s3 + $0x2f8] sm:$0xff] %v2006_v5  ;;  %v2030_v57 = vadd.f32 %v2793_v61, %v1860_v54  ;;  %v1861_v62 = vld [vmem:[#allocation2 + $0x148] sm:$0xff]  ;;  %v2032_v2 = vadd.f32 %v2781_v51, %v1862_v63  ;;  %v1864_v4 = vld [vmem:[#allocation2] sm:$0xff] }
 0x209   : > { %2135 = vst [vmem:[%s3325_s3 + $0x300] sm:$0xff] %v2007_v9  ;;  %2136 = vst [vmem:[%s3325_s3 + $0x308] sm:$0xff] %v2008_v10  ;;  %v1863_v0 = vld [vmem:[#allocation2 + $0x68] sm:$0xff]  ;;  %v2031_v1 = vadd.f32 %v2779_v50, %v1861_v62  ;;  %v1865_v5 = vld [vmem:[#allocation2 + $0x298] sm:$0xff]  ;;  %v2034_v50 = vadd.f32 %v2785_v53, %v1864_v4 }
 0x20a   : > { %2137 = vst [vmem:[%s3325_s3 + $0x310] sm:$0xff] %v2009_v11  ;;  %2138 = vst [vmem:[%s3325_s3 + $0x318] sm:$0xff] %v2010_v15  ;;  %v2033_v3 = vadd.f32 %v2783_v52, %v1863_v0  ;;  %v1866_v6 = vld [vmem:[#allocation2 + $0x270] sm:$0xff]  ;;  %v2035_v51 = vadd.f32 %v2787_v58, %v1865_v5 }
 0x20b   : > { %2139 = vst [vmem:[%s3325_s3 + $0x320] sm:$0xff] %v2011_v16  ;;  %2140 = vst [vmem:[%s3325_s3 + $0x328] sm:$0xff] %v2012_v17  ;;  %v2036_v52 = vadd.f32 %v2789_v59, %v1866_v6  ;;  %v1867_v7 = vld [vmem:[#allocation2 + $0x310] sm:$0xff] }
 0x20c   : > { %2141 = vst [vmem:[%s3325_s3 + $0x330] sm:$0xff] %v2013_v21  ;;  %2142 = vst [vmem:[%s3325_s3 + $0x338] sm:$0xff] %v2014_v22  ;;  %v1868_v8 = vld [vmem:[#allocation2 + $0x190] sm:$0xff]  ;;  %v2037_v53 = vadd.f32 %v2791_v60, %v1867_v7 }
 0x20d   : > { %2143 = vst [vmem:[%s3325_s3 + $0x340] sm:$0xff] %v2015_v23  ;;  %2144 = vst [vmem:[%s3325_s3 + $0x348] sm:$0xff] %v2016_v24  ;;  %v2038_v58 = vadd.f32 %v2793_v61, %v1868_v8 }
 0x20e   : > { %2145 = vst [vmem:[%s3325_s3 + $0x350] sm:$0xff] %v2017_v29  ;;  %2146 = vst [vmem:[%s3325_s3 + $0x358] sm:$0xff] %v2018_v30 }
 0x20f   : > { %2147 = vst [vmem:[%s3325_s3 + $0x360] sm:$0xff] %v2019_v34  ;;  %2148 = vst [vmem:[%s3325_s3 + $0x368] sm:$0xff] %v2020_v35 }
 0x210   : > { %2149 = vst [vmem:[%s3325_s3 + $0x370] sm:$0xff] %v2021_v36  ;;  %2150 = vst [vmem:[%s3325_s3 + $0x378] sm:$0xff] %v2022_v40 }
 0x211   : > { %2151 = vst [vmem:[%s3325_s3 + $0x380] sm:$0xff] %v2023_v41  ;;  %2152 = vst [vmem:[%s3325_s3 + $0x388] sm:$0xff] %v2024_v42 }
 0x212   : > { %2153 = vst [vmem:[%s3325_s3 + $0x390] sm:$0xff] %v2025_v45  ;;  %2154 = vst [vmem:[%s3325_s3 + $0x398] sm:$0xff] %v2026_v46 }
 0x213   : > { %2155 = vst [vmem:[%s3325_s3 + $0x3a0] sm:$0xff] %v2027_v47  ;;  %2156 = vst [vmem:[%s3325_s3 + $0x3a8] sm:$0xff] %v2028_v55 }
 0x214   : > { %2157 = vst [vmem:[%s3325_s3 + $0x3b0] sm:$0xff] %v2029_v56  ;;  %2158 = vst [vmem:[%s3325_s3 + $0x3b8] sm:$0xff] %v2030_v57 }
 0x215   : > { %2159 = vst [vmem:[%s3325_s3 + $0x3c0] sm:$0xff] %v2031_v1  ;;  %2160 = vst [vmem:[%s3325_s3 + $0x3c8] sm:$0xff] %v2032_v2 }
 0x216   : > { %2161 = vst [vmem:[%s3325_s3 + $0x3d0] sm:$0xff] %v2033_v3  ;;  %2162 = vst [vmem:[%s3325_s3 + $0x3d8] sm:$0xff] %v2034_v50 }
 0x217   : > { %2163 = vst [vmem:[%s3325_s3 + $0x3e0] sm:$0xff] %v2035_v51  ;;  %2164 = vst [vmem:[%s3325_s3 + $0x3e8] sm:$0xff] %v2036_v52 }
 0x218   : > { %2165 = vst [vmem:[%s3325_s3 + $0x3f0] sm:$0xff] %v2037_v53  ;;  %2166 = vst [vmem:[%s3325_s3 + $0x3f8] sm:$0xff] %v2038_v58 }
 0x219 PF: > { %s13_s16 = sadd.s32 1, %s2428_s16   ;;  %s3326_s12 = smov %s2416_s13 }
 0x21a   : > { %p10_p12 = scmp.ge.s32.totalorder %s13_s16, 4   ;;  %s3327_s13 = smov %s2487_s20 }
 0x21b   : > { %s3328_s14 = smov %s2424_s15  ;;  %s3329_s15 = smov %s3331_s17 }
 0x21c   :  { %12 = sbr.rel (!%p10_p12) target bundleno = 3 (0x3), region = 119 }

</bundles_post_ra>
